<compile_context>
chip_gen: v7x
topology: tpu7x:2x2x1
jax: 0.10.0
libtpu: 0.0.40
codegen_flags: <defaults>
</compile_context>

<pallas_src>
import jax
import jax.numpy as jnp
from jax.experimental import pallas as pl
from jax.experimental.pallas import tpu as pltpu

# --------------------------------------------------------------------------------------
# configuration (small synthetic sizes, consistent with the module's forward())
# --------------------------------------------------------------------------------------
N_BATCH        = 2
FEAT           = 16                      # fbank feature dim
CHUNK          = 8                       # encoder.chunk_size[0]
LEFT           = 32                      # encoder.left_context_frames[0]
PAD_LEN        = 7 + 2 * 3               # self.pad_length = 13
T_IN           = CHUNK * 2 + PAD_LEN     # 29 input frames per chunk
EMBED_LEFT_PAD = 6                       # cached_embed left pad (time frames)
WIN            = PAD_LEN + 1 + EMBED_LEFT_PAD   # 20: (6+29-20)//2+1 == CHUNK
NUM_LAYERS     = 2
D              = 32                      # encoder_dim
NUM_HEADS      = 4
QHD            = 8                       # query_head_dim
VHD            = 8                       # value_head_dim
KEY_DIM        = NUM_HEADS * QHD         # 32
VALUE_DIM      = NUM_HEADS * VHD         # 32
NONLIN         = 3 * D // 4              # 24
CNN_K          = 7                       # cnn_module_kernel
CONV_PAD       = CNN_K // 2              # 3
FF             = 64
JOINER         = 64                      # encoder_proj output dim
DS             = 1
DLEFT          = LEFT // DS              # downsample_left

ATT_PER_LAYER = DLEFT * (KEY_DIM + NONLIN + 2 * VALUE_DIM)
CNN_PER_LAYER = 2 * D * CONV_PAD
IN_OUT        = 2 * KEY_DIM + 2 * VALUE_DIM + NONLIN    # 152: fused q|k|v1|v2|nonlin
OUT_IN        = 2 * VALUE_DIM + NONLIN                  # 88:  fused o1|o2|onl
S_LEN         = DLEFT + CHUNK                           # 40:  key/value sequence length

_VMEM = pl.BlockSpec(memory_space=pltpu.MemorySpace.VMEM)


# --------------------------------------------------------------------------------------
# single fused Pallas kernel: whole OnnxEncoder forward
# --------------------------------------------------------------------------------------
def _fused_encoder_kernel(
    # inputs
    win_ref,        # (N*CHUNK, WIN*FEAT)   pre-windowed fbank frames
    plen_ref,       # (N, 1) int32          processed_lens (for key-padding mask)
    ck_ref,         # (L, N, DLEFT, KEY_DIM)
    cn_ref,         # (L, N, DLEFT, NONLIN)
    cv1_ref,        # (L, N, DLEFT, VALUE_DIM)
    cv2_ref,        # (L, N, DLEFT, VALUE_DIM)
    cconv_ref,      # (L, N, CONV_PAD, 2*D) time-major conv caches [conv1|conv2]
    embed_w_ref,    # (WIN*FEAT, D)
    embed_b_ref,    # (1, D)
    w_in_ref,       # (L, D, IN_OUT)        fused [wq|wk|wv1|wv2|wn]
    b_in_ref,       # (L, 1, IN_OUT)
    w_out_ref,      # (L, OUT_IN, D)        fused [wo1;wo2;won]
    b_out_ref,      # (L, 1, D)             bo1+bo2+bon
    w_conv_ref,     # (L, CNN_K, 2*D)       [wc1.T | wc2.T]
    w_ff1_ref,      # (L, D, FF)
    b_ff1_ref,      # (L, 1, FF)
    w_ff2_ref,      # (L, FF, D)
    b_ff2_ref,      # (L, 1, D)
    proj_w_ref,     # (D, JOINER)
    proj_b_ref,     # (1, JOINER)
    # outputs
    out_ref,        # (N*CHUNK, JOINER)
    nk_ref,         # (L, N, DLEFT, KEY_DIM)
    nn_ref,         # (L, N, DLEFT, NONLIN)
    nv1_ref,        # (L, N, DLEFT, VALUE_DIM)
    nv2_ref,        # (L, N, DLEFT, VALUE_DIM)
    nconv_ref,      # (L, N, CONV_PAD, 2*D)
):
    n = plen_ref.shape[0]
    scale = 1.0 / float(QHD) ** 0.5

    # ---- encoder_embed: windowed linear projection + GELU ----
    # TODO(synk): tanh-approximate GELU; torch's default exact (erf) GELU differs slightly.
    x = jnp.dot(win_ref[...], embed_w_ref[...], preferred_element_type=jnp.float32)
    x = jax.nn.gelu(x + embed_b_ref[...], approximate=True)          # (N*C, D)

    # ---- additive key-padding mask over [left context | current chunk] positions ----
    pos = jax.lax.broadcasted_iota(jnp.int32, (n, S_LEN), 1)
    masked = plen_ref[...] <= (DLEFT - 1 - pos)                      # flipped processed mask
    mask_add = jnp.where(masked, -1e9, 0.0).astype(jnp.float32)      # (N, S)

    for li in range(NUM_LAYERS):
        w_in, b_in = w_in_ref[li], b_in_ref[li]
        w_out, b_out = w_out_ref[li], b_out_ref[li]
        w_cnv = w_conv_ref[li]
        w_f1, b_f1 = w_ff1_ref[li], b_ff1_ref[li]
        w_f2, b_f2 = w_ff2_ref[li], b_ff2_ref[li]

        # ---- fused q / k / v1 / v2 / nonlin projection (one matmul) ----
        proj = jnp.dot(x, w_in, preferred_element_type=jnp.float32) + b_in   # (N*C, 152)
        q3  = proj[:, 0:KEY_DIM].reshape(n, CHUNK, KEY_DIM)
        k3  = proj[:, KEY_DIM:2 * KEY_DIM].reshape(n, CHUNK, KEY_DIM)
        v13 = proj[:, 2 * KEY_DIM:2 * KEY_DIM + VALUE_DIM].reshape(n, CHUNK, VALUE_DIM)
        v23 = proj[:, 2 * KEY_DIM + VALUE_DIM:2 * KEY_DIM + 2 * VALUE_DIM].reshape(
            n, CHUNK, VALUE_DIM)
        nl3 = jnp.tanh(proj[:, 2 * KEY_DIM + 2 * VALUE_DIM:]).reshape(n, CHUNK, NONLIN)
        x3 = x.reshape(n, CHUNK, D)

        # ---- prepend cached left context ----
        k_full  = jnp.concatenate([ck_ref[li],  k3],  axis=1)        # (N, S, KEY_DIM)
        v1_full = jnp.concatenate([cv1_ref[li], v13], axis=1)
        v2_full = jnp.concatenate([cv2_ref[li], v23], axis=1)
        nl_full = jnp.concatenate([cn_ref[li],  nl3], axis=1)        # (N, S, NONLIN)

        # ---- multi-head attention (heads unrolled); head-0 weights reused for nonlin ----
        o1_heads, o2_heads, onl = [], [], None
        for h in range(NUM_HEADS):
            qs = q3[:, :, h * QHD:(h + 1) * QHD]                     # (N, C, 8)
            ks = k_full[:, :, h * QHD:(h + 1) * QHD]                 # (N, S, 8)
            s = jnp.einsum("ncq,nsq->ncs", qs, ks,
                           preferred_element_type=jnp.float32) * scale
            s = s + mask_add[:, None, :]
            p = jnp.exp(s - jnp.max(s, axis=-1, keepdims=True))
            attn = p / jnp.sum(p, axis=-1, keepdims=True)            # (N, C, S)
            o1_heads.append(jnp.einsum("ncs,nsv->ncv", attn,
                                       v1_full[:, :, h * VHD:(h + 1) * VHD],
                                       preferred_element_type=jnp.float32))
            o2_heads.append(jnp.einsum("ncs,nsv->ncv", attn,
                                       v2_full[:, :, h * VHD:(h + 1) * VHD],
                                       preferred_element_type=jnp.float32))
            if h == 0:
                onl = jnp.einsum("ncs,nsv->ncv", attn, nl_full,
                                 preferred_element_type=jnp.float32)

        # ---- stacked output projection [o1 | o2 | onl] @ [wo1; wo2; won] ----
        att_cat = jnp.concatenate(o1_heads + o2_heads + [onl], axis=-1)      # (N, C, 88)
        att_out = jnp.dot(att_cat.reshape(n * CHUNK, OUT_IN), w_out,
                          preferred_element_type=jnp.float32) + b_out        # (N*C, D)

        # ---- two depthwise causal convs, fused on the channel (lane) axis (2*D = 64) ----
        x_dup = jnp.concatenate([x3, x3], axis=-1)                           # (N, C, 2D)
        cxs = jnp.concatenate([cconv_ref[li], x_dup], axis=1)                # (N, PAD+C, 2D)
        cpad = jnp.concatenate(
            [jnp.zeros((n, CONV_PAD, 2 * D), jnp.float32), cxs], axis=1)     # (N, 2PAD+C, 2D)
        conv = jnp.zeros((n, CHUNK, 2 * D), jnp.float32)
        for kk in range(CNN_K):
            conv = conv + cpad[:, kk:kk + CHUNK, :] * w_cnv[kk:kk + 1, :][None, :, :]
        conv_sum = (conv[:, :, :D] + conv[:, :, D:]).reshape(n * CHUNK, D)
        # TODO(synk): conv left context is CONV_PAD(=3) real frames + 3 zeros (simplified
        #             vs. the reference ConvolutionModule streaming cache semantics).

        y = x + att_out + conv_sum

        # ---- feed-forward block ----
        h1 = jax.nn.gelu(jnp.dot(y, w_f1, preferred_element_type=jnp.float32) + b_f1,
                         approximate=True)
        y = y + jnp.dot(h1, w_f2, preferred_element_type=jnp.float32) + b_f2

        # ---- new streaming caches for this layer ----
        nk_ref[li]  = k_full[:, CHUNK:, :]        # last DLEFT frames
        nn_ref[li]  = nl_full[:, CHUNK:, :]
        nv1_ref[li] = v1_full[:, CHUNK:, :]
        nv2_ref[li] = v2_full[:, CHUNK:, :]
        nconv_ref[li] = cxs[:, CHUNK:, :]         # last CONV_PAD frames (both convs)

        x = y

    # ---- joiner encoder_proj ----
    out = jnp.dot(x, proj_w_ref[...], preferred_element_type=jnp.float32) + proj_b_ref[...]
    out_ref[...] = out.astype(out_ref.dtype)


# --------------------------------------------------------------------------------------
# parameter construction (deterministic, synthetic) + packing for the fused kernel
# --------------------------------------------------------------------------------------
def _init(key, shape, scale=0.05):
    return scale * jax.random.normal(key, shape, dtype=jnp.float32)


def make_params(seed=42):
    key = jax.random.PRNGKey(seed)
    ks = iter(jax.random.split(key, 8 + NUM_LAYERS * 32))
    params = {
        "embed_w": _init(next(ks), (WIN * FEAT, D)),
        "embed_b": _init(next(ks), (D,)),
        "proj_w": _init(next(ks), (D, JOINER)),
        "proj_b": _init(next(ks), (JOINER,)),
        "layers": [],
    }
    for _ in range(NUM_LAYERS):
        lp = {
            "wq": _init(next(ks), (D, KEY_DIM)),  "bq": _init(next(ks), (KEY_DIM,)),
            "wk": _init(next(ks), (D, KEY_DIM)),  "bk": _init(next(ks), (KEY_DIM,)),
            "wv1": _init(next(ks), (D, VALUE_DIM)), "bv1": _init(next(ks), (VALUE_DIM,)),
            "wv2": _init(next(ks), (D, VALUE_DIM)), "bv2": _init(next(ks), (VALUE_DIM,)),
            "wn": _init(next(ks), (D, NONLIN)),   "bn": _init(next(ks), (NONLIN,)),
            "wo1": _init(next(ks), (VALUE_DIM, D)), "bo1": _init(next(ks), (D,)),
            "wo2": _init(next(ks), (VALUE_DIM, D)), "bo2": _init(next(ks), (D,)),
            "won": _init(next(ks), (NONLIN, D)),  "bon": _init(next(ks), (D,)),
            "wc1": _init(next(ks), (D, CNN_K)),
            "wc2": _init(next(ks), (D, CNN_K)),
            "wff1": _init(next(ks), (D, FF)),     "bff1": _init(next(ks), (FF,)),
            "wff2": _init(next(ks), (FF, D)),     "bff2": _init(next(ks), (D,)),
        }
        params["layers"].append(lp)
    return params


def pack_params(params):
    """Concatenate per-layer weights into the fused-kernel layout."""
    L = params["layers"]
    return {
        "embed_w": params["embed_w"],
        "embed_b": params["embed_b"][None, :],
        "proj_w": params["proj_w"],
        "proj_b": params["proj_b"][None, :],
        "w_in": jnp.stack([jnp.concatenate(
            [lp["wq"], lp["wk"], lp["wv1"], lp["wv2"], lp["wn"]], axis=1) for lp in L]),
        "b_in": jnp.stack([jnp.concatenate(
            [lp["bq"], lp["bk"], lp["bv1"], lp["bv2"], lp["bn"]])[None, :] for lp in L]),
        "w_out": jnp.stack([jnp.concatenate(
            [lp["wo1"], lp["wo2"], lp["won"]], axis=0) for lp in L]),
        "b_out": jnp.stack([(lp["bo1"] + lp["bo2"] + lp["bon"])[None, :] for lp in L]),
        "w_conv": jnp.stack([jnp.concatenate(
            [lp["wc1"].T, lp["wc2"].T], axis=1) for lp in L]),
        "w_ff1": jnp.stack([lp["wff1"] for lp in L]),
        "b_ff1": jnp.stack([lp["bff1"][None, :] for lp in L]),
        "w_ff2": jnp.stack([lp["wff2"] for lp in L]),
        "b_ff2": jnp.stack([lp["bff2"][None, :] for lp in L]),
    }


# --------------------------------------------------------------------------------------
# OnnxEncoder.forward (wrapper: tiny XLA bookkeeping around ONE fused pallas_call)
# --------------------------------------------------------------------------------------
def onnx_encoder_forward(packed, x, cached_att, cached_cnn, cached_embed, processed_lens):
    n = x.shape[0]

    # --- encoder_embed windowing (strided overlapping windows -> flat slab for the kernel) ---
    # TODO(synk): real encoder_embed is Conv2dSubsampling + ConvNeXt with a 2-D cached pad;
    #             modelled here as a strided windowed linear projection over time.
    full = jnp.concatenate([cached_embed, x], axis=1)                     # (N, LPAD+T, F)
    t_idx = 2 * jnp.arange(CHUNK)[:, None] + jnp.arange(WIN)[None, :]     # (CHUNK, WIN)
    win_flat = full[:, t_idx, :].reshape(n * CHUNK, WIN * FEAT)

    # --- unpack flat streaming caches (layout-only slices; fused by XLA around the kernel) ---
    cks, cns, cv1s, cv2s, ccs = [], [], [], [], []
    ia = ic = 0
    for _ in range(NUM_LAYERS):
        cks.append(cached_att[:, ia:ia + DLEFT * KEY_DIM].reshape(n, DLEFT, KEY_DIM))
        ia += DLEFT * KEY_DIM
        cns.append(cached_att[:, ia:ia + DLEFT * NONLIN].reshape(n, DLEFT, NONLIN))
        ia += DLEFT * NONLIN
        cv1s.append(cached_att[:, ia:ia + DLEFT * VALUE_DIM].reshape(n, DLEFT, VALUE_DIM))
        ia += DLEFT * VALUE_DIM
        cv2s.append(cached_att[:, ia:ia + DLEFT * VALUE_DIM].reshape(n, DLEFT, VALUE_DIM))
        ia += DLEFT * VALUE_DIM
        cc1 = cached_cnn[:, ic:ic + D * CONV_PAD].reshape(n, D, CONV_PAD)
        ic += D * CONV_PAD
        cc2 = cached_cnn[:, ic:ic + D * CONV_PAD].reshape(n, D, CONV_PAD)
        ic += D * CONV_PAD
        ccs.append(jnp.concatenate(
            [cc1.transpose(0, 2, 1), cc2.transpose(0, 2, 1)], axis=-1))   # (N, PAD, 2D)
    ck_all, cn_all = jnp.stack(cks), jnp.stack(cns)
    cv1_all, cv2_all, cc_all = jnp.stack(cv1s), jnp.stack(cv2s), jnp.stack(ccs)

    plen = processed_lens.astype(jnp.int32).reshape(n, 1)

    fused = pl.pallas_call(
        _fused_encoder_kernel,
        out_shape=(
            jax.ShapeDtypeStruct((n * CHUNK, JOINER), jnp.float32),
            jax.ShapeDtypeStruct((NUM_LAYERS, n, DLEFT, KEY_DIM), jnp.float32),
            jax.ShapeDtypeStruct((NUM_LAYERS, n, DLEFT, NONLIN), jnp.float32),
            jax.ShapeDtypeStruct((NUM_LAYERS, n, DLEFT, VALUE_DIM), jnp.float32),
            jax.ShapeDtypeStruct((NUM_LAYERS, n, DLEFT, VALUE_DIM), jnp.float32),
            jax.ShapeDtypeStruct((NUM_LAYERS, n, CONV_PAD, 2 * D), jnp.float32),
        ),
        in_specs=[_VMEM] * 20,
        out_specs=(_VMEM,) * 6,
    )
    out, nk, nn_, nv1, nv2, nconv = fused(
        win_flat, plen, ck_all, cn_all, cv1_all, cv2_all, cc_all,
        packed["embed_w"], packed["embed_b"],
        packed["w_in"], packed["b_in"], packed["w_out"], packed["b_out"],
        packed["w_conv"], packed["w_ff1"], packed["b_ff1"],
        packed["w_ff2"], packed["b_ff2"], packed["proj_w"], packed["proj_b"])

    encoder_out = out.reshape(n, CHUNK, JOINER)

    # --- repack streaming caches into flat (N, -1) tensors (reference ordering) ---
    att_parts, cnn_parts = [], []
    for li in range(NUM_LAYERS):
        att_parts += [nk[li].reshape(n, -1), nn_[li].reshape(n, -1),
                      nv1[li].reshape(n, -1), nv2[li].reshape(n, -1)]
        cnn_parts += [nconv[li, :, :, :D].transpose(0, 2, 1).reshape(n, -1),
                      nconv[li, :, :, D:].transpose(0, 2, 1).reshape(n, -1)]
    new_cached_att = jnp.concatenate(att_parts, axis=1)
    new_cached_cnn = jnp.concatenate(cnn_parts, axis=1)

    new_cached_embed = x[:, -EMBED_LEFT_PAD:, :]
    new_processed_lens = processed_lens + CHUNK
    return encoder_out, new_cached_att, new_cached_cnn, new_cached_embed, new_processed_lens


# --------------------------------------------------------------------------------------
if __name__ == "__main__":
    params = make_params(seed=42)
    packed = pack_params(params)

    key = jax.random.PRNGKey(0)
    kx, ka, kc, ke = jax.random.split(key, 4)
    x = jax.random.normal(kx, (N_BATCH, T_IN, FEAT), dtype=jnp.float32)
    cached_att = 0.1 * jax.random.normal(ka, (N_BATCH, NUM_LAYERS * ATT_PER_LAYER), jnp.float32)
    cached_cnn = 0.1 * jax.random.normal(kc, (N_BATCH, NUM_LAYERS * CNN_PER_LAYER), jnp.float32)
    cached_embed = 0.1 * jax.random.normal(ke, (N_BATCH, EMBED_LEFT_PAD, FEAT), jnp.float32)
    processed_lens = jnp.array([[0], [20]], dtype=jnp.int32)

    fwd = jax.jit(onnx_encoder_forward)
    outs = fwd(packed, x, cached_att, cached_cnn, cached_embed, processed_lens)
    outs = jax.block_until_ready(outs)

    enc, natt, ncnn, nemb, nlen = outs
    assert enc.shape == (N_BATCH, CHUNK, JOINER)
    assert natt.shape == (N_BATCH, NUM_LAYERS * ATT_PER_LAYER)
    assert ncnn.shape == (N_BATCH, NUM_LAYERS * CNN_PER_LAYER)
    assert nemb.shape == (N_BATCH, EMBED_LEFT_PAD, FEAT)
    assert nlen.shape == (N_BATCH, 1)
    assert all(bool(jnp.all(jnp.isfinite(o))) for o in (enc, natt, ncnn, nemb))
    print("KERNEL_OK")
</pallas_src>

<mosaic_0001>
module attributes {stable_mosaic.version = 11 : i64} {
  func.func @_fused_encoder_kernel(%arg0: memref<16x320xf32, #tpu.memory_space<vmem>>, %arg1: memref<2x1xi32, #tpu.memory_space<vmem>>, %arg2: memref<2x2x32x32xf32, #tpu.memory_space<vmem>>, %arg3: memref<2x2x32x24xf32, #tpu.memory_space<vmem>>, %arg4: memref<2x2x32x32xf32, #tpu.memory_space<vmem>>, %arg5: memref<2x2x32x32xf32, #tpu.memory_space<vmem>>, %arg6: memref<2x2x3x64xf32, #tpu.memory_space<vmem>>, %arg7: memref<320x32xf32, #tpu.memory_space<vmem>>, %arg8: memref<1x32xf32, #tpu.memory_space<vmem>>, %arg9: memref<2x32x152xf32, #tpu.memory_space<vmem>>, %arg10: memref<2x1x152xf32, #tpu.memory_space<vmem>>, %arg11: memref<2x88x32xf32, #tpu.memory_space<vmem>>, %arg12: memref<2x1x32xf32, #tpu.memory_space<vmem>>, %arg13: memref<2x7x64xf32, #tpu.memory_space<vmem>>, %arg14: memref<2x32x64xf32, #tpu.memory_space<vmem>>, %arg15: memref<2x1x64xf32, #tpu.memory_space<vmem>>, %arg16: memref<2x64x32xf32, #tpu.memory_space<vmem>>, %arg17: memref<2x1x32xf32, #tpu.memory_space<vmem>>, %arg18: memref<32x64xf32, #tpu.memory_space<vmem>>, %arg19: memref<1x64xf32, #tpu.memory_space<vmem>>, %arg20: memref<16x64xf32, #tpu.memory_space<vmem>>, %arg21: memref<2x2x32x32xf32, #tpu.memory_space<vmem>>, %arg22: memref<2x2x32x24xf32, #tpu.memory_space<vmem>>, %arg23: memref<2x2x32x32xf32, #tpu.memory_space<vmem>>, %arg24: memref<2x2x32x32xf32, #tpu.memory_space<vmem>>, %arg25: memref<2x2x3x64xf32, #tpu.memory_space<vmem>>) attributes {dimension_semantics = [], scalar_prefetch = 0 : i64, scratch_operands = 0 : i64, tpu.core_type = #tpu.core_type<tc>} {
    %c0 = arith.constant 0 : index
    %c0_0 = arith.constant 0 : index
    %0 = vector.load %arg0[%c0, %c0_0] : memref<16x320xf32, #tpu.memory_space<vmem>>, vector<16x320xf32>
    %c0_1 = arith.constant 0 : index
    %c0_2 = arith.constant 0 : index
    %1 = vector.load %arg7[%c0_1, %c0_2] : memref<320x32xf32, #tpu.memory_space<vmem>>, vector<320x32xf32>
    %cst = arith.constant dense<0.000000e+00> : vector<16x32xf32>
    %2 = tpu.matmul %0, %1, %cst {dimension_numbers = #tpu.dot_dimension_numbers<[1], [0], [0], [1], [0, 0, 1, 1], [], []>} : vector<16x320xf32>, vector<320x32xf32>, vector<16x32xf32> -> vector<16x32xf32>
    %c0_3 = arith.constant 0 : index
    %c0_4 = arith.constant 0 : index
    %3 = vector.load %arg8[%c0_3, %c0_4] : memref<1x32xf32, #tpu.memory_space<vmem>>, vector<1x32xf32>
    %4 = vector.broadcast %3 : vector<1x32xf32> to vector<16x32xf32>
    %5 = arith.addf %2, %4 : vector<16x32xf32>
    %6 = arith.mulf %5, %5 : vector<16x32xf32>
    %7 = arith.mulf %5, %6 : vector<16x32xf32>
    %cst_5 = arith.constant 4.471500e-02 : f32
    %8 = vector.broadcast %cst_5 : f32 to vector<16x32xf32>
    %9 = arith.mulf %8, %7 : vector<16x32xf32>
    %10 = arith.addf %5, %9 : vector<16x32xf32>
    %cst_6 = arith.constant 0.797884583 : f32
    %11 = vector.broadcast %cst_6 : f32 to vector<16x32xf32>
    %12 = arith.mulf %11, %10 : vector<16x32xf32>
    %13 = math.tanh %12 : vector<16x32xf32>
    %cst_7 = arith.constant 1.000000e+00 : f32
    %14 = vector.broadcast %cst_7 : f32 to vector<16x32xf32>
    %15 = arith.addf %14, %13 : vector<16x32xf32>
    %cst_8 = arith.constant 5.000000e-01 : f32
    %16 = vector.broadcast %cst_8 : f32 to vector<16x32xf32>
    %17 = arith.mulf %16, %15 : vector<16x32xf32>
    %18 = arith.mulf %5, %17 : vector<16x32xf32>
    %19 = tpu.iota {dimensions = array<i32: 1>} : vector<2x40xi32>
    %c0_9 = arith.constant 0 : index
    %c0_10 = arith.constant 0 : index
    %20 = vector.load %arg1[%c0_9, %c0_10] : memref<2x1xi32, #tpu.memory_space<vmem>>, vector<2x1xi32>
    %c31_i32 = arith.constant 31 : i32
    %21 = vector.broadcast %c31_i32 : i32 to vector<2x40xi32>
    %22 = arith.subi %21, %19 : vector<2x40xi32>
    %23 = vector.broadcast %20 : vector<2x1xi32> to vector<2x40xi32>
    %24 = arith.cmpi sle, %23, %22 : vector<2x40xi32>
    %cst_11 = arith.constant -1.000000e+09 : f32
    %cst_12 = arith.constant 0.000000e+00 : f32
    %25 = vector.broadcast %cst_11 : f32 to vector<2x40xf32>
    %26 = vector.broadcast %cst_12 : f32 to vector<2x40xf32>
    %27 = arith.select %24, %25, %26 : vector<2x40xi1>, vector<2x40xf32>
    %c0_13 = arith.constant 0 : index
    %c0_14 = arith.constant 0 : index
    %c0_15 = arith.constant 0 : index
    %28 = vector.load %arg9[%c0_13, %c0_14, %c0_15] : memref<2x32x152xf32, #tpu.memory_space<vmem>>, vector<1x32x152xf32>
    %29 = vector.shape_cast %28 : vector<1x32x152xf32> to vector<32x152xf32>
    %c0_16 = arith.constant 0 : index
    %c0_17 = arith.constant 0 : index
    %c0_18 = arith.constant 0 : index
    %30 = vector.load %arg10[%c0_16, %c0_17, %c0_18] : memref<2x1x152xf32, #tpu.memory_space<vmem>>, vector<1x1x152xf32>
    %31 = vector.shape_cast %30 : vector<1x1x152xf32> to vector<1x152xf32>
    %c0_19 = arith.constant 0 : index
    %c0_20 = arith.constant 0 : index
    %c0_21 = arith.constant 0 : index
    %32 = vector.load %arg11[%c0_19, %c0_20, %c0_21] : memref<2x88x32xf32, #tpu.memory_space<vmem>>, vector<1x88x32xf32>
    %33 = vector.shape_cast %32 : vector<1x88x32xf32> to vector<88x32xf32>
    %c0_22 = arith.constant 0 : index
    %c0_23 = arith.constant 0 : index
    %c0_24 = arith.constant 0 : index
    %34 = vector.load %arg12[%c0_22, %c0_23, %c0_24] : memref<2x1x32xf32, #tpu.memory_space<vmem>>, vector<1x1x32xf32>
    %35 = vector.shape_cast %34 : vector<1x1x32xf32> to vector<1x32xf32>
    %c0_25 = arith.constant 0 : index
    %c0_26 = arith.constant 0 : index
    %c0_27 = arith.constant 0 : index
    %36 = vector.load %arg13[%c0_25, %c0_26, %c0_27] : memref<2x7x64xf32, #tpu.memory_space<vmem>>, vector<1x7x64xf32>
    %37 = vector.shape_cast %36 : vector<1x7x64xf32> to vector<7x64xf32>
    %c0_28 = arith.constant 0 : index
    %c0_29 = arith.constant 0 : index
    %c0_30 = arith.constant 0 : index
    %38 = vector.load %arg14[%c0_28, %c0_29, %c0_30] : memref<2x32x64xf32, #tpu.memory_space<vmem>>, vector<1x32x64xf32>
    %39 = vector.shape_cast %38 : vector<1x32x64xf32> to vector<32x64xf32>
    %c0_31 = arith.constant 0 : index
    %c0_32 = arith.constant 0 : index
    %c0_33 = arith.constant 0 : index
    %40 = vector.load %arg15[%c0_31, %c0_32, %c0_33] : memref<2x1x64xf32, #tpu.memory_space<vmem>>, vector<1x1x64xf32>
    %41 = vector.shape_cast %40 : vector<1x1x64xf32> to vector<1x64xf32>
    %c0_34 = arith.constant 0 : index
    %c0_35 = arith.constant 0 : index
    %c0_36 = arith.constant 0 : index
    %42 = vector.load %arg16[%c0_34, %c0_35, %c0_36] : memref<2x64x32xf32, #tpu.memory_space<vmem>>, vector<1x64x32xf32>
    %43 = vector.shape_cast %42 : vector<1x64x32xf32> to vector<64x32xf32>
    %c0_37 = arith.constant 0 : index
    %c0_38 = arith.constant 0 : index
    %c0_39 = arith.constant 0 : index
    %44 = vector.load %arg17[%c0_37, %c0_38, %c0_39] : memref<2x1x32xf32, #tpu.memory_space<vmem>>, vector<1x1x32xf32>
    %45 = vector.shape_cast %44 : vector<1x1x32xf32> to vector<1x32xf32>
    %cst_40 = arith.constant dense<0.000000e+00> : vector<16x152xf32>
    %46 = tpu.matmul %18, %29, %cst_40 {dimension_numbers = #tpu.dot_dimension_numbers<[1], [0], [0], [1], [0, 0, 1, 1], [], []>} : vector<16x32xf32>, vector<32x152xf32>, vector<16x152xf32> -> vector<16x152xf32>
    %47 = vector.broadcast %31 : vector<1x152xf32> to vector<16x152xf32>
    %48 = arith.addf %46, %47 : vector<16x152xf32>
    %49 = vector.extract_strided_slice %48 {offsets = [0, 0], sizes = [16, 32], strides = [1, 1]} : vector<16x152xf32> to vector<16x32xf32>
    %50 = vector.shape_cast %49 : vector<16x32xf32> to vector<2x8x32xf32>
    %51 = vector.extract_strided_slice %48 {offsets = [0, 32], sizes = [16, 32], strides = [1, 1]} : vector<16x152xf32> to vector<16x32xf32>
    %52 = vector.shape_cast %51 : vector<16x32xf32> to vector<2x8x32xf32>
    %53 = vector.extract_strided_slice %48 {offsets = [0, 64], sizes = [16, 32], strides = [1, 1]} : vector<16x152xf32> to vector<16x32xf32>
    %54 = vector.shape_cast %53 : vector<16x32xf32> to vector<2x8x32xf32>
    %55 = vector.extract_strided_slice %48 {offsets = [0, 96], sizes = [16, 32], strides = [1, 1]} : vector<16x152xf32> to vector<16x32xf32>
    %56 = vector.shape_cast %55 : vector<16x32xf32> to vector<2x8x32xf32>
    %57 = vector.extract_strided_slice %48 {offsets = [0, 128], sizes = [16, 24], strides = [1, 1]} : vector<16x152xf32> to vector<16x24xf32>
    %58 = math.tanh %57 : vector<16x24xf32>
    %59 = vector.shape_cast %58 : vector<16x24xf32> to vector<2x8x24xf32>
    %60 = vector.shape_cast %18 : vector<16x32xf32> to vector<2x8x32xf32>
    %c0_41 = arith.constant 0 : index
    %c0_42 = arith.constant 0 : index
    %c0_43 = arith.constant 0 : index
    %c0_44 = arith.constant 0 : index
    %61 = vector.load %arg2[%c0_41, %c0_42, %c0_43, %c0_44] : memref<2x2x32x32xf32, #tpu.memory_space<vmem>>, vector<1x2x32x32xf32>
    %62 = vector.shape_cast %61 : vector<1x2x32x32xf32> to vector<2x32x32xf32>
    %63 = tpu.concatenate %62, %52 in 1 : vector<2x32x32xf32>, vector<2x8x32xf32> -> vector<2x40x32xf32>
    %c0_45 = arith.constant 0 : index
    %c0_46 = arith.constant 0 : index
    %c0_47 = arith.constant 0 : index
    %c0_48 = arith.constant 0 : index
    %64 = vector.load %arg4[%c0_45, %c0_46, %c0_47, %c0_48] : memref<2x2x32x32xf32, #tpu.memory_space<vmem>>, vector<1x2x32x32xf32>
    %65 = vector.shape_cast %64 : vector<1x2x32x32xf32> to vector<2x32x32xf32>
    %66 = tpu.concatenate %65, %54 in 1 : vector<2x32x32xf32>, vector<2x8x32xf32> -> vector<2x40x32xf32>
    %c0_49 = arith.constant 0 : index
    %c0_50 = arith.constant 0 : index
    %c0_51 = arith.constant 0 : index
    %c0_52 = arith.constant 0 : index
    %67 = vector.load %arg5[%c0_49, %c0_50, %c0_51, %c0_52] : memref<2x2x32x32xf32, #tpu.memory_space<vmem>>, vector<1x2x32x32xf32>
    %68 = vector.shape_cast %67 : vector<1x2x32x32xf32> to vector<2x32x32xf32>
    %69 = tpu.concatenate %68, %56 in 1 : vector<2x32x32xf32>, vector<2x8x32xf32> -> vector<2x40x32xf32>
    %c0_53 = arith.constant 0 : index
    %c0_54 = arith.constant 0 : index
    %c0_55 = arith.constant 0 : index
    %c0_56 = arith.constant 0 : index
    %70 = vector.load %arg3[%c0_53, %c0_54, %c0_55, %c0_56] : memref<2x2x32x24xf32, #tpu.memory_space<vmem>>, vector<1x2x32x24xf32>
    %71 = vector.shape_cast %70 : vector<1x2x32x24xf32> to vector<2x32x24xf32>
    %72 = tpu.concatenate %71, %59 in 1 : vector<2x32x24xf32>, vector<2x8x24xf32> -> vector<2x40x24xf32>
    %73 = vector.extract_strided_slice %50 {offsets = [0, 0, 0], sizes = [2, 8, 8], strides = [1, 1, 1]} : vector<2x8x32xf32> to vector<2x8x8xf32>
    %74 = vector.extract_strided_slice %63 {offsets = [0, 0, 0], sizes = [2, 40, 8], strides = [1, 1, 1]} : vector<2x40x32xf32> to vector<2x40x8xf32>
    "tpu.trace_start"() <{level = 10 : i32, message = "ncq,nsq->ncs"}> : () -> ()
    %cst_57 = arith.constant dense<0.000000e+00> : vector<2x8x40xf32>
    %75 = tpu.matmul %73, %74, %cst_57 {dimension_numbers = #tpu.dot_dimension_numbers<[2], [2], [1], [1], [0, 0, 0, 1, 1, 1], [0], [0]>} : vector<2x8x8xf32>, vector<2x40x8xf32>, vector<2x8x40xf32> -> vector<2x8x40xf32>
    "tpu.trace_stop"() : () -> ()
    %cst_58 = arith.constant 0.353553385 : f32
    %76 = vector.broadcast %cst_58 : f32 to vector<2x8x40xf32>
    %77 = arith.mulf %75, %76 : vector<2x8x40xf32>
    %78 = vector.shape_cast %27 : vector<2x40xf32> to vector<2x1x40xf32>
    %79 = vector.broadcast %78 : vector<2x1x40xf32> to vector<2x8x40xf32>
    %80 = arith.addf %77, %79 : vector<2x8x40xf32>
    %cst_59 = arith.constant dense<0xFF800000> : vector<2x8xf32>
    %81 = vector.multi_reduction <maximumf>, %80, %cst_59 [2] : vector<2x8x40xf32> to vector<2x8xf32>
    %82 = vector.shape_cast %81 : vector<2x8xf32> to vector<2x8x1xf32>
    %83 = vector.broadcast %82 : vector<2x8x1xf32> to vector<2x8x40xf32>
    %84 = arith.subf %80, %83 : vector<2x8x40xf32>
    %85 = math.exp %84 : vector<2x8x40xf32>
    %cst_60 = arith.constant dense<0.000000e+00> : vector<2x8xf32>
    %86 = vector.multi_reduction <add>, %85, %cst_60 [2] : vector<2x8x40xf32> to vector<2x8xf32>
    %87 = vector.shape_cast %86 : vector<2x8xf32> to vector<2x8x1xf32>
    %88 = vector.broadcast %87 : vector<2x8x1xf32> to vector<2x8x40xf32>
    %89 = arith.divf %85, %88 : vector<2x8x40xf32>
    %90 = vector.extract_strided_slice %66 {offsets = [0, 0, 0], sizes = [2, 40, 8], strides = [1, 1, 1]} : vector<2x40x32xf32> to vector<2x40x8xf32>
    "tpu.trace_start"() <{level = 10 : i32, message = "ncs,nsv->ncv"}> : () -> ()
    %cst_61 = arith.constant dense<0.000000e+00> : vector<2x8x8xf32>
    %91 = tpu.matmul %89, %90, %cst_61 {dimension_numbers = #tpu.dot_dimension_numbers<[2], [1], [1], [2], [0, 0, 0, 1, 1, 2], [0], [0]>} : vector<2x8x40xf32>, vector<2x40x8xf32>, vector<2x8x8xf32> -> vector<2x8x8xf32>
    "tpu.trace_stop"() : () -> ()
    %92 = vector.extract_strided_slice %69 {offsets = [0, 0, 0], sizes = [2, 40, 8], strides = [1, 1, 1]} : vector<2x40x32xf32> to vector<2x40x8xf32>
    "tpu.trace_start"() <{level = 10 : i32, message = "ncs,nsv->ncv"}> : () -> ()
    %cst_62 = arith.constant dense<0.000000e+00> : vector<2x8x8xf32>
    %93 = tpu.matmul %89, %92, %cst_62 {dimension_numbers = #tpu.dot_dimension_numbers<[2], [1], [1], [2], [0, 0, 0, 1, 1, 2], [0], [0]>} : vector<2x8x40xf32>, vector<2x40x8xf32>, vector<2x8x8xf32> -> vector<2x8x8xf32>
    %cst_63 = arith.constant dense<0.000000e+00> : vector<2x8x24xf32>
    %94 = tpu.matmul %89, %72, %cst_63 {dimension_numbers = #tpu.dot_dimension_numbers<[2], [1], [1], [2], [0, 0, 0, 1, 1, 2], [0], [0]>} : vector<2x8x40xf32>, vector<2x40x24xf32>, vector<2x8x24xf32> -> vector<2x8x24xf32>
    "tpu.trace_stop"() : () -> ()
    %95 = vector.extract_strided_slice %50 {offsets = [0, 0, 8], sizes = [2, 8, 8], strides = [1, 1, 1]} : vector<2x8x32xf32> to vector<2x8x8xf32>
    %96 = vector.extract_strided_slice %63 {offsets = [0, 0, 8], sizes = [2, 40, 8], strides = [1, 1, 1]} : vector<2x40x32xf32> to vector<2x40x8xf32>
    "tpu.trace_start"() <{level = 10 : i32, message = "ncq,nsq->ncs"}> : () -> ()
    %cst_64 = arith.constant dense<0.000000e+00> : vector<2x8x40xf32>
    %97 = tpu.matmul %95, %96, %cst_64 {dimension_numbers = #tpu.dot_dimension_numbers<[2], [2], [1], [1], [0, 0, 0, 1, 1, 1], [0], [0]>} : vector<2x8x8xf32>, vector<2x40x8xf32>, vector<2x8x40xf32> -> vector<2x8x40xf32>
    "tpu.trace_stop"() : () -> ()
    %cst_65 = arith.constant 0.353553385 : f32
    %98 = vector.broadcast %cst_65 : f32 to vector<2x8x40xf32>
    %99 = arith.mulf %97, %98 : vector<2x8x40xf32>
    %100 = vector.shape_cast %27 : vector<2x40xf32> to vector<2x1x40xf32>
    %101 = vector.broadcast %100 : vector<2x1x40xf32> to vector<2x8x40xf32>
    %102 = arith.addf %99, %101 : vector<2x8x40xf32>
    %cst_66 = arith.constant dense<0xFF800000> : vector<2x8xf32>
    %103 = vector.multi_reduction <maximumf>, %102, %cst_66 [2] : vector<2x8x40xf32> to vector<2x8xf32>
    %104 = vector.shape_cast %103 : vector<2x8xf32> to vector<2x8x1xf32>
    %105 = vector.broadcast %104 : vector<2x8x1xf32> to vector<2x8x40xf32>
    %106 = arith.subf %102, %105 : vector<2x8x40xf32>
    %107 = math.exp %106 : vector<2x8x40xf32>
    %cst_67 = arith.constant dense<0.000000e+00> : vector<2x8xf32>
    %108 = vector.multi_reduction <add>, %107, %cst_67 [2] : vector<2x8x40xf32> to vector<2x8xf32>
    %109 = vector.shape_cast %108 : vector<2x8xf32> to vector<2x8x1xf32>
    %110 = vector.broadcast %109 : vector<2x8x1xf32> to vector<2x8x40xf32>
    %111 = arith.divf %107, %110 : vector<2x8x40xf32>
    %112 = vector.extract_strided_slice %66 {offsets = [0, 0, 8], sizes = [2, 40, 8], strides = [1, 1, 1]} : vector<2x40x32xf32> to vector<2x40x8xf32>
    "tpu.trace_start"() <{level = 10 : i32, message = "ncs,nsv->ncv"}> : () -> ()
    %cst_68 = arith.constant dense<0.000000e+00> : vector<2x8x8xf32>
    %113 = tpu.matmul %111, %112, %cst_68 {dimension_numbers = #tpu.dot_dimension_numbers<[2], [1], [1], [2], [0, 0, 0, 1, 1, 2], [0], [0]>} : vector<2x8x40xf32>, vector<2x40x8xf32>, vector<2x8x8xf32> -> vector<2x8x8xf32>
    "tpu.trace_stop"() : () -> ()
    %114 = vector.extract_strided_slice %69 {offsets = [0, 0, 8], sizes = [2, 40, 8], strides = [1, 1, 1]} : vector<2x40x32xf32> to vector<2x40x8xf32>
    "tpu.trace_start"() <{level = 10 : i32, message = "ncs,nsv->ncv"}> : () -> ()
    %cst_69 = arith.constant dense<0.000000e+00> : vector<2x8x8xf32>
    %115 = tpu.matmul %111, %114, %cst_69 {dimension_numbers = #tpu.dot_dimension_numbers<[2], [1], [1], [2], [0, 0, 0, 1, 1, 2], [0], [0]>} : vector<2x8x40xf32>, vector<2x40x8xf32>, vector<2x8x8xf32> -> vector<2x8x8xf32>
    "tpu.trace_stop"() : () -> ()
    %116 = vector.extract_strided_slice %50 {offsets = [0, 0, 16], sizes = [2, 8, 8], strides = [1, 1, 1]} : vector<2x8x32xf32> to vector<2x8x8xf32>
    %117 = vector.extract_strided_slice %63 {offsets = [0, 0, 16], sizes = [2, 40, 8], strides = [1, 1, 1]} : vector<2x40x32xf32> to vector<2x40x8xf32>
    "tpu.trace_start"() <{level = 10 : i32, message = "ncq,nsq->ncs"}> : () -> ()
    %cst_70 = arith.constant dense<0.000000e+00> : vector<2x8x40xf32>
    %118 = tpu.matmul %116, %117, %cst_70 {dimension_numbers = #tpu.dot_dimension_numbers<[2], [2], [1], [1], [0, 0, 0, 1, 1, 1], [0], [0]>} : vector<2x8x8xf32>, vector<2x40x8xf32>, vector<2x8x40xf32> -> vector<2x8x40xf32>
    "tpu.trace_stop"() : () -> ()
    %cst_71 = arith.constant 0.353553385 : f32
    %119 = vector.broadcast %cst_71 : f32 to vector<2x8x40xf32>
    %120 = arith.mulf %118, %119 : vector<2x8x40xf32>
    %121 = vector.shape_cast %27 : vector<2x40xf32> to vector<2x1x40xf32>
    %122 = vector.broadcast %121 : vector<2x1x40xf32> to vector<2x8x40xf32>
    %123 = arith.addf %120, %122 : vector<2x8x40xf32>
    %cst_72 = arith.constant dense<0xFF800000> : vector<2x8xf32>
    %124 = vector.multi_reduction <maximumf>, %123, %cst_72 [2] : vector<2x8x40xf32> to vector<2x8xf32>
    %125 = vector.shape_cast %124 : vector<2x8xf32> to vector<2x8x1xf32>
    %126 = vector.broadcast %125 : vector<2x8x1xf32> to vector<2x8x40xf32>
    %127 = arith.subf %123, %126 : vector<2x8x40xf32>
    %128 = math.exp %127 : vector<2x8x40xf32>
    %cst_73 = arith.constant dense<0.000000e+00> : vector<2x8xf32>
    %129 = vector.multi_reduction <add>, %128, %cst_73 [2] : vector<2x8x40xf32> to vector<2x8xf32>
    %130 = vector.shape_cast %129 : vector<2x8xf32> to vector<2x8x1xf32>
    %131 = vector.broadcast %130 : vector<2x8x1xf32> to vector<2x8x40xf32>
    %132 = arith.divf %128, %131 : vector<2x8x40xf32>
    %133 = vector.extract_strided_slice %66 {offsets = [0, 0, 16], sizes = [2, 40, 8], strides = [1, 1, 1]} : vector<2x40x32xf32> to vector<2x40x8xf32>
    "tpu.trace_start"() <{level = 10 : i32, message = "ncs,nsv->ncv"}> : () -> ()
    %cst_74 = arith.constant dense<0.000000e+00> : vector<2x8x8xf32>
    %134 = tpu.matmul %132, %133, %cst_74 {dimension_numbers = #tpu.dot_dimension_numbers<[2], [1], [1], [2], [0, 0, 0, 1, 1, 2], [0], [0]>} : vector<2x8x40xf32>, vector<2x40x8xf32>, vector<2x8x8xf32> -> vector<2x8x8xf32>
    "tpu.trace_stop"() : () -> ()
    %135 = vector.extract_strided_slice %69 {offsets = [0, 0, 16], sizes = [2, 40, 8], strides = [1, 1, 1]} : vector<2x40x32xf32> to vector<2x40x8xf32>
    "tpu.trace_start"() <{level = 10 : i32, message = "ncs,nsv->ncv"}> : () -> ()
    %cst_75 = arith.constant dense<0.000000e+00> : vector<2x8x8xf32>
    %136 = tpu.matmul %132, %135, %cst_75 {dimension_numbers = #tpu.dot_dimension_numbers<[2], [1], [1], [2], [0, 0, 0, 1, 1, 2], [0], [0]>} : vector<2x8x40xf32>, vector<2x40x8xf32>, vector<2x8x8xf32> -> vector<2x8x8xf32>
    "tpu.trace_stop"() : () -> ()
    %137 = vector.extract_strided_slice %50 {offsets = [0, 0, 24], sizes = [2, 8, 8], strides = [1, 1, 1]} : vector<2x8x32xf32> to vector<2x8x8xf32>
    %138 = vector.extract_strided_slice %63 {offsets = [0, 0, 24], sizes = [2, 40, 8], strides = [1, 1, 1]} : vector<2x40x32xf32> to vector<2x40x8xf32>
    "tpu.trace_start"() <{level = 10 : i32, message = "ncq,nsq->ncs"}> : () -> ()
    %cst_76 = arith.constant dense<0.000000e+00> : vector<2x8x40xf32>
    %139 = tpu.matmul %137, %138, %cst_76 {dimension_numbers = #tpu.dot_dimension_numbers<[2], [2], [1], [1], [0, 0, 0, 1, 1, 1], [0], [0]>} : vector<2x8x8xf32>, vector<2x40x8xf32>, vector<2x8x40xf32> -> vector<2x8x40xf32>
    "tpu.trace_stop"() : () -> ()
    %cst_77 = arith.constant 0.353553385 : f32
    %140 = vector.broadcast %cst_77 : f32 to vector<2x8x40xf32>
    %141 = arith.mulf %139, %140 : vector<2x8x40xf32>
    %142 = vector.shape_cast %27 : vector<2x40xf32> to vector<2x1x40xf32>
    %143 = vector.broadcast %142 : vector<2x1x40xf32> to vector<2x8x40xf32>
    %144 = arith.addf %141, %143 : vector<2x8x40xf32>
    %cst_78 = arith.constant dense<0xFF800000> : vector<2x8xf32>
    %145 = vector.multi_reduction <maximumf>, %144, %cst_78 [2] : vector<2x8x40xf32> to vector<2x8xf32>
    %146 = vector.shape_cast %145 : vector<2x8xf32> to vector<2x8x1xf32>
    %147 = vector.broadcast %146 : vector<2x8x1xf32> to vector<2x8x40xf32>
    %148 = arith.subf %144, %147 : vector<2x8x40xf32>
    %149 = math.exp %148 : vector<2x8x40xf32>
    %cst_79 = arith.constant dense<0.000000e+00> : vector<2x8xf32>
    %150 = vector.multi_reduction <add>, %149, %cst_79 [2] : vector<2x8x40xf32> to vector<2x8xf32>
    %151 = vector.shape_cast %150 : vector<2x8xf32> to vector<2x8x1xf32>
    %152 = vector.broadcast %151 : vector<2x8x1xf32> to vector<2x8x40xf32>
    %153 = arith.divf %149, %152 : vector<2x8x40xf32>
    %154 = vector.extract_strided_slice %66 {offsets = [0, 0, 24], sizes = [2, 40, 8], strides = [1, 1, 1]} : vector<2x40x32xf32> to vector<2x40x8xf32>
    "tpu.trace_start"() <{level = 10 : i32, message = "ncs,nsv->ncv"}> : () -> ()
    %cst_80 = arith.constant dense<0.000000e+00> : vector<2x8x8xf32>
    %155 = tpu.matmul %153, %154, %cst_80 {dimension_numbers = #tpu.dot_dimension_numbers<[2], [1], [1], [2], [0, 0, 0, 1, 1, 2], [0], [0]>} : vector<2x8x40xf32>, vector<2x40x8xf32>, vector<2x8x8xf32> -> vector<2x8x8xf32>
    "tpu.trace_stop"() : () -> ()
    %156 = vector.extract_strided_slice %69 {offsets = [0, 0, 24], sizes = [2, 40, 8], strides = [1, 1, 1]} : vector<2x40x32xf32> to vector<2x40x8xf32>
    "tpu.trace_start"() <{level = 10 : i32, message = "ncs,nsv->ncv"}> : () -> ()
    %cst_81 = arith.constant dense<0.000000e+00> : vector<2x8x8xf32>
    %157 = tpu.matmul %153, %156, %cst_81 {dimension_numbers = #tpu.dot_dimension_numbers<[2], [1], [1], [2], [0, 0, 0, 1, 1, 2], [0], [0]>} : vector<2x8x40xf32>, vector<2x40x8xf32>, vector<2x8x8xf32> -> vector<2x8x8xf32>
    "tpu.trace_stop"() : () -> ()
    %158 = tpu.concatenate %91, %113, %134, %155, %93, %115, %136, %157, %94 in 2 : vector<2x8x8xf32>, vector<2x8x8xf32>, vector<2x8x8xf32>, vector<2x8x8xf32>, vector<2x8x8xf32>, vector<2x8x8xf32>, vector<2x8x8xf32>, vector<2x8x8xf32>, vector<2x8x24xf32> -> vector<2x8x88xf32>
    %159 = vector.shape_cast %158 : vector<2x8x88xf32> to vector<16x88xf32>
    %cst_82 = arith.constant dense<0.000000e+00> : vector<16x32xf32>
    %160 = tpu.matmul %159, %33, %cst_82 {dimension_numbers = #tpu.dot_dimension_numbers<[1], [0], [0], [1], [0, 0, 1, 1], [], []>} : vector<16x88xf32>, vector<88x32xf32>, vector<16x32xf32> -> vector<16x32xf32>
    %161 = vector.broadcast %35 : vector<1x32xf32> to vector<16x32xf32>
    %162 = arith.addf %160, %161 : vector<16x32xf32>
    %163 = tpu.concatenate %60, %60 in 2 : vector<2x8x32xf32>, vector<2x8x32xf32> -> vector<2x8x64xf32>
    %c0_83 = arith.constant 0 : index
    %c0_84 = arith.constant 0 : index
    %c0_85 = arith.constant 0 : index
    %c0_86 = arith.constant 0 : index
    %164 = vector.load %arg6[%c0_83, %c0_84, %c0_85, %c0_86] : memref<2x2x3x64xf32, #tpu.memory_space<vmem>>, vector<1x2x3x64xf32>
    %165 = vector.shape_cast %164 : vector<1x2x3x64xf32> to vector<2x3x64xf32>
    %166 = tpu.concatenate %165, %163 in 1 : vector<2x3x64xf32>, vector<2x8x64xf32> -> vector<2x11x64xf32>
    %cst_87 = arith.constant 0.000000e+00 : f32
    %167 = vector.broadcast %cst_87 : f32 to vector<2x3x64xf32>
    %168 = tpu.concatenate %167, %166 in 1 : vector<2x3x64xf32>, vector<2x11x64xf32> -> vector<2x14x64xf32>
    %cst_88 = arith.constant 0.000000e+00 : f32
    %169 = vector.broadcast %cst_88 : f32 to vector<2x8x64xf32>
    %170 = vector.extract_strided_slice %168 {offsets = [0, 0, 0], sizes = [2, 8, 64], strides = [1, 1, 1]} : vector<2x14x64xf32> to vector<2x8x64xf32>
    %171 = vector.extract_strided_slice %37 {offsets = [0, 0], sizes = [1, 64], strides = [1, 1]} : vector<7x64xf32> to vector<1x64xf32>
    %172 = vector.shape_cast %171 : vector<1x64xf32> to vector<1x1x64xf32>
    %173 = vector.broadcast %172 : vector<1x1x64xf32> to vector<2x8x64xf32>
    %174 = arith.mulf %170, %173 : vector<2x8x64xf32>
    %175 = arith.addf %169, %174 : vector<2x8x64xf32>
    %176 = vector.extract_strided_slice %168 {offsets = [0, 1, 0], sizes = [2, 8, 64], strides = [1, 1, 1]} : vector<2x14x64xf32> to vector<2x8x64xf32>
    %177 = vector.extract_strided_slice %37 {offsets = [1, 0], sizes = [1, 64], strides = [1, 1]} : vector<7x64xf32> to vector<1x64xf32>
    %178 = vector.shape_cast %177 : vector<1x64xf32> to vector<1x1x64xf32>
    %179 = vector.broadcast %178 : vector<1x1x64xf32> to vector<2x8x64xf32>
    %180 = arith.mulf %176, %179 : vector<2x8x64xf32>
    %181 = arith.addf %175, %180 : vector<2x8x64xf32>
    %182 = vector.extract_strided_slice %168 {offsets = [0, 2, 0], sizes = [2, 8, 64], strides = [1, 1, 1]} : vector<2x14x64xf32> to vector<2x8x64xf32>
    %183 = vector.extract_strided_slice %37 {offsets = [2, 0], sizes = [1, 64], strides = [1, 1]} : vector<7x64xf32> to vector<1x64xf32>
    %184 = vector.shape_cast %183 : vector<1x64xf32> to vector<1x1x64xf32>
    %185 = vector.broadcast %184 : vector<1x1x64xf32> to vector<2x8x64xf32>
    %186 = arith.mulf %182, %185 : vector<2x8x64xf32>
    %187 = arith.addf %181, %186 : vector<2x8x64xf32>
    %188 = vector.extract_strided_slice %168 {offsets = [0, 3, 0], sizes = [2, 8, 64], strides = [1, 1, 1]} : vector<2x14x64xf32> to vector<2x8x64xf32>
    %189 = vector.extract_strided_slice %37 {offsets = [3, 0], sizes = [1, 64], strides = [1, 1]} : vector<7x64xf32> to vector<1x64xf32>
    %190 = vector.shape_cast %189 : vector<1x64xf32> to vector<1x1x64xf32>
    %191 = vector.broadcast %190 : vector<1x1x64xf32> to vector<2x8x64xf32>
    %192 = arith.mulf %188, %191 : vector<2x8x64xf32>
    %193 = arith.addf %187, %192 : vector<2x8x64xf32>
    %194 = vector.extract_strided_slice %168 {offsets = [0, 4, 0], sizes = [2, 8, 64], strides = [1, 1, 1]} : vector<2x14x64xf32> to vector<2x8x64xf32>
    %195 = vector.extract_strided_slice %37 {offsets = [4, 0], sizes = [1, 64], strides = [1, 1]} : vector<7x64xf32> to vector<1x64xf32>
    %196 = vector.shape_cast %195 : vector<1x64xf32> to vector<1x1x64xf32>
    %197 = vector.broadcast %196 : vector<1x1x64xf32> to vector<2x8x64xf32>
    %198 = arith.mulf %194, %197 : vector<2x8x64xf32>
    %199 = arith.addf %193, %198 : vector<2x8x64xf32>
    %200 = vector.extract_strided_slice %168 {offsets = [0, 5, 0], sizes = [2, 8, 64], strides = [1, 1, 1]} : vector<2x14x64xf32> to vector<2x8x64xf32>
    %201 = vector.extract_strided_slice %37 {offsets = [5, 0], sizes = [1, 64], strides = [1, 1]} : vector<7x64xf32> to vector<1x64xf32>
    %202 = vector.shape_cast %201 : vector<1x64xf32> to vector<1x1x64xf32>
    %203 = vector.broadcast %202 : vector<1x1x64xf32> to vector<2x8x64xf32>
    %204 = arith.mulf %200, %203 : vector<2x8x64xf32>
    %205 = arith.addf %199, %204 : vector<2x8x64xf32>
    %206 = vector.extract_strided_slice %168 {offsets = [0, 6, 0], sizes = [2, 8, 64], strides = [1, 1, 1]} : vector<2x14x64xf32> to vector<2x8x64xf32>
    %207 = vector.extract_strided_slice %37 {offsets = [6, 0], sizes = [1, 64], strides = [1, 1]} : vector<7x64xf32> to vector<1x64xf32>
    %208 = vector.shape_cast %207 : vector<1x64xf32> to vector<1x1x64xf32>
    %209 = vector.broadcast %208 : vector<1x1x64xf32> to vector<2x8x64xf32>
    %210 = arith.mulf %206, %209 : vector<2x8x64xf32>
    %211 = arith.addf %205, %210 : vector<2x8x64xf32>
    %212 = vector.extract_strided_slice %211 {offsets = [0, 0, 0], sizes = [2, 8, 32], strides = [1, 1, 1]} : vector<2x8x64xf32> to vector<2x8x32xf32>
    %213 = vector.extract_strided_slice %211 {offsets = [0, 0, 32], sizes = [2, 8, 32], strides = [1, 1, 1]} : vector<2x8x64xf32> to vector<2x8x32xf32>
    %214 = arith.addf %212, %213 : vector<2x8x32xf32>
    %215 = vector.shape_cast %214 : vector<2x8x32xf32> to vector<16x32xf32>
    %216 = arith.addf %18, %162 : vector<16x32xf32>
    %217 = arith.addf %216, %215 : vector<16x32xf32>
    %cst_89 = arith.constant dense<0.000000e+00> : vector<16x64xf32>
    %218 = tpu.matmul %217, %39, %cst_89 {dimension_numbers = #tpu.dot_dimension_numbers<[1], [0], [0], [1], [0, 0, 1, 1], [], []>} : vector<16x32xf32>, vector<32x64xf32>, vector<16x64xf32> -> vector<16x64xf32>
    %219 = vector.broadcast %41 : vector<1x64xf32> to vector<16x64xf32>
    %220 = arith.addf %218, %219 : vector<16x64xf32>
    %221 = arith.mulf %220, %220 : vector<16x64xf32>
    %222 = arith.mulf %220, %221 : vector<16x64xf32>
    %cst_90 = arith.constant 4.471500e-02 : f32
    %223 = vector.broadcast %cst_90 : f32 to vector<16x64xf32>
    %224 = arith.mulf %223, %222 : vector<16x64xf32>
    %225 = arith.addf %220, %224 : vector<16x64xf32>
    %cst_91 = arith.constant 0.797884583 : f32
    %226 = vector.broadcast %cst_91 : f32 to vector<16x64xf32>
    %227 = arith.mulf %226, %225 : vector<16x64xf32>
    %228 = math.tanh %227 : vector<16x64xf32>
    %cst_92 = arith.constant 1.000000e+00 : f32
    %229 = vector.broadcast %cst_92 : f32 to vector<16x64xf32>
    %230 = arith.addf %229, %228 : vector<16x64xf32>
    %cst_93 = arith.constant 5.000000e-01 : f32
    %231 = vector.broadcast %cst_93 : f32 to vector<16x64xf32>
    %232 = arith.mulf %231, %230 : vector<16x64xf32>
    %233 = arith.mulf %220, %232 : vector<16x64xf32>
    %cst_94 = arith.constant dense<0.000000e+00> : vector<16x32xf32>
    %234 = tpu.matmul %233, %43, %cst_94 {dimension_numbers = #tpu.dot_dimension_numbers<[1], [0], [0], [1], [0, 0, 1, 1], [], []>} : vector<16x64xf32>, vector<64x32xf32>, vector<16x32xf32> -> vector<16x32xf32>
    %235 = arith.addf %217, %234 : vector<16x32xf32>
    %236 = vector.broadcast %45 : vector<1x32xf32> to vector<16x32xf32>
    %237 = arith.addf %235, %236 : vector<16x32xf32>
    %238 = vector.extract_strided_slice %63 {offsets = [0, 8, 0], sizes = [2, 32, 32], strides = [1, 1, 1]} : vector<2x40x32xf32> to vector<2x32x32xf32>
    %c0_95 = arith.constant 0 : index
    %c0_96 = arith.constant 0 : index
    %c0_97 = arith.constant 0 : index
    %c0_98 = arith.constant 0 : index
    %239 = vector.load %arg21[%c0_95, %c0_96, %c0_97, %c0_98] : memref<2x2x32x32xf32, #tpu.memory_space<vmem>>, vector<1x2x32x32xf32>
    %240 = vector.shape_cast %239 : vector<1x2x32x32xf32> to vector<2x32x32xf32>
    %241 = vector.shape_cast %238 : vector<2x32x32xf32> to vector<1x2x32x32xf32>
    tpu.vector_store %arg21[%c0_95, %c0_96, %c0_97, %c0_98], %241 {strides = array<i32>} : memref<2x2x32x32xf32, #tpu.memory_space<vmem>>, vector<1x2x32x32xf32>,
    %242 = vector.extract_strided_slice %72 {offsets = [0, 8, 0], sizes = [2, 32, 24], strides = [1, 1, 1]} : vector<2x40x24xf32> to vector<2x32x24xf32>
    %c0_99 = arith.constant 0 : index
    %c0_100 = arith.constant 0 : index
    %c0_101 = arith.constant 0 : index
    %c0_102 = arith.constant 0 : index
    %243 = vector.load %arg22[%c0_99, %c0_100, %c0_101, %c0_102] : memref<2x2x32x24xf32, #tpu.memory_space<vmem>>, vector<1x2x32x24xf32>
    %244 = vector.shape_cast %243 : vector<1x2x32x24xf32> to vector<2x32x24xf32>
    %245 = vector.shape_cast %242 : vector<2x32x24xf32> to vector<1x2x32x24xf32>
    tpu.vector_store %arg22[%c0_99, %c0_100, %c0_101, %c0_102], %245 {strides = array<i32>} : memref<2x2x32x24xf32, #tpu.memory_space<vmem>>, vector<1x2x32x24xf32>,
    %246 = vector.extract_strided_slice %66 {offsets = [0, 8, 0], sizes = [2, 32, 32], strides = [1, 1, 1]} : vector<2x40x32xf32> to vector<2x32x32xf32>
    %c0_103 = arith.constant 0 : index
    %c0_104 = arith.constant 0 : index
    %c0_105 = arith.constant 0 : index
    %c0_106 = arith.constant 0 : index
    %247 = vector.load %arg23[%c0_103, %c0_104, %c0_105, %c0_106] : memref<2x2x32x32xf32, #tpu.memory_space<vmem>>, vector<1x2x32x32xf32>
    %248 = vector.shape_cast %247 : vector<1x2x32x32xf32> to vector<2x32x32xf32>
    %249 = vector.shape_cast %246 : vector<2x32x32xf32> to vector<1x2x32x32xf32>
    tpu.vector_store %arg23[%c0_103, %c0_104, %c0_105, %c0_106], %249 {strides = array<i32>} : memref<2x2x32x32xf32, #tpu.memory_space<vmem>>, vector<1x2x32x32xf32>,
    %250 = vector.extract_strided_slice %69 {offsets = [0, 8, 0], sizes = [2, 32, 32], strides = [1, 1, 1]} : vector<2x40x32xf32> to vector<2x32x32xf32>
    %c0_107 = arith.constant 0 : index
    %c0_108 = arith.constant 0 : index
    %c0_109 = arith.constant 0 : index
    %c0_110 = arith.constant 0 : index
    %251 = vector.load %arg24[%c0_107, %c0_108, %c0_109, %c0_110] : memref<2x2x32x32xf32, #tpu.memory_space<vmem>>, vector<1x2x32x32xf32>
    %252 = vector.shape_cast %251 : vector<1x2x32x32xf32> to vector<2x32x32xf32>
    %253 = vector.shape_cast %250 : vector<2x32x32xf32> to vector<1x2x32x32xf32>
    tpu.vector_store %arg24[%c0_107, %c0_108, %c0_109, %c0_110], %253 {strides = array<i32>} : memref<2x2x32x32xf32, #tpu.memory_space<vmem>>, vector<1x2x32x32xf32>,
    %254 = vector.extract_strided_slice %166 {offsets = [0, 8, 0], sizes = [2, 3, 64], strides = [1, 1, 1]} : vector<2x11x64xf32> to vector<2x3x64xf32>
    %c0_111 = arith.constant 0 : index
    %c0_112 = arith.constant 0 : index
    %c0_113 = arith.constant 0 : index
    %c0_114 = arith.constant 0 : index
    %255 = vector.load %arg25[%c0_111, %c0_112, %c0_113, %c0_114] : memref<2x2x3x64xf32, #tpu.memory_space<vmem>>, vector<1x2x3x64xf32>
    %256 = vector.shape_cast %255 : vector<1x2x3x64xf32> to vector<2x3x64xf32>
    %257 = vector.shape_cast %254 : vector<2x3x64xf32> to vector<1x2x3x64xf32>
    tpu.vector_store %arg25[%c0_111, %c0_112, %c0_113, %c0_114], %257 {strides = array<i32>} : memref<2x2x3x64xf32, #tpu.memory_space<vmem>>, vector<1x2x3x64xf32>,
    %c1 = arith.constant 1 : index
    %c0_115 = arith.constant 0 : index
    %c0_116 = arith.constant 0 : index
    %258 = vector.load %arg9[%c1, %c0_115, %c0_116] : memref<2x32x152xf32, #tpu.memory_space<vmem>>, vector<1x32x152xf32>
    %259 = vector.shape_cast %258 : vector<1x32x152xf32> to vector<32x152xf32>
    %c1_117 = arith.constant 1 : index
    %c0_118 = arith.constant 0 : index
    %c0_119 = arith.constant 0 : index
    %260 = vector.load %arg10[%c1_117, %c0_118, %c0_119] : memref<2x1x152xf32, #tpu.memory_space<vmem>>, vector<1x1x152xf32>
    %261 = vector.shape_cast %260 : vector<1x1x152xf32> to vector<1x152xf32>
    %c1_120 = arith.constant 1 : index
    %c0_121 = arith.constant 0 : index
    %c0_122 = arith.constant 0 : index
    %262 = vector.load %arg11[%c1_120, %c0_121, %c0_122] : memref<2x88x32xf32, #tpu.memory_space<vmem>>, vector<1x88x32xf32>
    %263 = vector.shape_cast %262 : vector<1x88x32xf32> to vector<88x32xf32>
    %c1_123 = arith.constant 1 : index
    %c0_124 = arith.constant 0 : index
    %c0_125 = arith.constant 0 : index
    %264 = vector.load %arg12[%c1_123, %c0_124, %c0_125] : memref<2x1x32xf32, #tpu.memory_space<vmem>>, vector<1x1x32xf32>
    %265 = vector.shape_cast %264 : vector<1x1x32xf32> to vector<1x32xf32>
    %c1_126 = arith.constant 1 : index
    %c0_127 = arith.constant 0 : index
    %c0_128 = arith.constant 0 : index
    %266 = vector.load %arg13[%c1_126, %c0_127, %c0_128] : memref<2x7x64xf32, #tpu.memory_space<vmem>>, vector<1x7x64xf32>
    %267 = vector.shape_cast %266 : vector<1x7x64xf32> to vector<7x64xf32>
    %c1_129 = arith.constant 1 : index
    %c0_130 = arith.constant 0 : index
    %c0_131 = arith.constant 0 : index
    %268 = vector.load %arg14[%c1_129, %c0_130, %c0_131] : memref<2x32x64xf32, #tpu.memory_space<vmem>>, vector<1x32x64xf32>
    %269 = vector.shape_cast %268 : vector<1x32x64xf32> to vector<32x64xf32>
    %c1_132 = arith.constant 1 : index
    %c0_133 = arith.constant 0 : index
    %c0_134 = arith.constant 0 : index
    %270 = vector.load %arg15[%c1_132, %c0_133, %c0_134] : memref<2x1x64xf32, #tpu.memory_space<vmem>>, vector<1x1x64xf32>
    %271 = vector.shape_cast %270 : vector<1x1x64xf32> to vector<1x64xf32>
    %c1_135 = arith.constant 1 : index
    %c0_136 = arith.constant 0 : index
    %c0_137 = arith.constant 0 : index
    %272 = vector.load %arg16[%c1_135, %c0_136, %c0_137] : memref<2x64x32xf32, #tpu.memory_space<vmem>>, vector<1x64x32xf32>
    %273 = vector.shape_cast %272 : vector<1x64x32xf32> to vector<64x32xf32>
    %c1_138 = arith.constant 1 : index
    %c0_139 = arith.constant 0 : index
    %c0_140 = arith.constant 0 : index
    %274 = vector.load %arg17[%c1_138, %c0_139, %c0_140] : memref<2x1x32xf32, #tpu.memory_space<vmem>>, vector<1x1x32xf32>
    %275 = vector.shape_cast %274 : vector<1x1x32xf32> to vector<1x32xf32>
    %cst_141 = arith.constant dense<0.000000e+00> : vector<16x152xf32>
    %276 = tpu.matmul %237, %259, %cst_141 {dimension_numbers = #tpu.dot_dimension_numbers<[1], [0], [0], [1], [0, 0, 1, 1], [], []>} : vector<16x32xf32>, vector<32x152xf32>, vector<16x152xf32> -> vector<16x152xf32>
    %277 = vector.broadcast %261 : vector<1x152xf32> to vector<16x152xf32>
    %278 = arith.addf %276, %277 : vector<16x152xf32>
    %279 = vector.extract_strided_slice %278 {offsets = [0, 0], sizes = [16, 32], strides = [1, 1]} : vector<16x152xf32> to vector<16x32xf32>
    %280 = vector.shape_cast %279 : vector<16x32xf32> to vector<2x8x32xf32>
    %281 = vector.extract_strided_slice %278 {offsets = [0, 32], sizes = [16, 32], strides = [1, 1]} : vector<16x152xf32> to vector<16x32xf32>
    %282 = vector.shape_cast %281 : vector<16x32xf32> to vector<2x8x32xf32>
    %283 = vector.extract_strided_slice %278 {offsets = [0, 64], sizes = [16, 32], strides = [1, 1]} : vector<16x152xf32> to vector<16x32xf32>
    %284 = vector.shape_cast %283 : vector<16x32xf32> to vector<2x8x32xf32>
    %285 = vector.extract_strided_slice %278 {offsets = [0, 96], sizes = [16, 32], strides = [1, 1]} : vector<16x152xf32> to vector<16x32xf32>
    %286 = vector.shape_cast %285 : vector<16x32xf32> to vector<2x8x32xf32>
    %287 = vector.extract_strided_slice %278 {offsets = [0, 128], sizes = [16, 24], strides = [1, 1]} : vector<16x152xf32> to vector<16x24xf32>
    %288 = math.tanh %287 : vector<16x24xf32>
    %289 = vector.shape_cast %288 : vector<16x24xf32> to vector<2x8x24xf32>
    %290 = vector.shape_cast %237 : vector<16x32xf32> to vector<2x8x32xf32>
    %c1_142 = arith.constant 1 : index
    %c0_143 = arith.constant 0 : index
    %c0_144 = arith.constant 0 : index
    %c0_145 = arith.constant 0 : index
    %291 = vector.load %arg2[%c1_142, %c0_143, %c0_144, %c0_145] : memref<2x2x32x32xf32, #tpu.memory_space<vmem>>, vector<1x2x32x32xf32>
    %292 = vector.shape_cast %291 : vector<1x2x32x32xf32> to vector<2x32x32xf32>
    %293 = tpu.concatenate %292, %282 in 1 : vector<2x32x32xf32>, vector<2x8x32xf32> -> vector<2x40x32xf32>
    %c1_146 = arith.constant 1 : index
    %c0_147 = arith.constant 0 : index
    %c0_148 = arith.constant 0 : index
    %c0_149 = arith.constant 0 : index
    %294 = vector.load %arg4[%c1_146, %c0_147, %c0_148, %c0_149] : memref<2x2x32x32xf32, #tpu.memory_space<vmem>>, vector<1x2x32x32xf32>
    %295 = vector.shape_cast %294 : vector<1x2x32x32xf32> to vector<2x32x32xf32>
    %296 = tpu.concatenate %295, %284 in 1 : vector<2x32x32xf32>, vector<2x8x32xf32> -> vector<2x40x32xf32>
    %c1_150 = arith.constant 1 : index
    %c0_151 = arith.constant 0 : index
    %c0_152 = arith.constant 0 : index
    %c0_153 = arith.constant 0 : index
    %297 = vector.load %arg5[%c1_150, %c0_151, %c0_152, %c0_153] : memref<2x2x32x32xf32, #tpu.memory_space<vmem>>, vector<1x2x32x32xf32>
    %298 = vector.shape_cast %297 : vector<1x2x32x32xf32> to vector<2x32x32xf32>
    %299 = tpu.concatenate %298, %286 in 1 : vector<2x32x32xf32>, vector<2x8x32xf32> -> vector<2x40x32xf32>
    %c1_154 = arith.constant 1 : index
    %c0_155 = arith.constant 0 : index
    %c0_156 = arith.constant 0 : index
    %c0_157 = arith.constant 0 : index
    %300 = vector.load %arg3[%c1_154, %c0_155, %c0_156, %c0_157] : memref<2x2x32x24xf32, #tpu.memory_space<vmem>>, vector<1x2x32x24xf32>
    %301 = vector.shape_cast %300 : vector<1x2x32x24xf32> to vector<2x32x24xf32>
    %302 = tpu.concatenate %301, %289 in 1 : vector<2x32x24xf32>, vector<2x8x24xf32> -> vector<2x40x24xf32>
    %303 = vector.extract_strided_slice %280 {offsets = [0, 0, 0], sizes = [2, 8, 8], strides = [1, 1, 1]} : vector<2x8x32xf32> to vector<2x8x8xf32>
    %304 = vector.extract_strided_slice %293 {offsets = [0, 0, 0], sizes = [2, 40, 8], strides = [1, 1, 1]} : vector<2x40x32xf32> to vector<2x40x8xf32>
    "tpu.trace_start"() <{level = 10 : i32, message = "ncq,nsq->ncs"}> : () -> ()
    %cst_158 = arith.constant dense<0.000000e+00> : vector<2x8x40xf32>
    %305 = tpu.matmul %303, %304, %cst_158 {dimension_numbers = #tpu.dot_dimension_numbers<[2], [2], [1], [1], [0, 0, 0, 1, 1, 1], [0], [0]>} : vector<2x8x8xf32>, vector<2x40x8xf32>, vector<2x8x40xf32> -> vector<2x8x40xf32>
    "tpu.trace_stop"() : () -> ()
    %cst_159 = arith.constant 0.353553385 : f32
    %306 = vector.broadcast %cst_159 : f32 to vector<2x8x40xf32>
    %307 = arith.mulf %305, %306 : vector<2x8x40xf32>
    %308 = vector.shape_cast %27 : vector<2x40xf32> to vector<2x1x40xf32>
    %309 = vector.broadcast %308 : vector<2x1x40xf32> to vector<2x8x40xf32>
    %310 = arith.addf %307, %309 : vector<2x8x40xf32>
    %cst_160 = arith.constant dense<0xFF800000> : vector<2x8xf32>
    %311 = vector.multi_reduction <maximumf>, %310, %cst_160 [2] : vector<2x8x40xf32> to vector<2x8xf32>
    %312 = vector.shape_cast %311 : vector<2x8xf32> to vector<2x8x1xf32>
    %313 = vector.broadcast %312 : vector<2x8x1xf32> to vector<2x8x40xf32>
    %314 = arith.subf %310, %313 : vector<2x8x40xf32>
    %315 = math.exp %314 : vector<2x8x40xf32>
    %cst_161 = arith.constant dense<0.000000e+00> : vector<2x8xf32>
    %316 = vector.multi_reduction <add>, %315, %cst_161 [2] : vector<2x8x40xf32> to vector<2x8xf32>
    %317 = vector.shape_cast %316 : vector<2x8xf32> to vector<2x8x1xf32>
    %318 = vector.broadcast %317 : vector<2x8x1xf32> to vector<2x8x40xf32>
    %319 = arith.divf %315, %318 : vector<2x8x40xf32>
    %320 = vector.extract_strided_slice %296 {offsets = [0, 0, 0], sizes = [2, 40, 8], strides = [1, 1, 1]} : vector<2x40x32xf32> to vector<2x40x8xf32>
    "tpu.trace_start"() <{level = 10 : i32, message = "ncs,nsv->ncv"}> : () -> ()
    %cst_162 = arith.constant dense<0.000000e+00> : vector<2x8x8xf32>
    %321 = tpu.matmul %319, %320, %cst_162 {dimension_numbers = #tpu.dot_dimension_numbers<[2], [1], [1], [2], [0, 0, 0, 1, 1, 2], [0], [0]>} : vector<2x8x40xf32>, vector<2x40x8xf32>, vector<2x8x8xf32> -> vector<2x8x8xf32>
    "tpu.trace_stop"() : () -> ()
    %322 = vector.extract_strided_slice %299 {offsets = [0, 0, 0], sizes = [2, 40, 8], strides = [1, 1, 1]} : vector<2x40x32xf32> to vector<2x40x8xf32>
    "tpu.trace_start"() <{level = 10 : i32, message = "ncs,nsv->ncv"}> : () -> ()
    %cst_163 = arith.constant dense<0.000000e+00> : vector<2x8x8xf32>
    %323 = tpu.matmul %319, %322, %cst_163 {dimension_numbers = #tpu.dot_dimension_numbers<[2], [1], [1], [2], [0, 0, 0, 1, 1, 2], [0], [0]>} : vector<2x8x40xf32>, vector<2x40x8xf32>, vector<2x8x8xf32> -> vector<2x8x8xf32>
    %cst_164 = arith.constant dense<0.000000e+00> : vector<2x8x24xf32>
    %324 = tpu.matmul %319, %302, %cst_164 {dimension_numbers = #tpu.dot_dimension_numbers<[2], [1], [1], [2], [0, 0, 0, 1, 1, 2], [0], [0]>} : vector<2x8x40xf32>, vector<2x40x24xf32>, vector<2x8x24xf32> -> vector<2x8x24xf32>
    "tpu.trace_stop"() : () -> ()
    %325 = vector.extract_strided_slice %280 {offsets = [0, 0, 8], sizes = [2, 8, 8], strides = [1, 1, 1]} : vector<2x8x32xf32> to vector<2x8x8xf32>
    %326 = vector.extract_strided_slice %293 {offsets = [0, 0, 8], sizes = [2, 40, 8], strides = [1, 1, 1]} : vector<2x40x32xf32> to vector<2x40x8xf32>
    "tpu.trace_start"() <{level = 10 : i32, message = "ncq,nsq->ncs"}> : () -> ()
    %cst_165 = arith.constant dense<0.000000e+00> : vector<2x8x40xf32>
    %327 = tpu.matmul %325, %326, %cst_165 {dimension_numbers = #tpu.dot_dimension_numbers<[2], [2], [1], [1], [0, 0, 0, 1, 1, 1], [0], [0]>} : vector<2x8x8xf32>, vector<2x40x8xf32>, vector<2x8x40xf32> -> vector<2x8x40xf32>
    "tpu.trace_stop"() : () -> ()
    %cst_166 = arith.constant 0.353553385 : f32
    %328 = vector.broadcast %cst_166 : f32 to vector<2x8x40xf32>
    %329 = arith.mulf %327, %328 : vector<2x8x40xf32>
    %330 = vector.shape_cast %27 : vector<2x40xf32> to vector<2x1x40xf32>
    %331 = vector.broadcast %330 : vector<2x1x40xf32> to vector<2x8x40xf32>
    %332 = arith.addf %329, %331 : vector<2x8x40xf32>
    %cst_167 = arith.constant dense<0xFF800000> : vector<2x8xf32>
    %333 = vector.multi_reduction <maximumf>, %332, %cst_167 [2] : vector<2x8x40xf32> to vector<2x8xf32>
    %334 = vector.shape_cast %333 : vector<2x8xf32> to vector<2x8x1xf32>
    %335 = vector.broadcast %334 : vector<2x8x1xf32> to vector<2x8x40xf32>
    %336 = arith.subf %332, %335 : vector<2x8x40xf32>
    %337 = math.exp %336 : vector<2x8x40xf32>
    %cst_168 = arith.constant dense<0.000000e+00> : vector<2x8xf32>
    %338 = vector.multi_reduction <add>, %337, %cst_168 [2] : vector<2x8x40xf32> to vector<2x8xf32>
    %339 = vector.shape_cast %338 : vector<2x8xf32> to vector<2x8x1xf32>
    %340 = vector.broadcast %339 : vector<2x8x1xf32> to vector<2x8x40xf32>
    %341 = arith.divf %337, %340 : vector<2x8x40xf32>
    %342 = vector.extract_strided_slice %296 {offsets = [0, 0, 8], sizes = [2, 40, 8], strides = [1, 1, 1]} : vector<2x40x32xf32> to vector<2x40x8xf32>
    "tpu.trace_start"() <{level = 10 : i32, message = "ncs,nsv->ncv"}> : () -> ()
    %cst_169 = arith.constant dense<0.000000e+00> : vector<2x8x8xf32>
    %343 = tpu.matmul %341, %342, %cst_169 {dimension_numbers = #tpu.dot_dimension_numbers<[2], [1], [1], [2], [0, 0, 0, 1, 1, 2], [0], [0]>} : vector<2x8x40xf32>, vector<2x40x8xf32>, vector<2x8x8xf32> -> vector<2x8x8xf32>
    "tpu.trace_stop"() : () -> ()
    %344 = vector.extract_strided_slice %299 {offsets = [0, 0, 8], sizes = [2, 40, 8], strides = [1, 1, 1]} : vector<2x40x32xf32> to vector<2x40x8xf32>
    "tpu.trace_start"() <{level = 10 : i32, message = "ncs,nsv->ncv"}> : () -> ()
    %cst_170 = arith.constant dense<0.000000e+00> : vector<2x8x8xf32>
    %345 = tpu.matmul %341, %344, %cst_170 {dimension_numbers = #tpu.dot_dimension_numbers<[2], [1], [1], [2], [0, 0, 0, 1, 1, 2], [0], [0]>} : vector<2x8x40xf32>, vector<2x40x8xf32>, vector<2x8x8xf32> -> vector<2x8x8xf32>
    "tpu.trace_stop"() : () -> ()
    %346 = vector.extract_strided_slice %280 {offsets = [0, 0, 16], sizes = [2, 8, 8], strides = [1, 1, 1]} : vector<2x8x32xf32> to vector<2x8x8xf32>
    %347 = vector.extract_strided_slice %293 {offsets = [0, 0, 16], sizes = [2, 40, 8], strides = [1, 1, 1]} : vector<2x40x32xf32> to vector<2x40x8xf32>
    "tpu.trace_start"() <{level = 10 : i32, message = "ncq,nsq->ncs"}> : () -> ()
    %cst_171 = arith.constant dense<0.000000e+00> : vector<2x8x40xf32>
    %348 = tpu.matmul %346, %347, %cst_171 {dimension_numbers = #tpu.dot_dimension_numbers<[2], [2], [1], [1], [0, 0, 0, 1, 1, 1], [0], [0]>} : vector<2x8x8xf32>, vector<2x40x8xf32>, vector<2x8x40xf32> -> vector<2x8x40xf32>
    "tpu.trace_stop"() : () -> ()
    %cst_172 = arith.constant 0.353553385 : f32
    %349 = vector.broadcast %cst_172 : f32 to vector<2x8x40xf32>
    %350 = arith.mulf %348, %349 : vector<2x8x40xf32>
    %351 = vector.shape_cast %27 : vector<2x40xf32> to vector<2x1x40xf32>
    %352 = vector.broadcast %351 : vector<2x1x40xf32> to vector<2x8x40xf32>
    %353 = arith.addf %350, %352 : vector<2x8x40xf32>
    %cst_173 = arith.constant dense<0xFF800000> : vector<2x8xf32>
    %354 = vector.multi_reduction <maximumf>, %353, %cst_173 [2] : vector<2x8x40xf32> to vector<2x8xf32>
    %355 = vector.shape_cast %354 : vector<2x8xf32> to vector<2x8x1xf32>
    %356 = vector.broadcast %355 : vector<2x8x1xf32> to vector<2x8x40xf32>
    %357 = arith.subf %353, %356 : vector<2x8x40xf32>
    %358 = math.exp %357 : vector<2x8x40xf32>
    %cst_174 = arith.constant dense<0.000000e+00> : vector<2x8xf32>
    %359 = vector.multi_reduction <add>, %358, %cst_174 [2] : vector<2x8x40xf32> to vector<2x8xf32>
    %360 = vector.shape_cast %359 : vector<2x8xf32> to vector<2x8x1xf32>
    %361 = vector.broadcast %360 : vector<2x8x1xf32> to vector<2x8x40xf32>
    %362 = arith.divf %358, %361 : vector<2x8x40xf32>
    %363 = vector.extract_strided_slice %296 {offsets = [0, 0, 16], sizes = [2, 40, 8], strides = [1, 1, 1]} : vector<2x40x32xf32> to vector<2x40x8xf32>
    "tpu.trace_start"() <{level = 10 : i32, message = "ncs,nsv->ncv"}> : () -> ()
    %cst_175 = arith.constant dense<0.000000e+00> : vector<2x8x8xf32>
    %364 = tpu.matmul %362, %363, %cst_175 {dimension_numbers = #tpu.dot_dimension_numbers<[2], [1], [1], [2], [0, 0, 0, 1, 1, 2], [0], [0]>} : vector<2x8x40xf32>, vector<2x40x8xf32>, vector<2x8x8xf32> -> vector<2x8x8xf32>
    "tpu.trace_stop"() : () -> ()
    %365 = vector.extract_strided_slice %299 {offsets = [0, 0, 16], sizes = [2, 40, 8], strides = [1, 1, 1]} : vector<2x40x32xf32> to vector<2x40x8xf32>
    "tpu.trace_start"() <{level = 10 : i32, message = "ncs,nsv->ncv"}> : () -> ()
    %cst_176 = arith.constant dense<0.000000e+00> : vector<2x8x8xf32>
    %366 = tpu.matmul %362, %365, %cst_176 {dimension_numbers = #tpu.dot_dimension_numbers<[2], [1], [1], [2], [0, 0, 0, 1, 1, 2], [0], [0]>} : vector<2x8x40xf32>, vector<2x40x8xf32>, vector<2x8x8xf32> -> vector<2x8x8xf32>
    "tpu.trace_stop"() : () -> ()
    %367 = vector.extract_strided_slice %280 {offsets = [0, 0, 24], sizes = [2, 8, 8], strides = [1, 1, 1]} : vector<2x8x32xf32> to vector<2x8x8xf32>
    %368 = vector.extract_strided_slice %293 {offsets = [0, 0, 24], sizes = [2, 40, 8], strides = [1, 1, 1]} : vector<2x40x32xf32> to vector<2x40x8xf32>
    "tpu.trace_start"() <{level = 10 : i32, message = "ncq,nsq->ncs"}> : () -> ()
    %cst_177 = arith.constant dense<0.000000e+00> : vector<2x8x40xf32>
    %369 = tpu.matmul %367, %368, %cst_177 {dimension_numbers = #tpu.dot_dimension_numbers<[2], [2], [1], [1], [0, 0, 0, 1, 1, 1], [0], [0]>} : vector<2x8x8xf32>, vector<2x40x8xf32>, vector<2x8x40xf32> -> vector<2x8x40xf32>
    "tpu.trace_stop"() : () -> ()
    %cst_178 = arith.constant 0.353553385 : f32
    %370 = vector.broadcast %cst_178 : f32 to vector<2x8x40xf32>
    %371 = arith.mulf %369, %370 : vector<2x8x40xf32>
    %372 = vector.shape_cast %27 : vector<2x40xf32> to vector<2x1x40xf32>
    %373 = vector.broadcast %372 : vector<2x1x40xf32> to vector<2x8x40xf32>
    %374 = arith.addf %371, %373 : vector<2x8x40xf32>
    %cst_179 = arith.constant dense<0xFF800000> : vector<2x8xf32>
    %375 = vector.multi_reduction <maximumf>, %374, %cst_179 [2] : vector<2x8x40xf32> to vector<2x8xf32>
    %376 = vector.shape_cast %375 : vector<2x8xf32> to vector<2x8x1xf32>
    %377 = vector.broadcast %376 : vector<2x8x1xf32> to vector<2x8x40xf32>
    %378 = arith.subf %374, %377 : vector<2x8x40xf32>
    %379 = math.exp %378 : vector<2x8x40xf32>
    %cst_180 = arith.constant dense<0.000000e+00> : vector<2x8xf32>
    %380 = vector.multi_reduction <add>, %379, %cst_180 [2] : vector<2x8x40xf32> to vector<2x8xf32>
    %381 = vector.shape_cast %380 : vector<2x8xf32> to vector<2x8x1xf32>
    %382 = vector.broadcast %381 : vector<2x8x1xf32> to vector<2x8x40xf32>
    %383 = arith.divf %379, %382 : vector<2x8x40xf32>
    %384 = vector.extract_strided_slice %296 {offsets = [0, 0, 24], sizes = [2, 40, 8], strides = [1, 1, 1]} : vector<2x40x32xf32> to vector<2x40x8xf32>
    "tpu.trace_start"() <{level = 10 : i32, message = "ncs,nsv->ncv"}> : () -> ()
    %cst_181 = arith.constant dense<0.000000e+00> : vector<2x8x8xf32>
    %385 = tpu.matmul %383, %384, %cst_181 {dimension_numbers = #tpu.dot_dimension_numbers<[2], [1], [1], [2], [0, 0, 0, 1, 1, 2], [0], [0]>} : vector<2x8x40xf32>, vector<2x40x8xf32>, vector<2x8x8xf32> -> vector<2x8x8xf32>
    "tpu.trace_stop"() : () -> ()
    %386 = vector.extract_strided_slice %299 {offsets = [0, 0, 24], sizes = [2, 40, 8], strides = [1, 1, 1]} : vector<2x40x32xf32> to vector<2x40x8xf32>
    "tpu.trace_start"() <{level = 10 : i32, message = "ncs,nsv->ncv"}> : () -> ()
    %cst_182 = arith.constant dense<0.000000e+00> : vector<2x8x8xf32>
    %387 = tpu.matmul %383, %386, %cst_182 {dimension_numbers = #tpu.dot_dimension_numbers<[2], [1], [1], [2], [0, 0, 0, 1, 1, 2], [0], [0]>} : vector<2x8x40xf32>, vector<2x40x8xf32>, vector<2x8x8xf32> -> vector<2x8x8xf32>
    "tpu.trace_stop"() : () -> ()
    %388 = tpu.concatenate %321, %343, %364, %385, %323, %345, %366, %387, %324 in 2 : vector<2x8x8xf32>, vector<2x8x8xf32>, vector<2x8x8xf32>, vector<2x8x8xf32>, vector<2x8x8xf32>, vector<2x8x8xf32>, vector<2x8x8xf32>, vector<2x8x8xf32>, vector<2x8x24xf32> -> vector<2x8x88xf32>
    %389 = vector.shape_cast %388 : vector<2x8x88xf32> to vector<16x88xf32>
    %cst_183 = arith.constant dense<0.000000e+00> : vector<16x32xf32>
    %390 = tpu.matmul %389, %263, %cst_183 {dimension_numbers = #tpu.dot_dimension_numbers<[1], [0], [0], [1], [0, 0, 1, 1], [], []>} : vector<16x88xf32>, vector<88x32xf32>, vector<16x32xf32> -> vector<16x32xf32>
    %391 = vector.broadcast %265 : vector<1x32xf32> to vector<16x32xf32>
    %392 = arith.addf %390, %391 : vector<16x32xf32>
    %393 = tpu.concatenate %290, %290 in 2 : vector<2x8x32xf32>, vector<2x8x32xf32> -> vector<2x8x64xf32>
    %c1_184 = arith.constant 1 : index
    %c0_185 = arith.constant 0 : index
    %c0_186 = arith.constant 0 : index
    %c0_187 = arith.constant 0 : index
    %394 = vector.load %arg6[%c1_184, %c0_185, %c0_186, %c0_187] : memref<2x2x3x64xf32, #tpu.memory_space<vmem>>, vector<1x2x3x64xf32>
    %395 = vector.shape_cast %394 : vector<1x2x3x64xf32> to vector<2x3x64xf32>
    %396 = tpu.concatenate %395, %393 in 1 : vector<2x3x64xf32>, vector<2x8x64xf32> -> vector<2x11x64xf32>
    %cst_188 = arith.constant 0.000000e+00 : f32
    %397 = vector.broadcast %cst_188 : f32 to vector<2x3x64xf32>
    %398 = tpu.concatenate %397, %396 in 1 : vector<2x3x64xf32>, vector<2x11x64xf32> -> vector<2x14x64xf32>
    %cst_189 = arith.constant 0.000000e+00 : f32
    %399 = vector.broadcast %cst_189 : f32 to vector<2x8x64xf32>
    %400 = vector.extract_strided_slice %398 {offsets = [0, 0, 0], sizes = [2, 8, 64], strides = [1, 1, 1]} : vector<2x14x64xf32> to vector<2x8x64xf32>
    %401 = vector.extract_strided_slice %267 {offsets = [0, 0], sizes = [1, 64], strides = [1, 1]} : vector<7x64xf32> to vector<1x64xf32>
    %402 = vector.shape_cast %401 : vector<1x64xf32> to vector<1x1x64xf32>
    %403 = vector.broadcast %402 : vector<1x1x64xf32> to vector<2x8x64xf32>
    %404 = arith.mulf %400, %403 : vector<2x8x64xf32>
    %405 = arith.addf %399, %404 : vector<2x8x64xf32>
    %406 = vector.extract_strided_slice %398 {offsets = [0, 1, 0], sizes = [2, 8, 64], strides = [1, 1, 1]} : vector<2x14x64xf32> to vector<2x8x64xf32>
    %407 = vector.extract_strided_slice %267 {offsets = [1, 0], sizes = [1, 64], strides = [1, 1]} : vector<7x64xf32> to vector<1x64xf32>
    %408 = vector.shape_cast %407 : vector<1x64xf32> to vector<1x1x64xf32>
    %409 = vector.broadcast %408 : vector<1x1x64xf32> to vector<2x8x64xf32>
    %410 = arith.mulf %406, %409 : vector<2x8x64xf32>
    %411 = arith.addf %405, %410 : vector<2x8x64xf32>
    %412 = vector.extract_strided_slice %398 {offsets = [0, 2, 0], sizes = [2, 8, 64], strides = [1, 1, 1]} : vector<2x14x64xf32> to vector<2x8x64xf32>
    %413 = vector.extract_strided_slice %267 {offsets = [2, 0], sizes = [1, 64], strides = [1, 1]} : vector<7x64xf32> to vector<1x64xf32>
    %414 = vector.shape_cast %413 : vector<1x64xf32> to vector<1x1x64xf32>
    %415 = vector.broadcast %414 : vector<1x1x64xf32> to vector<2x8x64xf32>
    %416 = arith.mulf %412, %415 : vector<2x8x64xf32>
    %417 = arith.addf %411, %416 : vector<2x8x64xf32>
    %418 = vector.extract_strided_slice %398 {offsets = [0, 3, 0], sizes = [2, 8, 64], strides = [1, 1, 1]} : vector<2x14x64xf32> to vector<2x8x64xf32>
    %419 = vector.extract_strided_slice %267 {offsets = [3, 0], sizes = [1, 64], strides = [1, 1]} : vector<7x64xf32> to vector<1x64xf32>
    %420 = vector.shape_cast %419 : vector<1x64xf32> to vector<1x1x64xf32>
    %421 = vector.broadcast %420 : vector<1x1x64xf32> to vector<2x8x64xf32>
    %422 = arith.mulf %418, %421 : vector<2x8x64xf32>
    %423 = arith.addf %417, %422 : vector<2x8x64xf32>
    %424 = vector.extract_strided_slice %398 {offsets = [0, 4, 0], sizes = [2, 8, 64], strides = [1, 1, 1]} : vector<2x14x64xf32> to vector<2x8x64xf32>
    %425 = vector.extract_strided_slice %267 {offsets = [4, 0], sizes = [1, 64], strides = [1, 1]} : vector<7x64xf32> to vector<1x64xf32>
    %426 = vector.shape_cast %425 : vector<1x64xf32> to vector<1x1x64xf32>
    %427 = vector.broadcast %426 : vector<1x1x64xf32> to vector<2x8x64xf32>
    %428 = arith.mulf %424, %427 : vector<2x8x64xf32>
    %429 = arith.addf %423, %428 : vector<2x8x64xf32>
    %430 = vector.extract_strided_slice %398 {offsets = [0, 5, 0], sizes = [2, 8, 64], strides = [1, 1, 1]} : vector<2x14x64xf32> to vector<2x8x64xf32>
    %431 = vector.extract_strided_slice %267 {offsets = [5, 0], sizes = [1, 64], strides = [1, 1]} : vector<7x64xf32> to vector<1x64xf32>
    %432 = vector.shape_cast %431 : vector<1x64xf32> to vector<1x1x64xf32>
    %433 = vector.broadcast %432 : vector<1x1x64xf32> to vector<2x8x64xf32>
    %434 = arith.mulf %430, %433 : vector<2x8x64xf32>
    %435 = arith.addf %429, %434 : vector<2x8x64xf32>
    %436 = vector.extract_strided_slice %398 {offsets = [0, 6, 0], sizes = [2, 8, 64], strides = [1, 1, 1]} : vector<2x14x64xf32> to vector<2x8x64xf32>
    %437 = vector.extract_strided_slice %267 {offsets = [6, 0], sizes = [1, 64], strides = [1, 1]} : vector<7x64xf32> to vector<1x64xf32>
    %438 = vector.shape_cast %437 : vector<1x64xf32> to vector<1x1x64xf32>
    %439 = vector.broadcast %438 : vector<1x1x64xf32> to vector<2x8x64xf32>
    %440 = arith.mulf %436, %439 : vector<2x8x64xf32>
    %441 = arith.addf %435, %440 : vector<2x8x64xf32>
    %442 = vector.extract_strided_slice %441 {offsets = [0, 0, 0], sizes = [2, 8, 32], strides = [1, 1, 1]} : vector<2x8x64xf32> to vector<2x8x32xf32>
    %443 = vector.extract_strided_slice %441 {offsets = [0, 0, 32], sizes = [2, 8, 32], strides = [1, 1, 1]} : vector<2x8x64xf32> to vector<2x8x32xf32>
    %444 = arith.addf %442, %443 : vector<2x8x32xf32>
    %445 = vector.shape_cast %444 : vector<2x8x32xf32> to vector<16x32xf32>
    %446 = arith.addf %237, %392 : vector<16x32xf32>
    %447 = arith.addf %446, %445 : vector<16x32xf32>
    %cst_190 = arith.constant dense<0.000000e+00> : vector<16x64xf32>
    %448 = tpu.matmul %447, %269, %cst_190 {dimension_numbers = #tpu.dot_dimension_numbers<[1], [0], [0], [1], [0, 0, 1, 1], [], []>} : vector<16x32xf32>, vector<32x64xf32>, vector<16x64xf32> -> vector<16x64xf32>
    %449 = vector.broadcast %271 : vector<1x64xf32> to vector<16x64xf32>
    %450 = arith.addf %448, %449 : vector<16x64xf32>
    %451 = arith.mulf %450, %450 : vector<16x64xf32>
    %452 = arith.mulf %450, %451 : vector<16x64xf32>
    %cst_191 = arith.constant 4.471500e-02 : f32
    %453 = vector.broadcast %cst_191 : f32 to vector<16x64xf32>
    %454 = arith.mulf %453, %452 : vector<16x64xf32>
    %455 = arith.addf %450, %454 : vector<16x64xf32>
    %cst_192 = arith.constant 0.797884583 : f32
    %456 = vector.broadcast %cst_192 : f32 to vector<16x64xf32>
    %457 = arith.mulf %456, %455 : vector<16x64xf32>
    %458 = math.tanh %457 : vector<16x64xf32>
    %cst_193 = arith.constant 1.000000e+00 : f32
    %459 = vector.broadcast %cst_193 : f32 to vector<16x64xf32>
    %460 = arith.addf %459, %458 : vector<16x64xf32>
    %cst_194 = arith.constant 5.000000e-01 : f32
    %461 = vector.broadcast %cst_194 : f32 to vector<16x64xf32>
    %462 = arith.mulf %461, %460 : vector<16x64xf32>
    %463 = arith.mulf %450, %462 : vector<16x64xf32>
    %cst_195 = arith.constant dense<0.000000e+00> : vector<16x32xf32>
    %464 = tpu.matmul %463, %273, %cst_195 {dimension_numbers = #tpu.dot_dimension_numbers<[1], [0], [0], [1], [0, 0, 1, 1], [], []>} : vector<16x64xf32>, vector<64x32xf32>, vector<16x32xf32> -> vector<16x32xf32>
    %465 = arith.addf %447, %464 : vector<16x32xf32>
    %466 = vector.broadcast %275 : vector<1x32xf32> to vector<16x32xf32>
    %467 = arith.addf %465, %466 : vector<16x32xf32>
    %468 = vector.extract_strided_slice %293 {offsets = [0, 8, 0], sizes = [2, 32, 32], strides = [1, 1, 1]} : vector<2x40x32xf32> to vector<2x32x32xf32>
    %c1_196 = arith.constant 1 : index
    %c0_197 = arith.constant 0 : index
    %c0_198 = arith.constant 0 : index
    %c0_199 = arith.constant 0 : index
    %469 = vector.load %arg21[%c1_196, %c0_197, %c0_198, %c0_199] : memref<2x2x32x32xf32, #tpu.memory_space<vmem>>, vector<1x2x32x32xf32>
    %470 = vector.shape_cast %469 : vector<1x2x32x32xf32> to vector<2x32x32xf32>
    %471 = vector.shape_cast %468 : vector<2x32x32xf32> to vector<1x2x32x32xf32>
    tpu.vector_store %arg21[%c1_196, %c0_197, %c0_198, %c0_199], %471 {strides = array<i32>} : memref<2x2x32x32xf32, #tpu.memory_space<vmem>>, vector<1x2x32x32xf32>,
    %472 = vector.extract_strided_slice %302 {offsets = [0, 8, 0], sizes = [2, 32, 24], strides = [1, 1, 1]} : vector<2x40x24xf32> to vector<2x32x24xf32>
    %c1_200 = arith.constant 1 : index
    %c0_201 = arith.constant 0 : index
    %c0_202 = arith.constant 0 : index
    %c0_203 = arith.constant 0 : index
    %473 = vector.load %arg22[%c1_200, %c0_201, %c0_202, %c0_203] : memref<2x2x32x24xf32, #tpu.memory_space<vmem>>, vector<1x2x32x24xf32>
    %474 = vector.shape_cast %473 : vector<1x2x32x24xf32> to vector<2x32x24xf32>
    %475 = vector.shape_cast %472 : vector<2x32x24xf32> to vector<1x2x32x24xf32>
    tpu.vector_store %arg22[%c1_200, %c0_201, %c0_202, %c0_203], %475 {strides = array<i32>} : memref<2x2x32x24xf32, #tpu.memory_space<vmem>>, vector<1x2x32x24xf32>,
    %476 = vector.extract_strided_slice %296 {offsets = [0, 8, 0], sizes = [2, 32, 32], strides = [1, 1, 1]} : vector<2x40x32xf32> to vector<2x32x32xf32>
    %c1_204 = arith.constant 1 : index
    %c0_205 = arith.constant 0 : index
    %c0_206 = arith.constant 0 : index
    %c0_207 = arith.constant 0 : index
    %477 = vector.load %arg23[%c1_204, %c0_205, %c0_206, %c0_207] : memref<2x2x32x32xf32, #tpu.memory_space<vmem>>, vector<1x2x32x32xf32>
    %478 = vector.shape_cast %477 : vector<1x2x32x32xf32> to vector<2x32x32xf32>
    %479 = vector.shape_cast %476 : vector<2x32x32xf32> to vector<1x2x32x32xf32>
    tpu.vector_store %arg23[%c1_204, %c0_205, %c0_206, %c0_207], %479 {strides = array<i32>} : memref<2x2x32x32xf32, #tpu.memory_space<vmem>>, vector<1x2x32x32xf32>,
    %480 = vector.extract_strided_slice %299 {offsets = [0, 8, 0], sizes = [2, 32, 32], strides = [1, 1, 1]} : vector<2x40x32xf32> to vector<2x32x32xf32>
    %c1_208 = arith.constant 1 : index
    %c0_209 = arith.constant 0 : index
    %c0_210 = arith.constant 0 : index
    %c0_211 = arith.constant 0 : index
    %481 = vector.load %arg24[%c1_208, %c0_209, %c0_210, %c0_211] : memref<2x2x32x32xf32, #tpu.memory_space<vmem>>, vector<1x2x32x32xf32>
    %482 = vector.shape_cast %481 : vector<1x2x32x32xf32> to vector<2x32x32xf32>
    %483 = vector.shape_cast %480 : vector<2x32x32xf32> to vector<1x2x32x32xf32>
    tpu.vector_store %arg24[%c1_208, %c0_209, %c0_210, %c0_211], %483 {strides = array<i32>} : memref<2x2x32x32xf32, #tpu.memory_space<vmem>>, vector<1x2x32x32xf32>,
    %484 = vector.extract_strided_slice %396 {offsets = [0, 8, 0], sizes = [2, 3, 64], strides = [1, 1, 1]} : vector<2x11x64xf32> to vector<2x3x64xf32>
    %c1_212 = arith.constant 1 : index
    %c0_213 = arith.constant 0 : index
    %c0_214 = arith.constant 0 : index
    %c0_215 = arith.constant 0 : index
    %485 = vector.load %arg25[%c1_212, %c0_213, %c0_214, %c0_215] : memref<2x2x3x64xf32, #tpu.memory_space<vmem>>, vector<1x2x3x64xf32>
    %486 = vector.shape_cast %485 : vector<1x2x3x64xf32> to vector<2x3x64xf32>
    %487 = vector.shape_cast %484 : vector<2x3x64xf32> to vector<1x2x3x64xf32>
    tpu.vector_store %arg25[%c1_212, %c0_213, %c0_214, %c0_215], %487 {strides = array<i32>} : memref<2x2x3x64xf32, #tpu.memory_space<vmem>>, vector<1x2x3x64xf32>,
    %c0_216 = arith.constant 0 : index
    %c0_217 = arith.constant 0 : index
    %488 = vector.load %arg18[%c0_216, %c0_217] : memref<32x64xf32, #tpu.memory_space<vmem>>, vector<32x64xf32>
    %cst_218 = arith.constant dense<0.000000e+00> : vector<16x64xf32>
    %489 = tpu.matmul %467, %488, %cst_218 {dimension_numbers = #tpu.dot_dimension_numbers<[1], [0], [0], [1], [0, 0, 1, 1], [], []>} : vector<16x32xf32>, vector<32x64xf32>, vector<16x64xf32> -> vector<16x64xf32>
    %c0_219 = arith.constant 0 : index
    %c0_220 = arith.constant 0 : index
    %490 = vector.load %arg19[%c0_219, %c0_220] : memref<1x64xf32, #tpu.memory_space<vmem>>, vector<1x64xf32>
    %491 = vector.broadcast %490 : vector<1x64xf32> to vector<16x64xf32>
    %492 = arith.addf %489, %491 : vector<16x64xf32>
    %c0_221 = arith.constant 0 : index
    %c0_222 = arith.constant 0 : index
    %493 = vector.load %arg20[%c0_221, %c0_222] : memref<16x64xf32, #tpu.memory_space<vmem>>, vector<16x64xf32>
    tpu.vector_store %arg20[%c0_221, %c0_222], %492 {strides = array<i32>} : memref<16x64xf32, #tpu.memory_space<vmem>>, vector<16x64xf32>,
    return
  }
}

</mosaic_0001>

<bundles_post_ra>
// kernel: squeeze.18
= control target key start
LH: loop header
LB: loop body
LE: loop exit
PB: predicated region body
PF: predicated region fallthrough
CT: control target
= control target key end

     0   :  { %vm18_vm0 = vcmask 1042433   ;;  %vm23_vm1 = vcmask 1044483   ;;  %vm28_vm2 = vcmask 1046533   ;;  %vm32_vm3 = vcmask 1047559   ;;  %s79_s8 = smov 6  ;;  %s84_s9 = smov 24  ;;  %s477_s0 = inlined_call_operand.vmem [shape: f32[1,2,32,32], index: 0, kind: input, shape index: {}]   ;;  %s478_s1 = inlined_call_operand.vmem [shape: f32[2,1024], index: 1, kind: output, shape index: {}]  }
   0x1   :  { %v266_v0 = vld [vmem:[%s477_s0 + $0x2] sm:$0x1]   ;;  %v270_v1 = vld [vmem:[%s477_s0 + $0x27] sm:$0x80]   ;;  %v256_v2 = vld [vmem:[%s477_s0 + $0x3] sm:$0x1]  }
   0x2   :  { %v267_v3 = vld [vmem:[%s477_s0 + $0x3e] ss:$-28 sm:%s79_s8]   ;;  %s89_s18 = smov 96  ;;  %s16_s21 = smov 6  ;;  %v260_v7 = vld [vmem:[%s477_s0 + $0x28] sm:$0x80]  }
   0x3   :  { %v268_v4 = vld [vmem:[%s477_s0 + $0x7a] ss:$-28 sm:%s84_s9]   ;;  %v82_v5 = vsel %vm18_vm0, %v267_v3, %v266_v0  ;;  %s21_s22 = smov 24  ;;  %v257_v9 = vld [vmem:[%s477_s0 + $0x3f] ss:$-28 sm:%s16_s21]   ;;  %s26_s29 = smov 96 }
   0x4   :  { %v269_v6 = vld [vmem:[%s477_s0 + $0xb6] ss:$-28 sm:%s89_s18]   ;;  %v87_v8 = vsel %vm23_vm1, %v268_v4, %v82_v5  ;;  %v258_v10 = vld [vmem:[%s477_s0 + $0x7b] ss:$-28 sm:%s21_s22]   ;;  %v19_v12 = vsel %vm18_vm0, %v257_v9, %v256_v2  ;;  %s110_s5 = smov 6  ;;  %s115_s6 = smov 24 }
   0x5   :  { %v92_v11 = vsel %vm28_vm2, %v269_v6, %v87_v8  ;;  %v259_v13 = vld [vmem:[%s477_s0 + $0xb7] ss:$-28 sm:%s26_s29]   ;;  %v271_v14 = vld [vmem:[%s477_s0 + $0x12] sm:$0x1]   ;;  %v24_v16 = vsel %vm23_vm1, %v258_v10, %v19_v12  ;;  %s120_s11 = smov 96  ;;  %s47_s12 = smov 6 }
   0x6   :  { %v96_v15 = vsel %vm32_vm3, %v270_v1, %v92_v11  ;;  %v272_v17 = vld [vmem:[%s477_s0 + $0x4e] ss:$-28 sm:%s110_s5]   ;;  %s296_s13 = smov 64   ;;  %v29_v19 = vsel %vm28_vm2, %v259_v13, %v24_v16  ;;  %s52_s18 = smov 24  ;;  %v261_v25 = vld [vmem:[%s477_s0 + $0x13] sm:$0x1]  }
   0x7   :  { %v273_v18 = vld [vmem:[%s477_s0 + $0x8a] ss:$-28 sm:%s115_s6]   ;;  %97 = vrot.lane.b32.xlu1 %v96_v15, %s296_s13  ;;  %v113_v20 = vsel %vm18_vm0, %v272_v17, %v271_v14  ;;  %s57_s19 = smov 96  ;;  %v33_v23 = vsel %vm32_vm3, %v260_v7, %v29_v19  ;;  %v265_v27 = vld [vmem:[%s477_s0 + $0x38] sm:$0x80]   ;;  %s297_s26 = smov 96  }
   0x8   :  { %v274_v21 = vld [vmem:[%s477_s0 + $0xc6] ss:$-28 sm:%s120_s11]   ;;  %v118_v24 = vsel %vm23_vm1, %v273_v18, %v113_v20  ;;  %v262_v26 = vld [vmem:[%s477_s0 + $0x4f] ss:$-28 sm:%s47_s12]   ;;  %s173_s2 = smov 6  ;;  %s178_s7 = smov 24 }
   0x9   :  { %v275_v22 = vld [vmem:[%s477_s0 + $0x37] sm:$0x80]   ;;  %34 = vrot.lane.b32.xlu0 %v33_v23, %s297_s26  ;;  %v123_v28 = vsel %vm28_vm2, %v274_v21, %v118_v24  ;;  %v50_v29 = vsel %vm18_vm0, %v262_v26, %v261_v25  ;;  %v263_v30 = vld [vmem:[%s477_s0 + $0x8b] ss:$-28 sm:%s52_s18]   ;;  %s183_s8 = smov 96  ;;  %s147_s14 = smov 24 }
   0xa   :  { %v281_v31 = vld [vmem:[%s477_s0 + $0x11] sm:$0x1]   ;;  %v127_v32 = vsel %vm32_vm3, %v275_v22, %v123_v28  ;;  %v55_v33 = vsel %vm23_vm1, %v263_v30, %v50_v29  ;;  %v264_v34 = vld [vmem:[%s477_s0 + $0xc7] ss:$-28 sm:%s57_s19]   ;;  %v285_v39 = vld [vmem:[%s477_s0 + $0x36] sm:$0x80]  }
   0xb   :  { %v282_v35 = vld [vmem:[%s477_s0 + $0x4d] ss:$-28 sm:%s173_s2]   ;;  %128 = vrot.lane.b32.xlu1 %v127_v32, %s296_s13  ;;  %v60_v36 = vsel %vm28_vm2, %v264_v34, %v55_v33  ;;  %s142_s13 = smov 6  ;;  %s152_s19 = smov 96  ;;  %vm3_vm4 = vcmask 261120   ;;  %vm36_vm5 = vcmask 1048320  }
   0xc   :  { %v176_v37 = vsel %vm18_vm0, %v282_v35, %v281_v31  ;;  %v283_v38 = vld [vmem:[%s477_s0 + $0x89] ss:$-28 sm:%s178_s7]   ;;  %v64_v40 = vsel %vm32_vm3, %v265_v27, %v60_v36  ;;  %s298_s28 = smov 32   ;;  %v2_v52 = vld [vmem:[%s477_s0] ss:$4 sm:$0xff]   ;;  %vm99_vm6 = vcmask 785920  }
   0xd   :  { %v181_v41 = vsel %vm23_vm1, %v283_v38, %v176_v37  ;;  %v284_v42 = vld [vmem:[%s477_s0 + $0xc5] ss:$-28 sm:%s183_s8]   ;;  %65 = vrot.lane.b32.xlu0 %v64_v40, %s297_s26  ;;  %v255_v53 = vld [vmem:[%s477_s0 + $0x20] ss:$4 sm:$0xff]   ;;  %vm162_vm7 = vcmask 523520  }
   0xe   :  { %v276_v43 = vld [vmem:[%s477_s0 + $0x1] sm:$0x1]   ;;  %v186_v44 = vsel %vm28_vm2, %v284_v42, %v181_v41  ;;  %v280_v46 = vld [vmem:[%s477_s0 + $0x26] sm:$0x80]  }
   0xf   :  { %v277_v45 = vld [vmem:[%s477_s0 + $0x3d] ss:$-28 sm:%s142_s13]   ;;  %v190_v47 = vsel %vm32_vm3, %v285_v39, %v186_v44  ;;  %4 = vst.msk [vmem:[#allocation0] ss:$8 sm:$0xf] %vm3_vm4, %v2_v52  }
  0x10   :  { %v145_v48 = vsel %vm18_vm0, %v277_v45, %v276_v43  ;;  %v278_v49 = vld [vmem:[%s477_s0 + $0x79] ss:$-28 sm:%s147_s14]   ;;  %191 = vrot.lane.b32.xlu1 %v190_v47, %s298_s28  ;;  %10 = vst.msk [vmem:[#allocation0 + $0x1] ss:$8 sm:$0xf] %vm3_vm4, %v255_v53  }
  0x11   :  { %v279_v50 = vld [vmem:[%s477_s0 + $0xb5] ss:$-28 sm:%s152_s19]   ;;  %v150_v51 = vsel %vm23_vm1, %v278_v49, %v145_v48  ;;  %5 = vst.msk [vmem:[#allocation0] ss:$8 sm:$0xf0] %vm3_vm4, %v2_v52  }
  0x12   :  { %v155_v54 = vsel %vm28_vm2, %v279_v50, %v150_v51  ;;  %12 = vst.msk [vmem:[#allocation0 + $0x1] ss:$8 sm:$0xf0] %vm3_vm4, %v255_v53  }
  0x13   :  { %v159_v55 = vsel %vm32_vm3, %v280_v46, %v155_v54 }
  0x14   :  { %160 = vrot.lane.b32.xlu0 %v159_v55, %s298_s28 }
  0x79   :  { %v98_v56 = vpop.permute.xlu1 %97  }
  0x7b   :  { %v35_v57 = vpop.permute.xlu0 %34  }
  0x7c   :  { %37 = vst.msk [vmem:[#allocation0] sm:$0x3] %vm36_vm5, %v35_v57   ;;  %39 = vst.msk [vmem:[#allocation0 + $0x6] sm:$0xc] %vm36_vm5, %v35_v57  }
  0x7d   :  { %41 = vst.msk [vmem:[#allocation0 + $0xc] sm:$0x30] %vm36_vm5, %v35_v57   ;;  %43 = vst.msk [vmem:[#allocation0 + $0x12] sm:$0xc0] %vm36_vm5, %v35_v57   ;;  %v129_v58 = vpop.permute.xlu1 %128  }
  0x7e   :  { %100 = vst.msk [vmem:[#allocation0] sm:$0x3] %vm99_vm6, %v98_v56   ;;  %102 = vst.msk [vmem:[#allocation0 + $0x6] sm:$0xc] %vm99_vm6, %v98_v56  }
  0x7f   :  { %104 = vst.msk [vmem:[#allocation0 + $0xc] sm:$0x30] %vm99_vm6, %v98_v56   ;;  %106 = vst.msk [vmem:[#allocation0 + $0x12] sm:$0xc0] %vm99_vm6, %v98_v56   ;;  %v66_v59 = vpop.permute.xlu0 %65  }
  0x80   :  { %69 = vst.msk [vmem:[#allocation0 + $0x20] sm:$0x3] %vm36_vm5, %v66_v59   ;;  %71 = vst.msk [vmem:[#allocation0 + $0x26] sm:$0xc] %vm36_vm5, %v66_v59  }
  0x81   :  { %73 = vst.msk [vmem:[#allocation0 + $0x2c] sm:$0x30] %vm36_vm5, %v66_v59   ;;  %75 = vst.msk [vmem:[#allocation0 + $0x32] sm:$0xc0] %vm36_vm5, %v66_v59  }
  0x82   :  { %132 = vst.msk [vmem:[#allocation0 + $0x20] sm:$0x3] %vm99_vm6, %v129_v58   ;;  %134 = vst.msk [vmem:[#allocation0 + $0x26] sm:$0xc] %vm99_vm6, %v129_v58   ;;  %v192_v60 = vpop.permute.xlu1 %191  }
  0x83   :  { %136 = vst.msk [vmem:[#allocation0 + $0x2c] sm:$0x30] %vm99_vm6, %v129_v58   ;;  %138 = vst.msk [vmem:[#allocation0 + $0x32] sm:$0xc0] %vm99_vm6, %v129_v58  }
  0x84   :  { %195 = vst.msk [vmem:[#allocation0 + $0x20] sm:$0x3] %vm162_vm7, %v192_v60   ;;  %197 = vst.msk [vmem:[#allocation0 + $0x26] sm:$0xc] %vm162_vm7, %v192_v60  }
  0x85   :  { %199 = vst.msk [vmem:[#allocation0 + $0x2c] sm:$0x30] %vm162_vm7, %v192_v60   ;;  %201 = vst.msk [vmem:[#allocation0 + $0x32] sm:$0xc0] %vm162_vm7, %v192_v60  }
  0x86   :  { %v161_v61 = vpop.permute.xlu0 %160  }
  0x87   :  { %163 = vst.msk [vmem:[#allocation0] sm:$0x3] %vm162_vm7, %v161_v61   ;;  %165 = vst.msk [vmem:[#allocation0 + $0x6] sm:$0xc] %vm162_vm7, %v161_v61  }
  0x88   :  { %167 = vst.msk [vmem:[#allocation0 + $0xc] sm:$0x30] %vm162_vm7, %v161_v61   ;;  %169 = vst.msk [vmem:[#allocation0 + $0x12] sm:$0xc0] %vm162_vm7, %v161_v61  }
  0x8b   :  { %v226_v62 = vld [vmem:[#allocation0 + $0x20] sm:$0x3]  ;;  %v232_v63 = vld [vmem:[#allocation0 + $0x28] sm:$0x3] }
  0x8c   :  { %v238_v0 = vld [vmem:[#allocation0 + $0x30] sm:$0x3]  ;;  %289 = vst [vmem:[%s478_s1 + $0x8] sm:$0x3] %v226_v62  ;;  %290 = vst [vmem:[%s478_s1 + $0xa] sm:$0x3] %v232_v63 }
  0x8d   :  { %291 = vst [vmem:[%s478_s1 + $0xc] sm:$0x3] %v238_v0  ;;  %v244_v1 = vld [vmem:[#allocation0 + $0x38] sm:$0x3] }
  0x8e   :  { %292 = vst [vmem:[%s478_s1 + $0xe] sm:$0x3] %v244_v1  ;;  %v205_v2 = vld [vmem:[#allocation0] sm:$0x3]  ;;  %v209_v3 = vld [vmem:[#allocation0 + $0x8] sm:$0x3] }
  0x8f   :  { %v214_v4 = vld [vmem:[#allocation0 + $0x10] sm:$0x3]  ;;  %207 = vst [vmem:[%s478_s1] sm:$0x3] %v205_v2  ;;  %286 = vst [vmem:[%s478_s1 + $0x2] sm:$0x3] %v209_v3 }
  0x90   :  { %287 = vst [vmem:[%s478_s1 + $0x4] sm:$0x3] %v214_v4  ;;  %v220_v5 = vld [vmem:[#allocation0 + $0x18] sm:$0x3] }
  0x91   :  { %288 = vst [vmem:[%s478_s1 + $0x6] sm:$0x3] %v220_v5 }

// kernel: squeeze.19
= control target key start
LH: loop header
LB: loop body
LE: loop exit
PB: predicated region body
PF: predicated region fallthrough
CT: control target
= control target key end

     0   :  { %s15_s8 = smov 6  ;;  %vm17_vm0 = vcmask 1042433   ;;  %vm21_vm1 = vcmask 1043459   ;;  %s26_s15 = smov 6  ;;  %vm34_vm2 = vcmask 64512   ;;  %vm38_vm3 = vcmask 130048   ;;  %s667_s0 = inlined_call_operand.vmem [shape: f32[1,2,32,24], index: 0, kind: input, shape index: {}]   ;;  %s668_s1 = inlined_call_operand.vmem [shape: f32[2,768], index: 1, kind: output, shape index: {}]  }
   0x1   :  { %v352_v0 = vld [vmem:[%s667_s0 + $0x15] sm:$0x1]   ;;  %v354_v1 = vld [vmem:[%s667_s0 + $0x22] sm:$0x8]   ;;  %v364_v9 = vld [vmem:[%s667_s0 + $0x1f] sm:$0x1]  }
   0x2   :  { %v353_v2 = vld [vmem:[%s667_s0 + $0x65] ss:$-48 sm:%s15_s8]   ;;  %s86_s22 = smov 6  ;;  %v366_v10 = vld [vmem:[%s667_s0 + $0x2c] sm:$0x8]   ;;  %s50_s29 = smov 6 }
   0x3   :  { %v355_v3 = vld [vmem:[%s667_s0 + $0x5] sm:$0x1]   ;;  %v18_v4 = vsel %vm17_vm0, %v353_v2, %v352_v0  ;;  %v357_v6 = vld [vmem:[%s667_s0 + $0x32] sm:$0x8]   ;;  %v365_v12 = vld [vmem:[%s667_s0 + $0x6f] ss:$-48 sm:%s86_s22]  }
   0x4   :  { %v356_v5 = vld [vmem:[%s667_s0 + $0x35] ss:$-16 sm:%s26_s15]   ;;  %v22_v7 = vsel %vm21_vm1, %v354_v1, %v18_v4  ;;  %v358_v13 = vld [vmem:[%s667_s0 + $0x1a] sm:$0x1]   ;;  %v89_v15 = vsel %vm17_vm0, %v365_v12, %v364_v9  ;;  %v360_v17 = vld [vmem:[%s667_s0 + $0x27] sm:$0x8]  }
   0x5   :  { %v29_v8 = vsel %vm17_vm0, %v356_v5, %v355_v3  ;;  %v359_v16 = vld [vmem:[%s667_s0 + $0x6a] ss:$-48 sm:%s50_s29]   ;;  %s423_s7 = smov 120   ;;  %v93_v19 = vsel %vm21_vm1, %v366_v10, %v89_v15  ;;  %s61_s8 = smov 6  ;;  %v367_v22 = vld [vmem:[%s667_s0 + $0x4] sm:$0x1]  }
   0x6   :  { %v33_v11 = vsel %vm21_vm1, %v357_v6, %v29_v8  ;;  %v361_v18 = vld [vmem:[%s667_s0 + $0x1a] sm:$0x1]   ;;  %v53_v20 = vsel %vm17_vm0, %v359_v16, %v358_v13  ;;  %v363_v21 = vld [vmem:[%s667_s0 + $0x27] sm:$0x8]   ;;  %s424_s13 = smov 104   ;;  %s104_s16 = smov 6 }
   0x7   :  { %v35_v14 = vsel %vm34_vm2, %v33_v11, %v22_v7  ;;  %94 = vrot.lane.b32.xlu1 %v93_v19, %s424_s13  ;;  %v57_v23 = vsel %vm21_vm1, %v360_v17, %v53_v20  ;;  %v362_v24 = vld [vmem:[%s667_s0 + $0x6a] ss:$-48 sm:%s61_s8]   ;;  %v369_v25 = vld [vmem:[%s667_s0 + $0x31] sm:$0x8]   ;;  %s121_s23 = smov 6  ;;  %s139_s30 = smov 6 }
   0x8   :  { %36 = vrot.lane.b32.xlu0 %v35_v14, %s423_s7  ;;  %v64_v26 = vsel %vm17_vm0, %v362_v24, %v361_v18  ;;  %v368_v27 = vld [vmem:[%s667_s0 + $0x34] ss:$-16 sm:%s104_s16]   ;;  %v370_v28 = vld [vmem:[%s667_s0 + $0x19] sm:$0x1]   ;;  %s425_s6 = smov 112   ;;  %s426_s7 = smov 96  }
   0x9   :  { %v68_v29 = vsel %vm21_vm1, %v363_v21, %v64_v26  ;;  %v107_v30 = vsel %vm17_vm0, %v368_v27, %v367_v22  ;;  %v371_v31 = vld [vmem:[%s667_s0 + $0x69] ss:$-48 sm:%s121_s23]   ;;  %v373_v33 = vld [vmem:[%s667_s0 + $0x1e] sm:$0x1]   ;;  %v375_v37 = vld [vmem:[%s667_s0 + $0x2b] sm:$0x8]  }
   0xa   :  { %v372_v32 = vld [vmem:[%s667_s0 + $0x26] sm:$0x8]   ;;  %v70_v34 = vsel %vm38_vm3, %v68_v29, %v57_v23  ;;  %v111_v35 = vsel %vm21_vm1, %v369_v25, %v107_v30  ;;  %v124_v36 = vsel %vm17_vm0, %v371_v31, %v370_v28  ;;  %v376_v38 = vld [vmem:[%s667_s0 + $0x3] sm:$0x1]   ;;  %v374_v39 = vld [vmem:[%s667_s0 + $0x6e] ss:$-48 sm:%s139_s30]  }
   0xb   :  { %112 = vrot.lane.b32.xlu1 %v111_v35, %s426_s7  ;;  %s157_s10 = smov 6  ;;  %v128_v40 = vsel %vm21_vm1, %v372_v32, %v124_v36  ;;  %v142_v41 = vsel %vm17_vm0, %v374_v39, %v373_v33  ;;  %v379_v43 = vld [vmem:[%s667_s0 + $0x18] sm:$0x1]   ;;  %v378_v46 = vld [vmem:[%s667_s0 + $0x30] sm:$0x8]   ;;  %s174_s17 = smov 6 }
   0xc   :  { %71 = vrot.lane.b32.xlu0 %v70_v34, %s425_s6  ;;  %v377_v42 = vld [vmem:[%s667_s0 + $0x33] ss:$-16 sm:%s157_s10]   ;;  %v146_v44 = vsel %vm21_vm1, %v375_v37, %v142_v41  ;;  %v381_v47 = vld [vmem:[%s667_s0 + $0x25] sm:$0x8]   ;;  %s192_s24 = smov 6  ;;  %s427_s25 = smov 88  }
   0xd   :  { %v160_v45 = vsel %vm17_vm0, %v377_v42, %v376_v38  ;;  %v380_v48 = vld [vmem:[%s667_s0 + $0x68] ss:$-48 sm:%s174_s17]   ;;  %v382_v49 = vld [vmem:[%s667_s0 + $0x1d] sm:$0x1]   ;;  %s428_s26 = smov 80   ;;  %s210_s29 = smov 6 }
   0xe   :  { %v177_v50 = vsel %vm17_vm0, %v380_v48, %v379_v43  ;;  %v383_v51 = vld [vmem:[%s667_s0 + $0x6d] ss:$-48 sm:%s192_s24]   ;;  %v164_v52 = vsel %vm21_vm1, %v378_v46, %v160_v45  ;;  %v385_v55 = vld [vmem:[%s667_s0 + $0x2] sm:$0x1]   ;;  %v387_v59 = vld [vmem:[%s667_s0 + $0x2f] sm:$0x8]  }
   0xf   :  { %147 = vrot.lane.b32.xlu1 %v146_v44, %s428_s26  ;;  %v181_v53 = vsel %vm21_vm1, %v381_v47, %v177_v50  ;;  %v384_v54 = vld [vmem:[%s667_s0 + $0x2a] sm:$0x8]   ;;  %v386_v56 = vld [vmem:[%s667_s0 + $0x32] ss:$-16 sm:%s210_s29]   ;;  %v195_v57 = vsel %vm17_vm0, %v383_v51, %v382_v49  ;;  %s227_s11 = smov 6  ;;  %s245_s16 = smov 6 }
  0x10   :  { %129 = vrot.lane.b32.xlu0 %v128_v40, %s427_s25  ;;  %v213_v58 = vsel %vm17_vm0, %v386_v56, %v385_v55  ;;  %v388_v60 = vld [vmem:[%s667_s0 + $0x17] sm:$0x1]   ;;  %v391_v62 = vld [vmem:[%s667_s0 + $0x1c] sm:$0x1]   ;;  %s429_s17 = smov 72   ;;  %s430_s18 = smov 64   ;;  %v199_v0 = vsel %vm21_vm1, %v384_v54, %v195_v57 }
  0x11   :  { %v389_v61 = vld [vmem:[%s667_s0 + $0x67] ss:$-48 sm:%s227_s11]   ;;  %v392_v63 = vld [vmem:[%s667_s0 + $0x6c] ss:$-48 sm:%s245_s16]   ;;  %s263_s21 = smov 6  ;;  %v217_v1 = vsel %vm21_vm1, %v387_v59, %v213_v58  ;;  %s280_s28 = smov 6 }
  0x12   :  { %v390_v2 = vld [vmem:[%s667_s0 + $0x24] sm:$0x8]   ;;  %v230_v3 = vsel %vm17_vm0, %v389_v61, %v388_v60  ;;  %v248_v4 = vsel %vm17_vm0, %v392_v63, %v391_v62  ;;  %v393_v5 = vld [vmem:[%s667_s0 + $0x29] sm:$0x8]   ;;  %v395_v6 = vld [vmem:[%s667_s0 + $0x31] ss:$-16 sm:%s263_s21]  }
  0x13   :  { %182 = vrot.lane.b32.xlu1 %v181_v53, %s430_s18  ;;  %v394_v7 = vld [vmem:[%s667_s0 + $0x1] sm:$0x1]   ;;  %v397_v8 = vld [vmem:[%s667_s0 + $0x16] sm:$0x1]   ;;  %s431_s6 = smov 56   ;;  %s432_s7 = smov 48   ;;  %v234_v10 = vsel %vm21_vm1, %v390_v2, %v230_v3  ;;  %v252_v11 = vsel %vm21_vm1, %v393_v5, %v248_v4 }
  0x14   :  { %165 = vrot.lane.b32.xlu0 %v164_v52, %s429_s17  ;;  %v398_v9 = vld [vmem:[%s667_s0 + $0x66] ss:$-48 sm:%s280_s28]   ;;  %s298_s8 = smov 6  ;;  %vm6_vm4 = vcmask 1043458   ;;  %vm8_vm5 = vcmask 195584   ;;  %s2_s13 = smov 3  ;;  %v266_v14 = vsel %vm17_vm0, %v395_v6, %v394_v7 }
  0x15   :  { %v396_v12 = vld [vmem:[%s667_s0 + $0x2e] sm:$0x8]   ;;  %v399_v13 = vld [vmem:[%s667_s0 + $0x23] sm:$0x8]   ;;  %s4_s14 = smov 12  ;;  %v283_v15 = vsel %vm17_vm0, %v398_v9, %v397_v8  ;;  %s433_s23 = smov 40  }
  0x16   :  { %v3_v16 = vld [vmem:[%s667_s0] ss:$16 sm:%s2_s13]   ;;  %v400_v18 = vld [vmem:[%s667_s0 + $0x1b] sm:$0x1]   ;;  %s434_s24 = smov 32   ;;  %v270_v21 = vsel %vm21_vm1, %v396_v12, %v266_v14  ;;  %v287_v22 = vsel %vm21_vm1, %v399_v13, %v283_v15  ;;  %s436_s27 = smov 16  }
  0x17   :  { %218 = vrot.lane.b32.xlu1 %v217_v1, %s432_s7  ;;  %v5_v17 = vld [vmem:[%s667_s0] ss:$16 sm:%s4_s14]   ;;  %v402_v24 = vld [vmem:[%s667_s0 + $0x28] sm:$0x8]   ;;  %s437_s28 = smov 8   ;;  %vm43_vm6 = vcmask 1048512  }
  0x18   :  { %200 = vrot.lane.b32.xlu0 %v199_v0, %s431_s6  ;;  %v401_v19 = vld [vmem:[%s667_s0 + $0x6b] ss:$-48 sm:%s298_s8]   ;;  %v7_v20 = vsel %vm6_vm4, %v5_v17, %v3_v16  ;;  %s435_s0 = smov 24   ;;  %vm114_vm7 = vcmask 982784   ;;  %vm78_vm8 = vcmask 1048448   ;;  %vm96_vm9 = vcmask 1048384  }
  0x19   :  { %9 = vst.msk [vmem:[#allocation0] ss:$24 sm:$0x3] %vm8_vm5, %v7_v20   ;;  %11 = vst.msk [vmem:[#allocation0 - $0x2f] ss:$24 sm:$0xc] %vm8_vm5, %v7_v20   ;;  %v301_v23 = vsel %vm17_vm0, %v401_v19, %v400_v18 }
  0x1a   :  { %v305_v25 = vsel %vm21_vm1, %v402_v24, %v301_v23  ;;  %vm131_vm10 = vcmask 917184   ;;  %vm149_vm11 = vcmask 851584   ;;  %vm167_vm12 = vcmask 785984  }
  0x1b   :  { %253 = vrot.lane.b32.xlu1 %v252_v11, %s434_s24  ;;  %vm184_vm13 = vcmask 720384   ;;  %vm202_vm14 = vcmask 654784   ;;  %vm220_vm15 = vcmask 589184   ;;  %vm237_vm0 = vcmask 523584  }
  0x1c   :  { %235 = vrot.lane.b32.xlu0 %v234_v10, %s433_s23  ;;  %vm255_vm1 = vcmask 457984   ;;  %vm308_vm4 = vcmask 261184  }
  0x1f   :  { %288 = vrot.lane.b32.xlu1 %v287_v22, %s436_s27 }
  0x20   :  { %271 = vrot.lane.b32.xlu0 %v270_v21, %s435_s0 }
  0x24   :  { %306 = vrot.lane.b32.xlu0 %v305_v25, %s437_s28 }
  0x79   :  { %v95_v27 = vpop.permute.xlu1 %94  }
  0x7a   :  { %v37_v26 = vpop.permute.xlu0 %36  }
  0x7b   :  { %40 = vst.msk [vmem:[#allocation0 + $0x20] sm:$0x3] %vm38_vm3, %v37_v26   ;;  %42 = vst.msk [vmem:[#allocation0 + $0x6] sm:$0xc] %vm38_vm3, %v37_v26   ;;  %vm290_vm3 = vcmask 326784  }
  0x7c   :  { %44 = vst.msk [vmem:[#allocation0] sm:$0x3] %vm43_vm6, %v37_v26   ;;  %46 = vst.msk [vmem:[#allocation0 + $0x16] sm:$0xc] %vm43_vm6, %v37_v26  }
  0x7d   :  { %v113_v29 = vpop.permute.xlu1 %112  }
  0x7e   :  { %v72_v28 = vpop.permute.xlu0 %71   ;;  %115 = vst.msk [vmem:[#allocation0] sm:$0x3] %vm114_vm7, %v113_v29   ;;  %117 = vst.msk [vmem:[#allocation0 + $0x16] sm:$0xc] %vm114_vm7, %v113_v29  }
  0x7f   :  { %75 = vst.msk [vmem:[#allocation0 + $0x28] sm:$0x3] %vm34_vm2, %v72_v28   ;;  %77 = vst.msk [vmem:[#allocation0 + $0xe] sm:$0xc] %vm34_vm2, %v72_v28   ;;  %vm273_vm2 = vcmask 392384  }
  0x80   :  { %80 = vst.msk [vmem:[#allocation0 + $0x20] sm:$0x3] %vm78_vm8, %v72_v28   ;;  %82 = vst.msk [vmem:[#allocation0 + $0x6] sm:$0xc] %vm78_vm8, %v72_v28  }
  0x81   :  { %98 = vst.msk [vmem:[#allocation0 + $0x28] sm:$0x3] %vm96_vm9, %v95_v27   ;;  %100 = vst.msk [vmem:[#allocation0 + $0xe] sm:$0xc] %vm96_vm9, %v95_v27   ;;  %v148_v31 = vpop.permute.xlu1 %147  }
  0x82   :  { %v130_v30 = vpop.permute.xlu0 %129   ;;  %151 = vst.msk [vmem:[#allocation0 + $0x28] sm:$0x3] %vm149_vm11, %v148_v31   ;;  %153 = vst.msk [vmem:[#allocation0 + $0xe] sm:$0xc] %vm149_vm11, %v148_v31  }
  0x83   :  { %133 = vst.msk [vmem:[#allocation0 + $0x20] sm:$0x3] %vm131_vm10, %v130_v30   ;;  %135 = vst.msk [vmem:[#allocation0 + $0x6] sm:$0xc] %vm131_vm10, %v130_v30  }
  0x85   :  { %v183_v33 = vpop.permute.xlu1 %182  }
  0x86   :  { %v166_v32 = vpop.permute.xlu0 %165   ;;  %186 = vst.msk [vmem:[#allocation0 + $0x20] sm:$0x3] %vm184_vm13, %v183_v33   ;;  %188 = vst.msk [vmem:[#allocation0 + $0x6] sm:$0xc] %vm184_vm13, %v183_v33  }
  0x87   :  { %168 = vst.msk [vmem:[#allocation0] sm:$0x3] %vm167_vm12, %v166_v32   ;;  %170 = vst.msk [vmem:[#allocation0 + $0x16] sm:$0xc] %vm167_vm12, %v166_v32  }
  0x89   :  { %v219_v35 = vpop.permute.xlu1 %218  }
  0x8a   :  { %v201_v34 = vpop.permute.xlu0 %200   ;;  %221 = vst.msk [vmem:[#allocation0] sm:$0x3] %vm220_vm15, %v219_v35   ;;  %223 = vst.msk [vmem:[#allocation0 + $0x16] sm:$0xc] %vm220_vm15, %v219_v35  }
  0x8b   :  { %204 = vst.msk [vmem:[#allocation0 + $0x28] sm:$0x3] %vm202_vm14, %v201_v34   ;;  %206 = vst.msk [vmem:[#allocation0 + $0xe] sm:$0xc] %vm202_vm14, %v201_v34  }
  0x8d   :  { %v254_v37 = vpop.permute.xlu1 %253  }
  0x8e   :  { %v236_v36 = vpop.permute.xlu0 %235   ;;  %257 = vst.msk [vmem:[#allocation0 + $0x28] sm:$0x3] %vm255_vm1, %v254_v37   ;;  %259 = vst.msk [vmem:[#allocation0 + $0xe] sm:$0xc] %vm255_vm1, %v254_v37  }
  0x8f   :  { %239 = vst.msk [vmem:[#allocation0 + $0x20] sm:$0x3] %vm237_vm0, %v236_v36   ;;  %241 = vst.msk [vmem:[#allocation0 + $0x6] sm:$0xc] %vm237_vm0, %v236_v36  }
  0x91   :  { %v289_v39 = vpop.permute.xlu1 %288  }
  0x92   :  { %v272_v38 = vpop.permute.xlu0 %271   ;;  %292 = vst.msk [vmem:[#allocation0 + $0x20] sm:$0x3] %vm290_vm3, %v289_v39   ;;  %294 = vst.msk [vmem:[#allocation0 + $0x6] sm:$0xc] %vm290_vm3, %v289_v39  }
  0x93   :  { %274 = vst.msk [vmem:[#allocation0] sm:$0x3] %vm273_vm2, %v272_v38   ;;  %276 = vst.msk [vmem:[#allocation0 + $0x16] sm:$0xc] %vm273_vm2, %v272_v38  }
  0x96   :  { %v307_v40 = vpop.permute.xlu0 %306  }
  0x97   :  { %310 = vst.msk [vmem:[#allocation0 + $0x28] sm:$0x3] %vm308_vm4, %v307_v40   ;;  %312 = vst.msk [vmem:[#allocation0 + $0xe] sm:$0xc] %vm308_vm4, %v307_v40  }
  0x99   :  { %v320_v43 = vld [vmem:[#allocation0 + $0x8] sm:$0x3]  ;;  %v337_v44 = vld [vmem:[#allocation0 + $0x20] sm:$0x3] }
  0x9a   :  { %v316_v41 = vld [vmem:[#allocation0] sm:$0x3]  ;;  %v331_v42 = vld [vmem:[#allocation0 + $0x18] sm:$0x3]  ;;  %403 = vst [vmem:[%s668_s1 + $0x2] sm:$0x3] %v320_v43 }
  0x9b   :  { %318 = vst [vmem:[%s668_s1] sm:$0x3] %v316_v41  ;;  %405 = vst [vmem:[%s668_s1 + $0x6] sm:$0x3] %v331_v42 }
  0x9c   :  { %406 = vst [vmem:[%s668_s1 + $0x8] sm:$0x3] %v337_v44 }
  0x9e   :  { %v325_v45 = vld [vmem:[#allocation0 + $0x10] sm:$0x3]  ;;  %v343_v46 = vld [vmem:[#allocation0 + $0x28] sm:$0x3] }
  0x9f   :  { %404 = vst [vmem:[%s668_s1 + $0x4] sm:$0x3] %v325_v45  ;;  %407 = vst [vmem:[%s668_s1 + $0xa] sm:$0x3] %v343_v46 }

// kernel: onnx_encoder_forward.1
= control target key start
LH: loop header
LB: loop body
LE: loop exit
PB: predicated region body
PF: predicated region fallthrough
CT: control target
= control target key end

     0   :  { %s11643_s0 = inlined_call_operand.vmem [shape: f32[16,320], index: 0, kind: input, shape index: {}]   ;;  %s11644_s1 = inlined_call_operand.vmem [shape: s32[2,1], index: 1, kind: input, shape index: {}]   ;;  %s11645_s2 = inlined_call_operand.vmem [shape: f32[2,2,32,32], index: 2, kind: input, shape index: {}]   ;;  %s11646_s3 = inlined_call_operand.vmem [shape: f32[2,2,32,24], index: 3, kind: input, shape index: {}]   ;;  %s11647_s4 = inlined_call_operand.vmem [shape: f32[2,2,32,32], index: 4, kind: input, shape index: {}]   ;;  %s11648_s5 = inlined_call_operand.vmem [shape: f32[2,2,32,32], index: 5, kind: input, shape index: {}]   ;;  %s11649_s6 = inlined_call_operand.vmem [shape: f32[2,2,3,64], index: 6, kind: input, shape index: {}]   ;;  %s11650_s7 = inlined_call_operand.vmem [shape: f32[320,32], index: 7, kind: input, shape index: {}]   ;;  %s11651_s8 = inlined_call_operand.vmem [shape: f32[1,32], index: 8, kind: input, shape index: {}]   ;;  %s11652_s9 = inlined_call_operand.vmem [shape: f32[2,32,152], index: 9, kind: input, shape index: {}]   ;;  %s11653_s10 = inlined_call_operand.vmem [shape: f32[2,1,152], index: 10, kind: input, shape index: {}]   ;;  %s11654_s11 = inlined_call_operand.vmem [shape: f32[2,88,32], index: 11, kind: input, shape index: {}]   ;;  %s11655_s12 = inlined_call_operand.vmem [shape: f32[2,1,32], index: 12, kind: input, shape index: {}]   ;;  %s11656_s13 = inlined_call_operand.vmem [shape: f32[2,7,64], index: 13, kind: input, shape index: {}]   ;;  %s11657_s14 = inlined_call_operand.vmem [shape: f32[2,32,64], index: 14, kind: input, shape index: {}]   ;;  %s11658_s15 = inlined_call_operand.vmem [shape: f32[2,1,64], index: 15, kind: input, shape index: {}]   ;;  %s11659_s16 = inlined_call_operand.vmem [shape: f32[2,64,32], index: 16, kind: input, shape index: {}]   ;;  %s11660_s17 = inlined_call_operand.vmem [shape: f32[2,1,32], index: 17, kind: input, shape index: {}]   ;;  %s11661_s18 = inlined_call_operand.vmem [shape: f32[32,64], index: 18, kind: input, shape index: {}]   ;;  %s11662_s19 = inlined_call_operand.vmem [shape: f32[1,64], index: 19, kind: input, shape index: {}]   ;;  %s11663_s20 = inlined_call_operand.hbm [shape: f32[16,64], index: 20, kind: output, shape index: {0}]   ;;  %s11664_s21 = inlined_call_operand.vmem [shape: f32[2,2,32,32], index: 21, kind: output, shape index: {1}]   ;;  %s11665_s22 = inlined_call_operand.vmem [shape: f32[2,2,32,24], index: 22, kind: output, shape index: {2}]   ;;  %s11666_s23 = inlined_call_operand.vmem [shape: f32[2,2,32,32], index: 23, kind: output, shape index: {3}]   ;;  %s11667_s24 = inlined_call_operand.vmem [shape: f32[2,2,32,32], index: 24, kind: output, shape index: {4}]   ;;  %s11668_s25 = inlined_call_operand.vmem [shape: f32[2,2,3,64], index: 25, kind: output, shape index: {5}]  }
   0x1   :  { %11709 = sst [smem:[#allocation5_spill]] %s11643_s0 }
   0x2   :  { %11710 = sst [smem:[#allocation6_spill]] %s11644_s1 }
   0x3   :  { %11711 = sst [smem:[#allocation7_spill]] %s11645_s2 }
   0x4   :  { %11712 = sst [smem:[#allocation8_spill]] %s11646_s3 }
   0x5   :  { %11713 = sst [smem:[#allocation9_spill]] %s11647_s4 }
   0x6   :  { %11714 = sst [smem:[#allocation10_spill]] %s11648_s5 }
   0x7   :  { %11715 = sst [smem:[#allocation11_spill]] %s11649_s6 }
   0x8   :  { %11716 = sst [smem:[#allocation12_spill]] %s11650_s7 }
   0x9   :  { %11717 = sst [smem:[#allocation13_spill]] %s11651_s8 }
   0xa   :  { %11718 = sst [smem:[#allocation14_spill]] %s11652_s9 }
   0xb   :  { %11719 = sst [smem:[#allocation15_spill]] %s11655_s12 }
   0xc   :  { %11720 = sst [smem:[#allocation16_spill]] %s11657_s14 }
   0xd   :  { %11721 = sst [smem:[#allocation17_spill]] %s11661_s18 }
   0xe   :  { %11722 = sst [smem:[#allocation18_spill]] %s11662_s19 }
   0xf   :  { %11723 = sst [smem:[#allocation19_spill]] %s11663_s20 }
  0x10   :  { %s11724_s6 = sld [smem:[#allocation12_spill]]  ;;  %s11725_s28 = sld [smem:[#allocation5_spill]]  ;;  %vm125_vm0 = vcmask 523264  }
  0x16   :  { %v94_v0 = vld [vmem:[%s11724_s6 + $0x80] sm:$0xff]  ;;  %v95_v1 = vld [vmem:[%s11724_s6 + $0x88] sm:$0xff]  ;;  %v96_v5 = vld [vmem:[%s11724_s6 + $0x90] sm:$0xff] }
  0x17   :  { %v78_v2 = vld [vmem:[%s11724_s6] sm:$0xff]  ;;  %v8184_v3 = vpack.c.bf16 %v95_v1, %v94_v0  ;;  %v79_v4 = vld [vmem:[%s11724_s6 + $0x8] sm:$0xff]  ;;  %v97_v6 = vld [vmem:[%s11724_s6 + $0x98] sm:$0xff] }
  0x18   :  { %v8186_v7 = vpack.c.bf16 %v79_v4, %v78_v2  ;;  %v8188_v8 = vpack.c.bf16 %v97_v6, %v96_v5  ;;  %v80_v9 = vld [vmem:[%s11724_s6 + $0x10] sm:$0xff]  ;;  %v81_v10 = vld [vmem:[%s11724_s6 + $0x18] sm:$0xff]  ;;  %v98_v11 = vld [vmem:[%s11724_s6 + $0xa0] sm:$0xff] }
  0x19   :  { %8185 = vmatprep.subr.bf16.mxu0 %v8184_v3  ;;  %v99_v12 = vld [vmem:[%s11724_s6 + $0xa8] sm:$0xff]  ;;  %v8190_v13 = vpack.c.bf16 %v81_v10, %v80_v9  ;;  %v82_v15 = vld [vmem:[%s11724_s6 + $0x20] sm:$0xff]  ;;  %v100_v17 = vld [vmem:[%s11724_s6 + $0xb0] sm:$0xff] }
  0x1a   :  { %8187 = vmatpush3.bf16.msra.mxu0 %v8186_v7  ;;  %v8192_v14 = vpack.c.bf16 %v99_v12, %v98_v11  ;;  %v83_v16 = vld [vmem:[%s11724_s6 + $0x28] sm:$0xff]  ;;  %v101_v18 = vld [vmem:[%s11724_s6 + $0xb8] sm:$0xff]  ;;  %v110_v19 = vld [vmem:[%s11724_s6 + $0x100] sm:$0xff] }
  0x1b   :  { %8189 = vmatprep.subr.bf16.mxu0 %v8188_v8  ;;  %v111_v20 = vld [vmem:[%s11724_s6 + $0x108] sm:$0xff]  ;;  %v8194_v21 = vpack.c.bf16 %v83_v16, %v82_v15  ;;  %v112_v23 = vld [vmem:[%s11724_s6 + $0x110] sm:$0xff]  ;;  %v8196_v24 = vpack.c.bf16 %v101_v18, %v100_v17  ;;  %v85_v26 = vld [vmem:[%s11724_s6 + $0x38] sm:$0xff] }
  0x1c   :  { %v8216_v22 = vpack.c.bf16 %v111_v20, %v110_v19  ;;  %v84_v25 = vld [vmem:[%s11724_s6 + $0x30] sm:$0xff]  ;;  %v113_v27 = vld [vmem:[%s11724_s6 + $0x118] sm:$0xff]  ;;  %v102_v28 = vld [vmem:[%s11724_s6 + $0xc0] sm:$0xff] }
  0x1d   :  { %v103_v29 = vld [vmem:[%s11724_s6 + $0xc8] sm:$0xff]  ;;  %v8220_v30 = vpack.c.bf16 %v113_v27, %v112_v23  ;;  %v114_v31 = vld [vmem:[%s11724_s6 + $0x120] sm:$0xff]  ;;  %v8198_v33 = vpack.c.bf16 %v85_v26, %v84_v25  ;;  %v116_v39 = vld [vmem:[%s11724_s6 + $0x130] sm:$0xff] }
  0x1e   :  { %8191 = vmatpush3.bf16.msra.mxu0 %v8190_v13  ;;  %8217 = vmatprep.subr.bf16.mxu1 %v8216_v22  ;;  %v115_v32 = vld [vmem:[%s11724_s6 + $0x128] sm:$0xff]  ;;  %v86_v34 = vld [vmem:[%s11724_s6 + $0x40] sm:$0xff]  ;;  %v8200_v37 = vpack.c.bf16 %v103_v29, %v102_v28  ;;  %v117_v40 = vld [vmem:[%s11724_s6 + $0x138] sm:$0xff] }
  0x1f   :  { %8193 = vmatprep.subr.bf16.mxu0 %v8192_v14  ;;  %8219 = vmatpush3.bf16.msra.mxu1 %v8216_v22  ;;  %v8224_v35 = vpack.c.bf16 %v115_v32, %v114_v31  ;;  %v73_v36 = vld [vmem:[%s11725_s28 + $0x8] sm:$0xff]  ;;  %v104_v41 = vld [vmem:[%s11724_s6 + $0xd0] sm:$0xff]  ;;  %v105_v42 = vld [vmem:[%s11724_s6 + $0xd8] sm:$0xff] }
  0x20   :  { %8221 = vmatprep.subr.bf16.mxu1 %v8220_v30  ;;  %v87_v38 = vld [vmem:[%s11724_s6 + $0x48] sm:$0xff]  ;;  %196 = vmatprep.mubr.f32.mxu0 %v73_v36  ;;  %v74_v43 = vld [vmem:[%s11725_s28 + $0x10] sm:$0xff] }
  0x21   :  { %7384 = vmatprep.mubr.msk.f32.mxu1 %vm125_vm0, %v74_v43 }
  0x22   :  { %8195 = vmatpush3.bf16.msra.mxu0 %v8194_v21 }
  0x23   :  { %8197 = vmatprep.subr.bf16.mxu0 %v8196_v24  ;;  %8223 = vmatpush3.bf16.msra.mxu1 %v8220_v30 }
  0x24   :  { %31 = vsyncpa [#allocation3], 0  ;;  %v8202_v44 = vpack.c.bf16 %v87_v38, %v86_v34  ;;  %8225 = vmatprep.subr.bf16.mxu1 %v8224_v35  ;;  %v8228_v45 = vpack.c.bf16 %v117_v40, %v116_v39  ;;  %v8204_v46 = vpack.c.bf16 %v105_v42, %v104_v41  ;;  %v88_v47 = vld [vmem:[%s11724_s6 + $0x50] sm:$0xff]  ;;  %v89_v48 = vld [vmem:[%s11724_s6 + $0x58] sm:$0xff]  ;;  %s11726_s0 = sld [smem:[#allocation14_spill]]  ;;  %v9185_v14 = vmov 0.0  }
  0x25   :  { %v106_v49 = vld [vmem:[%s11724_s6 + $0xe0] sm:$0xff]  ;;  %v107_v50 = vld [vmem:[%s11724_s6 + $0xe8] sm:$0xff]  ;;  %v8206_v51 = vpack.c.bf16 %v89_v48, %v88_v47  ;;  %v108_v55 = vld [vmem:[%s11724_s6 + $0xf0] sm:$0xff]  ;;  %s11727_s30 = sld [smem:[#allocation13_spill]]  ;;  %vm356_vm1 = vcmask 261120   ;;  %s11728_s26 = sld [smem:[#allocation7_spill]] }
  0x26   :  { %8199 = vmatpush3.bf16.msra.mxu0 %v8198_v33  ;;  %v8208_v52 = vpack.c.bf16 %v107_v50, %v106_v49  ;;  %v90_v53 = vld [vmem:[%s11724_s6 + $0x60] sm:$0xff]  ;;  %v91_v54 = vld [vmem:[%s11724_s6 + $0x68] sm:$0xff]  ;;  %v109_v56 = vld [vmem:[%s11724_s6 + $0xf8] sm:$0xff]  ;;  %vm494_vm2 = vcmask 64512   ;;  %v9186_v49 = vmov 0.0|0.0   ;;  %vm9187_vm4 = vmmov 0  }
  0x27   :  { %8201 = vmatprep.subr.bf16.mxu0 %v8200_v37  ;;  %8227 = vmatpush3.bf16.msra.mxu1 %v8224_v35  ;;  %v77_v57 = vld [vmem:[%s11725_s28 + $0x28] sm:$0xff]  ;;  %v8210_v58 = vpack.c.bf16 %v91_v54, %v90_v53  ;;  %v8212_v59 = vpack.c.bf16 %v109_v56, %v108_v55  ;;  %v92_v60 = vld [vmem:[%s11724_s6 + $0x70] sm:$0xff]  ;;  %v93_v61 = vld [vmem:[%s11724_s6 + $0x78] sm:$0xff]  ;;  %s11731_s4 = sld [smem:[#allocation6_spill]]  ;;  %s11677_s9 = smov 96   ;;  %vm2918_vm5 = vcmask 195584  }
  0x28   :  { %8229 = vmatprep.subr.bf16.mxu1 %v8228_v45  ;;  %v8214_v62 = vpack.c.bf16 %v93_v61, %v92_v60  ;;  %v72_v63 = vld [vmem:[%s11725_s28] sm:$0xff]  ;;  %v75_v1 = vld [vmem:[%s11725_s28 + $0x18] sm:$0xff]  ;;  %vm9531_vm3 = vmpackc.low %vm494_vm2, %vm494_vm2  ;;  %v300_v60 = vlaneseq  ;;  %s11732_s27 = sld [smem:[#allocation9_spill]]  ;;  %vm704_vm7 = vcmask 326656   ;;  %s11679_s6 = smov 64   ;;  %vm2915_vm8 = vcmask 130048  }
  0x29   :  { %v76_v0 = vld [vmem:[%s11725_s28 + $0x20] sm:$0xff]  ;;  %s11681_s28 = smov 32   ;;  %s11683_s5 = smov 120   ;;  %vm2925_vm9 = vcmask 392192   ;;  %vm11699_vm10 = vcmask 457728   ;;  %vm11698_vm11 = vcmask 719872  }
  0x2a   :  { %8203 = vmatpush3.bf16.msra.mxu0 %v8202_v44  ;;  %v310_v2 = vld [vmem:[%s11726_s0 + $0x8] sm:$0xff]  ;;  %v312_v3 = vld [vmem:[%s11726_s0 + $0x18] sm:$0xff]  ;;  %v309_v5 = vld [vmem:[%s11726_s0] sm:$0xff]  ;;  %v9609_v61 = vshrl.u32 %v300_v60, 7  ;;  %s11734_s2 = sld [smem:[#allocation8_spill]]  ;;  %s11735_s3 = smov 120  }
  0x2b   :  { %8205 = vmatprep.subr.bf16.mxu0 %v8204_v46  ;;  %8231 = vmatpush3.bf16.msra.mxu1 %v8228_v45  ;;  %v8232_v4 = vpack.c.bf16 %v312_v3, %v310_v2  ;;  %v311_v6 = vld [vmem:[%s11726_s0 + $0x10] sm:$0xff]  ;;  %v314_v8 = vld [vmem:[%s11726_s0 + $0x28] sm:$0xff]  ;;  %v316_v9 = vld [vmem:[%s11726_s0 + $0x38] sm:$0xff]  ;;  %s11696_s8 = smov 112   ;;  %s11692_s29 = smov 8   ;;  %vm3037_vm12 = vcmask 1042432  }
  0x2c   :  { %v8234_v7 = vpack.c.bf16 %v311_v6, %v309_v5  ;;  %v8236_v10 = vpack.c.bf16 %v316_v9, %v314_v8  ;;  %v313_v11 = vld [vmem:[%s11726_s0 + $0x20] sm:$0xff]  ;;  %v315_v12 = vld [vmem:[%s11726_s0 + $0x30] sm:$0xff]  ;;  %v9519_v47 = vld [vmem:[%s11728_s26 + $0x8] sm:$0xff]  ;;  %s11686_s20 = smov 48   ;;  %vm3441_vm13 = vcmask 518144   ;;  %s11738_s1 = sld [smem:[#allocation11_spill]] }
  0x2d   :  { %8233 = vmatprep.subr.bf16.mxu1 %v8232_v4  ;;  %v8238_v13 = vpack.c.bf16 %v315_v12, %v313_v11  ;;  %v6680_v19 = vld [vmem:[%s11727_s30] ss:$0 sm:$0xff]  ;;  %3409 = vst.msk [vmem:[%s11664_s21] sm:$0xff] %vm356_vm1, %v9519_v47  ;;  %v9549_v53 = vld [vmem:[%s11728_s26 + $0x10] sm:$0xff]  ;;  %v9561_v55 = vld [vmem:[%s11728_s26 + $0x18] sm:$0xff]  ;;  %v9188_v4 = vmov 0  }
  0x2e   :  { %8207 = vmatpush3.bf16.msra.mxu0 %v8206_v51  ;;  %7385 = vmatmul.mubr.msk.f32.vlgmr.msra.gmra.mrb[0].mxu1 %vm125_vm0, %v77_v57  ;;  %v9514_v46 = vld [vmem:[%s11728_s26] sm:$0xff]  ;;  %3410 = vst.msk [vmem:[%s11664_s21 + $0x8] sm:$0xff] %vm356_vm1, %v9549_v53  ;;  %v9571_v56 = vld [vmem:[%s11728_s26 + $0x30] sm:$0xff]  ;;  %v9576_v57 = vld [vmem:[%s11728_s26 + $0x38] sm:$0xff]  ;;  %s11688_s30 = smov 40   ;;  %vm3074_vm14 = vcmask 1046528  }
  0x2f   :  { %8209 = vmatprep.subr.bf16.mxu0 %v8208_v52  ;;  %8235 = vmatpush1.bf16.msra.mxu1 %v8234_v7  ;;  %v9524_v48 = vld [vmem:[%s11728_s26 + $0x20] sm:$0xff]  ;;  %v8241_v50 = vpack.c.bf16 %v9519_v47, %v9514_v46  ;;  %v9544_v52 = vld [vmem:[%s11728_s26 + $0x28] sm:$0xff]  ;;  %3411 = vst.msk [vmem:[%s11664_s21 + $0x10] sm:$0xff] %vm356_vm1, %v9561_v55  ;;  %3414 = vst.msk [vmem:[%s11664_s21 + $0x28] sm:$0xff] %vm356_vm1, %v9571_v56  ;;  %vm3097_vm15 = vcmask 1045504   ;;  %s11741_s7 = smov 104  }
  0x30   :  { %8237 = vmatprep.subr.bf16.mxu1 %v8236_v10  ;;  %427 = vmatprep.mubr.f32.mxu1 %v9185_v14  ;;  %v8249_v54 = vpack.c.bf16 %v9544_v52, %v9524_v48  ;;  %3413 = vst.msk [vmem:[%s11664_s21 + $0x20] sm:$0xff] %vm356_vm1, %v9544_v52  ;;  %3415 = vst.msk [vmem:[%s11664_s21 + $0x30] sm:$0xff] %vm356_vm1, %v9576_v57  ;;  %v302_v2 = vld [vmem:[%s11731_s4] sm:$0x3]  ;;  %s11733_s4 = sld [smem:[#allocation10_spill]]  ;;  %s11743_s19 = smov 16  }
  0x31   :  { %8707 = vset.pattern.permute.xlu1 %v9188_v4  ;;  %9068 = vset.pattern.permute.xlu0 %v9188_v4 }
  0x32   :  { %8211 = vmatpush3.bf16.msra.mxu0 %v8210_v58  ;;  %v8245_v58 = vpack.c.bf16 %v9561_v55, %v9549_v53  ;;  %305 = vperm.xlu1 %8707, %v302_v2  }
  0x33   :  { %8213 = vmatprep.subr.bf16.mxu0 %v8212_v59  ;;  %8239 = vmatpush1.bf16.msra.mxu1 %v8238_v13  ;;  %v8253_v59 = vpack.c.bf16 %v9576_v57, %v9571_v56 }
  0x34   :  { %8240 = vmatprep.subr.bf16.mxu1 %v9186_v49 }
  0x36   :  { %8215 = vmatpush3.bf16.msra.mxu0 %v8214_v62  ;;  %v9616_v62 = vsub.s32 0, %v9609_v61 }
  0x37   :  { %8248 = vmatprep.subr.bf16.mxu0 %v9186_v49 }
  0x39   :  { %197 = vmatmul.mubr.f32.vlgmr.msra.gmra.mrb[0].mxu0 %v72_v63  ;;  %v317_v63 = vld [vmem:[%s11653_s10] sm:$0x3] }
  0x3a   :  { %201 = vmatprep.mubr.f32.mxu0 %v76_v0  ;;  %v9622_v0 = vsub.s32 1, %v9609_v61 }
  0x3c   :  { %v353_v3 = vrot.slane %v317_v63, %v9622_v0 }
  0x3d   :  { %202 = vmatmul.mubr.f32.gmra.mrb[2].mxu0 %v75_v1  ;;  %v349_v1 = vrot.slane %v317_v63, %v9616_v62  ;;  %v9742_v63 = vld [vmem:[%s11732_s27 + $0x8] sm:$0xff] }
  0x3e   :  { %7410 = vmatprep.mubr.msk.f32.mxu0 %vm9187_vm4, %v9185_v14  ;;  %3425 = vst.msk [vmem:[%s11666_s23] sm:$0xff] %vm356_vm1, %v9742_v63 }
  0x3f   :  { %8251 = vmatpush3.bf16.xpose.msk.msra.mxu0 %vm9531_vm3, %v8249_v54  ;;  %v9712_v54 = vld [vmem:[%s11732_s27 + $0x30] sm:$0xff] }
  0x40   :  { %8252 = vmatprep.subr.bf16.mxu0 %v9186_v49  ;;  %3430 = vst.msk [vmem:[%s11666_s23 + $0x28] sm:$0xff] %vm356_vm1, %v9712_v54 }
  0x47   :  { %8255 = vmatpush3.bf16.xpose.msk.msra.mxu0 %vm9531_vm3, %v8253_v59 }
  0x48   :  { %7408 = vmatprep.subr.mxu0 %v9185_v14 }
 0x101   :  { %v7386_v15 = vpop.f32.mrb[0].mxu1 }
 0x102   :  { %v273_v16 = vpop.f32.mrb[1].mxu1 }
 0x10c   :  { %v6976_v17 = vpop.f32.mrb[0].mxu0 }
 0x10d   :  { %v6977_v18 = vpop.f32.mrb[1].mxu0 }
 0x10e   :  { %v6978_v20 = vadd.f32 %v6977_v18, %v6976_v17  ;;  %v9682_v18 = vld [vmem:[%s11732_s27 + $0x20] sm:$0xff] }
 0x110   :  { %v6979_v21 = vpop.f32.mrb[2].mxu0  ;;  %v199_v22 = vadd.f32 %v6978_v20, %v6680_v19 }
 0x111   :  { %v6980_v23 = vpop.f32.mrb[3].mxu0 }
 0x112   :  { %v274_v24 = vadd.f32 %v273_v16, %v199_v22  ;;  %v6981_v25 = vadd.f32 %v6980_v23, %v6979_v21  ;;  %v301_v21 = vand.u32 127, %v300_v60  ;;  %v9190_v22 = vmov 1966171168   ;;  %v9737_v60 = vld [vmem:[%s11732_s27] sm:$0xff] }
 0x113   :  { %v671_v23 = vunpack.c.l.s4 %v9190_v22  ;;  %v9772_v22 = vld [vmem:[%s11732_s27 + $0x10] sm:$0xff] }
 0x114   :  { %v282_v26 = vmul.f32 %v274_v24, %v274_v24  ;;  %v204_v27 = vadd.f32 %v6981_v25, %v6680_v19  ;;  %v9687_v19 = vld [vmem:[%s11732_s27 + $0x28] sm:$0xff]  ;;  %v306_v25 = vpop.permute.xlu1 %305  ;;  %3426 = vst.msk [vmem:[%s11666_s23 + $0x8] sm:$0xff] %vm356_vm1, %v9772_v22 }
 0x115   :  { %v8263_v20 = vpack.c.bf16 %v9687_v19, %v9682_v18  ;;  %3429 = vst.msk [vmem:[%s11666_s23 + $0x20] sm:$0xff] %vm356_vm1, %v9687_v19 }
 0x116   :  { %v284_v28 = vmul.f32 %v282_v26, %v274_v24  ;;  %v279_v29 = vadd.f32 %v7386_v15, %v204_v27  ;;  %v672_v26 = vunpack.c.0.s8 %v671_v23  ;;  %v9777_v23 = vld [vmem:[%s11732_s27 + $0x18] sm:$0xff] }
 0x117   :  { %3427 = vst.msk [vmem:[%s11666_s23 + $0x10] sm:$0xff] %vm356_vm1, %v9777_v23 }
 0x118   :  { %v286_v30 = vmul.f32 0.044715, %v284_v28  ;;  %v283_v31 = vmul.f32 %v279_v29, %v279_v29  ;;  %v675_v27 = vsub.s32 %v672_v26, %v9609_v61  ;;  %v9803_v26 = vld [vmem:[%s11733_s4 + $0x8] sm:$0xff] }
 0x119   :  { %3433 = vst.msk [vmem:[%s11667_s24] sm:$0xff] %vm356_vm1, %v9803_v26 }
 0x11a   :  { %v288_v32 = vadd.f32 %v286_v30, %v274_v24  ;;  %v285_v33 = vmul.f32 %v283_v31, %v279_v29 }
 0x11c   :  { %v290_v34 = vmul.f32 0.7978846, %v288_v32  ;;  %v287_v35 = vmul.f32 0.044715, %v285_v33 }
 0x11e   :  { %9069 = vtanh.f32 %v290_v34  ;;  %v289_v36 = vadd.f32 %v287_v35, %v279_v29 }
 0x120   :  { %v291_v37 = vmul.f32 0.7978846, %v289_v36 }
 0x122   :  { %9071 = vtanh.f32 %v291_v37 }
 0x128   :  { %v9070_v38 = vpop.eup %9069 }
 0x129   :  { %v294_v39 = vadd.f32 1.0, %v9070_v38 }
 0x12b   :  { %v296_v40 = vmul.f32 0.5, %v294_v39 }
 0x12c   :  { %v9072_v41 = vpop.eup %9071 }
 0x12d   :  { %v9502_v42 = vmul.f32 %v296_v40, %v274_v24  ;;  %v295_v43 = vadd.f32 1.0, %v9072_v41  ;;  %v303_v24 = vsub.s32 31, %v301_v21 }
 0x12f   :  { %6683 = vmatmul.mubr.msk.f32.vlgmr.msra.gmra.mrb[2].mxu1 %vm356_vm1, %v9502_v42  ;;  %v297_v44 = vmul.f32 0.5, %v295_v43  ;;  %vm307_vm6 = vcmp.le.s32.totalorder %v306_v25, %v303_v24  ;;  %v8260_v24 = vpack.c.bf16 %v9777_v23, %v9772_v22  ;;  %v9796_v25 = vpack.i.bf16 %v9519_v47, %v9514_v46 }
 0x130   :  { %433 = vmatprep.mubr.f32.mxu1 %v9185_v14  ;;  %8243 = vmatpush3.bf16.xpose.msk.msra.mxu1 %vm9531_vm3, %v8241_v50  ;;  %v308_v28 = vsel %vm307_vm6, -1e+09, %v9185_v14  ;;  %v9820_v46 = vpack.i.bf16 %v9544_v52, %v9524_v48  ;;  %v9838_v48 = vpack.i.bf16 %v9576_v57, %v9571_v56  ;;  %v9865_v56 = vld [vmem:[%s11733_s4 + $0x30] sm:$0xff]  ;;  %v9870_v57 = vld [vmem:[%s11733_s4 + $0x38] sm:$0xff]  ;;  %vm3120_vm6 = vcmask 1044480  }
 0x131   :  { %v9507_v45 = vmul.f32 %v297_v44, %v279_v29  ;;  %8244 = vmatprep.subr.bf16.mxu1 %v9186_v49  ;;  %v676_v29 = vrot.slane %v308_v28, %v675_v27  ;;  %v9853_v28 = vld [vmem:[%s11733_s4 + $0x28] sm:$0xff]  ;;  %3438 = vst.msk [vmem:[%s11667_s24 + $0x28] sm:$0xff] %vm356_vm1, %v9865_v56  ;;  %3439 = vst.msk [vmem:[%s11667_s24 + $0x30] sm:$0xff] %vm356_vm1, %v9870_v57 }
 0x132   :  { %3437 = vst.msk [vmem:[%s11667_s24 + $0x20] sm:$0xff] %vm356_vm1, %v9853_v28 }
 0x133   :  { %6684 = vmatmul.mubr.msk.f32.gmra.mrb[4].mxu1 %vm356_vm1, %v9507_v45  ;;  %v677_v30 = vcombine.high %v676_v29, %v676_v29  ;;  %v684_v31 = vrot.slane %v676_v29, %v675_v27  ;;  %v487_v29 = vld [vmem:[%s11734_s2 + $0x8] sm:$0xff] }
 0x134   :  { %7397 = vmatprep.mubr.msk.f32.mxu1 %vm9187_vm4, %v9185_v14  ;;  %3417 = vst.msk [vmem:[%s11665_s22] sm:$0xff] %vm2918_vm5, %v487_v29 }
 0x135   :  { %v691_v32 = vrot.slane %v677_v30, %v675_v27  ;;  %v9700_v33 = vrot.slane %v684_v31, %v9616_v62  ;;  %v9809_v27 = vpack.i.bf16 %v9561_v55, %v9549_v53  ;;  %v9827_v53 = vld [vmem:[%s11733_s4 + $0x10] sm:$0xff]  ;;  %v9832_v55 = vld [vmem:[%s11733_s4 + $0x18] sm:$0xff] }
 0x136   :  { %3434 = vst.msk [vmem:[%s11667_s24 + $0x8] sm:$0xff] %vm356_vm1, %v9827_v53  ;;  %3435 = vst.msk [vmem:[%s11667_s24 + $0x10] sm:$0xff] %vm356_vm1, %v9832_v55  ;;  %v488_v30 = vld [vmem:[%s11734_s2 + $0x10] sm:$0xff]  ;;  %v489_v31 = vld [vmem:[%s11734_s2 + $0x18] sm:$0xff] }
 0x137   :  { %v9703_v37 = vrot.slane %v691_v32, %v9616_v62  ;;  %v8284_v32 = vpack.c.bf16 %v489_v31, %v488_v30  ;;  %3418 = vst.msk [vmem:[%s11665_s22 + $0x8] sm:$0xff] %vm2918_vm5, %v488_v30  ;;  %3419 = vst.msk [vmem:[%s11665_s22 + $0x10] sm:$0xff] %vm2918_vm5, %v489_v31 }
 0x138   :  { %8247 = vmatpush3.bf16.xpose.msk.msra.mxu1 %vm9531_vm3, %v8245_v58  ;;  %v9717_v58 = vld [vmem:[%s11732_s27 + $0x38] sm:$0xff] }
 0x139   :  { %7395 = vmatprep.subr.mxu1 %v9185_v14  ;;  %v8266_v59 = vpack.c.bf16 %v9717_v58, %v9712_v54  ;;  %3431 = vst.msk [vmem:[%s11666_s23 + $0x30] sm:$0xff] %vm356_vm1, %v9717_v58 }
 0x202   :  { %v429_v5 = vpop.f32.mrb[2].mxu1 }
 0x203   :  { %v9629_v6 = vadd.f32 %v429_v5, %v349_v1  ;;  %v431_v7 = vpop.f32.mrb[3].mxu1 }
 0x204   :  { %v432_v8 = vadd.f32 %v431_v7, %v353_v3 }
 0x205   :  { %452 = vrot.lane.b32.xlu0 %v9629_v6, %s11677_s9 }
 0x206   :  { %9073 = vtanh.f32 %v432_v8  ;;  %v435_v9 = vpop.f32.mrb[4].mxu1 }
 0x207   :  { %v9633_v10 = vadd.f32 %v435_v9, %v349_v1  ;;  %v437_v11 = vpop.f32.mrb[5].mxu1  ;;  %v8257_v1 = vpack.c.bf16 %v9742_v63, %v9737_v60 }
 0x208   :  { %v438_v12 = vadd.f32 %v437_v11, %v353_v3 }
 0x209   :  { %454 = vrot.lane.b32.xlu0 %v9633_v10, %s11677_s9 }
 0x20a   :  { %9075 = vtanh.f32 %v438_v12 }
 0x210   :  { %v9637_v13 = vpop.eup %9073 }
 0x211   :  { %3420 = vst.msk [vmem:[%s11665_s22 + $0x18] sm:$0xff] %vm2918_vm5, %v9637_v13 }
 0x214   :  { %v9644_v15 = vpop.eup %9075 }
 0x215   :  { %3424 = vst.msk [vmem:[%s11665_s22 + $0x38] sm:$0xff] %vm2918_vm5, %v9644_v15 }
 0x277   :  { %v9651_v16 = vpop.permute.xlu0 %452 }
 0x278   :  { %3412 = vst.msk [vmem:[%s11664_s21 + $0x18] sm:$0xff] %vm356_vm1, %v9651_v16  ;;  %7396 = vmatpush3.xpose.msk.msra.mxu1 %vm494_vm2, %v9651_v16 }
 0x279   :  { %8256 = vmatprep.subr.bf16.mxu1 %v9186_v49 }
 0x27b   :  { %7398 = vmatmul.mubr.msk.f32.vlgmr.msra.gmra.mrb[6].mxu1 %vm494_vm2, %v9629_v6  ;;  %v9663_v17 = vpop.permute.xlu0 %454 }
 0x27c   :  { %3416 = vst.msk [vmem:[%s11664_s21 + $0x38] sm:$0xff] %vm356_vm1, %v9663_v17  ;;  %7409 = vmatpush3.xpose.msk.msra.mxu0 %vm494_vm2, %v9663_v17  ;;  %7423 = vmatprep.mubr.msk.f32.mxu1 %vm9187_vm4, %v9185_v14 }
 0x27d   :  { %8262 = vmatprep.subr.bf16.mxu0 %v9186_v49  ;;  %8258 = vmatpush3.bf16.msra.mxu1 %v8257_v1 }
 0x27e   :  { %8259 = vmatprep.subr.bf16.mxu1 %v9186_v49 }
 0x27f   :  { %7411 = vmatmul.mubr.msk.f32.vlgmr.msra.gmra.mrb[4].mxu0 %vm494_vm2, %v9633_v10 }
 0x280   :  { %7436 = vmatprep.mubr.msk.f32.mxu0 %vm9187_vm4, %v9185_v14  ;;  %8264 = vmatpush3.bf16.msra.mxu0 %v8263_v20 }
 0x281   :  { %8265 = vmatprep.subr.bf16.mxu0 %v9186_v49  ;;  %8261 = vmatpush3.bf16.msra.mxu1 %v8260_v24 }
 0x282   :  { %7421 = vmatprep.subr.mxu1 %v9185_v14 }
 0x284   :  { %8267 = vmatpush3.bf16.msra.mxu0 %v8266_v59 }
 0x285   :  { %7434 = vmatprep.subr.mxu0 %v9185_v14 }
 0x34e   :  { %v577_v34 = vpop.f32.mrb[6].mxu1 }
 0x34f   :  { %v667_v35 = vmul.f32 0.35355338, %v577_v34  ;;  %v7399_v36 = vpop.f32.mrb[7].mxu1  ;;  %v491_v34 = vld [vmem:[%s11734_s2 + $0x28] sm:$0xff] }
 0x350   :  { %3421 = vst.msk [vmem:[%s11665_s22 + $0x20] sm:$0xff] %vm2918_vm5, %v491_v34  ;;  %v493_v36 = vld [vmem:[%s11734_s2 + $0x38] sm:$0xff] }
 0x351   :  { %v702_v38 = vadd.f32 %v9700_v33, %v667_v35  ;;  %v492_v35 = vld [vmem:[%s11734_s2 + $0x30] sm:$0xff]  ;;  %3423 = vst.msk [vmem:[%s11665_s22 + $0x30] sm:$0xff] %vm2918_vm5, %v493_v36 }
 0x352   :  { %v663_v39 = vpop.f32.mrb[4].mxu0  ;;  %3422 = vst.msk [vmem:[%s11665_s22 + $0x28] sm:$0xff] %vm2918_vm5, %v492_v35 }
 0x353   :  { %v668_v40 = vmul.f32 0.35355338, %v663_v39  ;;  %v7412_v41 = vpop.f32.mrb[5].mxu0  ;;  %v705_v43 = vsel %vm704_vm7, %v702_v38, -inf }
 0x354   :  { %706 = vmax.xlane.f32.xlu1 %v705_v43 }
 0x355   :  { %v703_v44 = vadd.f32 %v9703_v37, %v668_v40 }
 0x357   :  { %v708_v50 = vsel %vm704_vm7, %v703_v44, -inf }
 0x358   :  { %709 = vmax.xlane.f32.xlu0 %v708_v50  ;;  %v9948_v50 = vld [vmem:[%s11733_s4] sm:$0xff] }
 0x359   :  { %v8269_v1 = vpack.c.bf16 %v9803_v26, %v9948_v50 }
 0x365   :  { %468 = vrot.lane.b32.xlu1 %v9633_v10, %s11679_s6 }
 0x3e1   :  { %v707_v2 = vpop.xlane.xlu1 %706 }
 0x3e2   :  { %v711_v3 = vsub.f32 %v702_v38, %v707_v2  ;;  %v8290_v38 = vpack.c.bf16 %v493_v36, %v492_v35 }
 0x3e4   :  { %v713_v4 = vmul.f32 1.442695, %v711_v3  ;;  %v9966_v3 = vld [vmem:[%s11733_s4 + $0x20] sm:$0xff] }
 0x3e5   :  { %v9752_v5 = vpop.permute.xlu1 %468  ;;  %v710_v7 = vpop.xlane.xlu0 %709 }
 0x3e6   :  { %9077 = vpow2.f32 %v713_v4  ;;  %3432 = vst.msk [vmem:[%s11666_s23 + $0x38] sm:$0xff] %vm356_vm1, %v9752_v5  ;;  %v712_v8 = vsub.f32 %v703_v44, %v710_v7  ;;  %7435 = vmatpush3.msra.mxu0 %v9752_v5  ;;  %v8272_v7 = vpack.c.bf16 %v9832_v55, %v9827_v53 }
 0x3e7   :  { %8274 = vmatprep.subr.bf16.mxu0 %v9186_v49 }
 0x3e8   :  { %v715_v9 = vmul.f32 1.442695, %v712_v8  ;;  %v8275_v8 = vpack.c.bf16 %v9853_v28, %v9966_v3 }
 0x3ea   :  { %9079 = vpow2.f32 %v715_v9 }
 0x3f0   :  { %v9761_v11 = vpop.eup %9077 }
 0x3f1   :  { %v717_v12 = vsel %vm704_vm7, %v9761_v11, 0.0 }
 0x3f2   :  { %718 = vadd.xlane.f32.xlu0 %v717_v12  ;;  %v8278_v12 = vpack.c.bf16 %v9870_v57, %v9865_v56 }
 0x3f4   :  { %v9765_v20 = vpop.eup %9079 }
 0x3f5   :  { %v720_v21 = vsel %vm704_vm7, %v9765_v20, 0.0 }
 0x3f6   :  { %721 = vadd.xlane.f32.xlu1 %v720_v21 }
 0x407   :  { %480 = vrot.lane.b32.xlu1 %v9629_v6, %s11681_s28 }
 0x408   :  { %466 = vrot.lane.b32.xlu0 %v9629_v6, %s11679_s6  ;;  %s11736_s6 = smov 32  }
 0x40b   :  { %8709 = vrot.lane.b32.xlu1 %v9796_v25, %s11683_s5 }
 0x40c   :  { %482 = vrot.lane.b32.xlu0 %v9633_v10, %s11681_s28  ;;  %s11690_s28 = smov 16  }
 0x40f   :  { %8719 = vrot.lane.b32.xlu1 %v9809_v27, %s11683_s5 }
 0x410   :  { %8714 = vrot.lane.b32.xlu0 %v9820_v46, %s11683_s5 }
 0x413   :  { %1163 = vrot.lane.b32.xlu1 %v9651_v16, %s11683_s5 }
 0x414   :  { %8724 = vrot.lane.b32.xlu0 %v9838_v48, %s11683_s5 }
 0x417   :  { %1153 = vrot.lane.b32.xlu1 %v9629_v6, %s11683_s5 }
 0x418   :  { %1257 = vrot.lane.b32.xlu0 %v9663_v17, %s11683_s5  ;;  %s11694_s5 = smov 104  }
 0x41c   :  { %1247 = vrot.lane.b32.xlu0 %v9633_v10, %s11735_s3 }
 0x47f   :  { %v719_v39 = vpop.xlane.xlu0 %718 }
 0x480   :  { %9081 = vrcp.f32 %v719_v39 }
 0x483   :  { %v722_v40 = vpop.xlane.xlu1 %721  ;;  %v9932_v41 = vpop.permute.xlu0 %466 }
 0x484   :  { %9083 = vrcp.f32 %v722_v40  ;;  %3428 = vst.msk [vmem:[%s11666_s23 + $0x18] sm:$0xff] %vm356_vm1, %v9932_v41  ;;  %7422 = vmatpush3.msra.mxu1 %v9932_v41 }
 0x485   :  { %8268 = vmatprep.subr.bf16.mxu1 %v9186_v49 }
 0x487   :  { %v9941_v43 = vpop.permute.xlu1 %480  ;;  %v9943_v44 = vpop.permute.xlu0 %482 }
 0x488   :  { %3436 = vst.msk [vmem:[%s11667_s24 + $0x18] sm:$0xff] %vm356_vm1, %v9941_v43  ;;  %3440 = vst.msk [vmem:[%s11667_s24 + $0x38] sm:$0xff] %vm356_vm1, %v9943_v44 }
 0x48a   :  { %v9082_v59 = vpop.eup %9081 }
 0x48b   :  { %v724_v2 = vmul.f32 %v9082_v59, %v9761_v11  ;;  %v486_v11 = vld [vmem:[%s11734_s2] sm:$0xff] }
 0x48c   :  { %v8281_v21 = vpack.c.bf16 %v487_v29, %v486_v11  ;;  %v8710_v29 = vpop.permute.xlu1 %8709 }
 0x48d   :  { %7424 = vmatmul.mubr.msk.f32.vlgmr.msra.gmra.mrb[8].mxu1 %vm704_vm7, %v724_v2  ;;  %v8712_v30 = vunpack.i.h.bf16 %v8710_v29  ;;  %v8711_v31 = vunpack.i.l.bf16 %v8710_v29 }
 0x48e   :  { %v9084_v4 = vpop.eup %9083  ;;  %8270 = vmatpush3.bf16.msra.mxu1 %v8269_v1  ;;  %7449 = vmatprep.mubr.msk.f32.mxu1 %vm9187_vm4, %v9185_v14 }
 0x48f   :  { %8271 = vmatprep.subr.bf16.mxu1 %v9186_v49  ;;  %v726_v9 = vmul.f32 %v9084_v4, %v9765_v20  ;;  %v490_v20 = vld [vmem:[%s11734_s2 + $0x20] sm:$0xff] }
 0x490   :  { %v8287_v24 = vpack.c.bf16 %v491_v34, %v490_v20  ;;  %v8715_v34 = vpop.permute.xlu0 %8714 }
 0x491   :  { %7437 = vmatmul.mubr.msk.f32.vlgmr.msra.gmra.mrb[6].mxu0 %vm704_vm7, %v726_v9  ;;  %v8717_v35 = vunpack.i.h.bf16 %v8715_v34  ;;  %v8716_v36 = vunpack.i.l.bf16 %v8715_v34 }
 0x492   :  { %8273 = vmatpush3.bf16.msra.mxu1 %v8272_v7  ;;  %8276 = vmatpush3.bf16.msra.mxu0 %v8275_v8 }
 0x493   :  { %7447 = vmatprep.subr.mxu1 %v9185_v14  ;;  %8277 = vmatprep.subr.bf16.mxu0 %v9186_v49 }
 0x494   :  { %7462 = vmatprep.mubr.msk.f32.mxu0 %vm9187_vm4, %v9185_v14  ;;  %v8725_v59 = vpop.permute.xlu0 %8724 }
 0x496   :  { %7448 = vmatpush3.msra.mxu1 %v9941_v43  ;;  %8279 = vmatpush3.bf16.msra.mxu0 %v8278_v12 }
 0x497   :  { %7450 = vmatmul.mubr.msk.f32.vlgmr.msra.gmra.mrb[10].mxu1 %vm704_vm7, %v724_v2  ;;  %8280 = vmatprep.subr.bf16.mxu1 %v9186_v49 }
 0x498   :  { %8282 = vmatpush3.bf16.msra.mxu1 %v8281_v21  ;;  %7460 = vmatprep.subr.mxu0 %v9185_v14  ;;  %v1258_v8 = vpop.permute.xlu0 %1257 }
 0x499   :  { %8283 = vmatprep.subr.bf16.mxu1 %v9186_v49  ;;  %7475 = vmatprep.mubr.msk.f32.mxu1 %vm9187_vm4, %v9185_v14 }
 0x49a   :  { %7461 = vmatpush3.msra.mxu0 %v9943_v44 }
 0x49b   :  { %7463 = vmatmul.mubr.msk.f32.vlgmr.msra.gmra.mrb[8].mxu0 %vm704_vm7, %v726_v9  ;;  %8286 = vmatprep.subr.bf16.mxu0 %v9186_v49 }
 0x49c   :  { %8285 = vmatpush3.bf16.msra.mxu1 %v8284_v32  ;;  %8288 = vmatpush3.bf16.msra.mxu0 %v8287_v24  ;;  %v8293_v32 = vpack.c.bf16 %v8712_v30, %v8711_v31  ;;  %v1248_v11 = vpop.permute.xlu0 %1247 }
 0x49d   :  { %7473 = vmatprep.subr.mxu1 %v9185_v14  ;;  %8289 = vmatprep.subr.bf16.mxu0 %v9186_v49 }
 0x49e   :  { %7488 = vmatprep.mubr.msk.f32.mxu0 %vm9187_vm4, %v9185_v14 }
 0x4a0   :  { %7474 = vmatpush3.msra.mxu1 %v9637_v13  ;;  %8291 = vmatpush3.bf16.msra.mxu0 %v8290_v38  ;;  %v8720_v13 = vpop.permute.xlu1 %8719  ;;  %v8301_v38 = vpack.c.bf16 %v8717_v35, %v8716_v36 }
 0x4a1   :  { %7476 = vmatmul.mubr.msk.f32.vlgmr.msra.gmra.mrb[12].mxu1 %vm704_vm7, %v724_v2  ;;  %7486 = vmatprep.subr.mxu0 %v9185_v14  ;;  %v8722_v39 = vunpack.i.h.bf16 %v8720_v13  ;;  %v8721_v40 = vunpack.i.l.bf16 %v8720_v13  ;;  %v8727_v2 = vunpack.i.h.bf16 %v8725_v59 }
 0x4a2   :  { %8292 = vmatprep.subr.bf16.mxu1 %v9186_v49  ;;  %7501 = vmatprep.mubr.msk.f32.mxu1 %vm9187_vm4, %v9185_v14 }
 0x4a3   :  { %v8297_v1 = vpack.c.bf16 %v8722_v39, %v8721_v40 }
 0x4a4   :  { %7487 = vmatpush3.msra.mxu0 %v9644_v15  ;;  %v8726_v15 = vunpack.i.l.bf16 %v8725_v59  ;;  %v1164_v7 = vpop.permute.xlu1 %1163 }
 0x4a5   :  { %7489 = vmatmul.mubr.msk.f32.vlgmr.msra.gmra.mrb[10].mxu0 %vm704_vm7, %v726_v9  ;;  %8300 = vmatprep.subr.bf16.mxu0 %v9186_v49 }
 0x4a6   :  { %7514 = vmatprep.mubr.msk.f32.mxu0 %vm9187_vm4, %v9185_v14  ;;  %v8305_v4 = vpack.c.bf16 %v8727_v2, %v8726_v15 }
 0x4a7   :  { %8295 = vmatpush3.bf16.xpose.msk.msra.mxu1 %vm9531_vm3, %v8293_v32 }
 0x4a8   :  { %8296 = vmatprep.subr.bf16.mxu1 %v9186_v49  ;;  %v1154_v9 = vpop.permute.xlu1 %1153 }
 0x4ab   :  { %8303 = vmatpush3.bf16.xpose.msk.msra.mxu0 %vm9531_vm3, %v8301_v38 }
 0x4ac   :  { %8304 = vmatprep.subr.bf16.mxu0 %v9186_v49 }
 0x4af   :  { %8299 = vmatpush3.bf16.xpose.msk.msra.mxu1 %vm9531_vm3, %v8297_v1 }
 0x4b0   :  { %7499 = vmatprep.subr.mxu1 %v9185_v14 }
 0x4b3   :  { %8307 = vmatpush3.bf16.xpose.msk.msra.mxu0 %vm9531_vm3, %v8305_v4 }
 0x4b4   :  { %7512 = vmatprep.subr.mxu0 %v9185_v14 }
 0x4b7   :  { %7500 = vmatpush3.xpose.msk.msra.mxu1 %vm494_vm2, %v1164_v7 }
 0x4b8   :  { %8308 = vmatprep.subr.bf16.mxu1 %v9186_v49 }
 0x4ba   :  { %7502 = vmatmul.mubr.msk.f32.vlgmr.msra.gmra.mrb[14].mxu1 %vm494_vm2, %v1154_v9  ;;  %v10055_v9 = vpack.i.bf16 %v9687_v19, %v9682_v18  ;;  %v10075_v18 = vpack.i.bf16 %v9717_v58, %v9712_v54  ;;  %v10095_v54 = vpack.i.bf16 %v9853_v28, %v9966_v3 }
 0x4bb   :  { %7513 = vmatpush3.xpose.msk.msra.mxu0 %vm494_vm2, %v1258_v8  ;;  %7527 = vmatprep.mubr.msk.f32.mxu1 %vm9187_vm4, %v9185_v14 }
 0x4bc   :  { %8314 = vmatprep.subr.bf16.mxu0 %v9186_v49 }
 0x4be   :  { %7515 = vmatmul.mubr.msk.f32.vlgmr.msra.gmra.mrb[12].mxu0 %vm494_vm2, %v1248_v11  ;;  %v10061_v11 = vpack.i.bf16 %v9777_v23, %v9772_v22  ;;  %v10081_v22 = vpack.i.bf16 %v9832_v55, %v9827_v53 }
 0x4bf   :  { %7540 = vmatprep.mubr.msk.f32.mxu0 %vm9187_vm4, %v9185_v14 }
 0x560   :  { %v10037_v12 = vpop.f32.mrb[8].mxu1 }
 0x561   :  { %v7425_v21 = vpop.f32.mrb[9].mxu1 }
 0x562   :  { %v10067_v21 = vpack.i.bf16 %v9742_v63, %v9737_v60  ;;  %v10087_v60 = vpack.i.bf16 %v9803_v26, %v9948_v50 }
 0x564   :  { %v10039_v20 = vpop.f32.mrb[6].mxu0 }
 0x565   :  { %v7438_v24 = vpop.f32.mrb[7].mxu0 }
 0x56a   :  { %v10041_v29 = vpop.f32.mrb[10].mxu1 }
 0x56b   :  { %v7451_v30 = vpop.f32.mrb[11].mxu1 }
 0x56e   :  { %v10043_v31 = vpop.f32.mrb[8].mxu0 }
 0x56f   :  { %v7464_v34 = vpop.f32.mrb[9].mxu0 }
 0x574   :  { %v10045_v32 = vpop.f32.mrb[12].mxu1 }
 0x575   :  { %v7477_v35 = vpop.f32.mrb[13].mxu1 }
 0x578   :  { %v10047_v36 = vpop.f32.mrb[10].mxu0 }
 0x579   :  { %v7490_v13 = vpop.f32.mrb[11].mxu0 }
 0x58d   :  { %v1243_v38 = vpop.f32.mrb[14].mxu1 }
 0x58e   :  { %v1341_v39 = vmul.f32 0.35355338, %v1243_v38  ;;  %v7503_v40 = vpop.f32.mrb[15].mxu1 }
 0x590   :  { %v1343_v59 = vadd.f32 %v1341_v39, %v9700_v33 }
 0x591   :  { %v1337_v1 = vpop.f32.mrb[12].mxu0 }
 0x592   :  { %v1342_v2 = vmul.f32 0.35355338, %v1337_v1  ;;  %v7516_v15 = vpop.f32.mrb[13].mxu0  ;;  %v1345_v4 = vsel %vm704_vm7, %v1343_v59, -inf }
 0x593   :  { %1346 = vmax.xlane.f32.xlu1 %v1345_v4 }
 0x594   :  { %v1344_v7 = vadd.f32 %v1342_v2, %v9703_v37 }
 0x596   :  { %v1348_v8 = vsel %vm704_vm7, %v1344_v7, -inf }
 0x597   :  { %1349 = vmax.xlane.f32.xlu0 %v1348_v8 }
 0x5a4   :  { %8734 = vrot.lane.b32.xlu1 %v10055_v9, %s11735_s3 }
 0x5a8   :  { %8739 = vrot.lane.b32.xlu1 %v10061_v11, %s11735_s3 }
 0x5ac   :  { %1379 = vrot.lane.b32.xlu1 %v9932_v41, %s11735_s3 }
 0x5ad   :  { %8729 = vrot.lane.b32.xlu0 %v10067_v21, %s11735_s3 }
 0x5b0   :  { %1471 = vrot.lane.b32.xlu1 %v9752_v5, %s11735_s3 }
 0x5b1   :  { %8744 = vrot.lane.b32.xlu0 %v10075_v18, %s11735_s3 }
 0x5b4   :  { %8759 = vrot.lane.b32.xlu1 %v10081_v22, %s11735_s3 }
 0x5b5   :  { %8749 = vrot.lane.b32.xlu0 %v10087_v60, %s11735_s3 }
 0x5b9   :  { %8754 = vrot.lane.b32.xlu0 %v10095_v54, %s11735_s3 }
 0x620   :  { %v1347_v58 = vpop.xlane.xlu1 %1346 }
 0x621   :  { %v1351_v23 = vsub.f32 %v1343_v59, %v1347_v58 }
 0x623   :  { %v1353_v53 = vmul.f32 1.442695, %v1351_v23 }
 0x624   :  { %v8735_v55 = vpop.permute.xlu1 %8734  ;;  %v1350_v24 = vpop.xlane.xlu0 %1349 }
 0x625   :  { %9085 = vpow2.f32 %v1353_v53  ;;  %v8737_v26 = vunpack.i.h.bf16 %v8735_v55  ;;  %v8736_v50 = vunpack.i.l.bf16 %v8735_v55  ;;  %v1352_v30 = vsub.f32 %v1344_v7, %v1350_v24 }
 0x627   :  { %v8315_v34 = vpack.c.bf16 %v8737_v26, %v8736_v50  ;;  %v1355_v35 = vmul.f32 1.442695, %v1352_v30  ;;  %v10109_v26 = vpack.i.bf16 %v9870_v57, %v9865_v56 }
 0x628   :  { %v8740_v13 = vpop.permute.xlu1 %8739  ;;  %v8730_v38 = vpop.permute.xlu0 %8729 }
 0x629   :  { %9087 = vpow2.f32 %v1355_v35  ;;  %v8732_v39 = vunpack.i.h.bf16 %v8730_v38  ;;  %8316 = vmatpush3.bf16.msra.mxu0 %v8315_v34  ;;  %v8742_v28 = vunpack.i.h.bf16 %v8740_v13  ;;  %v8741_v3 = vunpack.i.l.bf16 %v8740_v13 }
 0x62a   :  { %v8731_v40 = vunpack.i.l.bf16 %v8730_v38  ;;  %8317 = vmatprep.subr.bf16.mxu0 %v9186_v49 }
 0x62b   :  { %v8312_v4 = vpack.c.bf16 %v8742_v28, %v8741_v3 }
 0x62c   :  { %v8309_v59 = vpack.c.bf16 %v8732_v39, %v8731_v40  ;;  %v8745_v1 = vpop.permute.xlu0 %8744  ;;  %v1380_v8 = vpop.permute.xlu1 %1379 }
 0x62d   :  { %v8747_v2 = vunpack.i.h.bf16 %v8745_v1  ;;  %v8746_v15 = vunpack.i.l.bf16 %v8745_v1 }
 0x62e   :  { %8310 = vmatpush3.bf16.msra.mxu1 %v8309_v59 }
 0x62f   :  { %v9086_v7 = vpop.eup %9085  ;;  %v8318_v58 = vpack.c.bf16 %v8747_v2, %v8746_v15  ;;  %8311 = vmatprep.subr.bf16.mxu1 %v9186_v49 }
 0x630   :  { %v1357_v23 = vsel %vm704_vm7, %v9086_v7, 0.0  ;;  %v1472_v55 = vpop.permute.xlu1 %1471 }
 0x631   :  { %1358 = vadd.xlane.f32.xlu0 %v1357_v23  ;;  %8319 = vmatpush3.bf16.msra.mxu0 %v8318_v58 }
 0x632   :  { %8313 = vmatpush3.bf16.msra.mxu1 %v8312_v4  ;;  %7538 = vmatprep.subr.mxu0 %v9185_v14 }
 0x633   :  { %v9088_v53 = vpop.eup %9087  ;;  %7525 = vmatprep.subr.mxu1 %v9185_v14 }
 0x634   :  { %v1360_v24 = vsel %vm704_vm7, %v9088_v53, 0.0  ;;  %v8760_v57 = vpop.permute.xlu1 %8759 }
 0x635   :  { %1361 = vadd.xlane.f32.xlu1 %v1360_v24  ;;  %7539 = vmatpush3.msra.mxu0 %v1472_v55  ;;  %v8762_v39 = vunpack.i.h.bf16 %v8760_v57  ;;  %v8761_v28 = vunpack.i.l.bf16 %v8760_v57 }
 0x636   :  { %7526 = vmatpush3.msra.mxu1 %v1380_v8  ;;  %8326 = vmatprep.subr.bf16.mxu0 %v9186_v49 }
 0x637   :  { %8320 = vmatprep.subr.bf16.mxu1 %v9186_v49  ;;  %v8324_v58 = vpack.c.bf16 %v8762_v39, %v8761_v28 }
 0x646   :  { %1563 = vrot.lane.b32.xlu1 %v9941_v43, %s11735_s3 }
 0x647   :  { %8764 = vrot.lane.b32.xlu0 %v10109_v26, %s11735_s3 }
 0x64a   :  { %8769 = vrot.lane.b32.xlu1 %v9796_v25, %s11696_s8  ;;  %v8750_v25 = vpop.permute.xlu0 %8749 }
 0x64b   :  { %1652 = vrot.lane.b32.xlu0 %v9943_v44, %s11735_s3  ;;  %v8752_v30 = vunpack.i.h.bf16 %v8750_v25  ;;  %v8751_v34 = vunpack.i.l.bf16 %v8750_v25 }
 0x64d   :  { %v8321_v13 = vpack.c.bf16 %v8752_v30, %v8751_v34 }
 0x64e   :  { %8779 = vrot.lane.b32.xlu1 %v9809_v27, %s11696_s8  ;;  %v8755_v56 = vpop.permute.xlu0 %8754 }
 0x64f   :  { %8774 = vrot.lane.b32.xlu0 %v9820_v46, %s11696_s8  ;;  %v8757_v3 = vunpack.i.h.bf16 %v8755_v56  ;;  %v8756_v40 = vunpack.i.l.bf16 %v8755_v56 }
 0x652   :  { %1739 = vrot.lane.b32.xlu1 %v9651_v16, %s11696_s8 }
 0x653   :  { %8784 = vrot.lane.b32.xlu0 %v9838_v48, %s11696_s8 }
 0x656   :  { %1729 = vrot.lane.b32.xlu1 %v9629_v6, %s11696_s8 }
 0x657   :  { %1833 = vrot.lane.b32.xlu0 %v9663_v17, %s11696_s8 }
 0x65b   :  { %1823 = vrot.lane.b32.xlu0 %v9633_v10, %s11696_s8 }
 0x6be   :  { %v1359_v50 = vpop.xlane.xlu0 %1358 }
 0x6bf   :  { %9089 = vrcp.f32 %v1359_v50 }
 0x6c2   :  { %v1362_v46 = vpop.xlane.xlu1 %1361  ;;  %v8765_v59 = vpop.permute.xlu0 %8764 }
 0x6c3   :  { %9091 = vrcp.f32 %v1362_v46  ;;  %v8767_v2 = vunpack.i.h.bf16 %v8765_v59  ;;  %v8766_v15 = vunpack.i.l.bf16 %v8765_v59 }
 0x6c5   :  { %v8330_v23 = vpack.c.bf16 %v8767_v2, %v8766_v15 }
 0x6c6   :  { %v1564_v4 = vpop.permute.xlu1 %1563  ;;  %v1653_v55 = vpop.permute.xlu0 %1652 }
 0x6c9   :  { %v9090_v35 = vpop.eup %9089 }
 0x6ca   :  { %v1364_v38 = vmul.f32 %v9090_v35, %v9086_v7  ;;  %v8327_v7 = vpack.c.bf16 %v8757_v3, %v8756_v40  ;;  %v8770_v24 = vpop.permute.xlu1 %8769 }
 0x6cb   :  { %v8772_v25 = vunpack.i.h.bf16 %v8770_v24  ;;  %v8771_v56 = vunpack.i.l.bf16 %v8770_v24 }
 0x6cc   :  { %7528 = vmatmul.mubr.msk.f32.vlgmr.msra.gmra.mrb[16].mxu1 %vm704_vm7, %v1364_v38 }
 0x6cd   :  { %v9092_v1 = vpop.eup %9091  ;;  %8322 = vmatpush3.bf16.msra.mxu1 %v8321_v13  ;;  %7553 = vmatprep.mubr.msk.f32.mxu1 %vm9187_vm4, %v9185_v14  ;;  %v8333_v57 = vpack.c.bf16 %v8772_v25, %v8771_v56 }
 0x6ce   :  { %8323 = vmatprep.subr.bf16.mxu1 %v9186_v49  ;;  %v1366_v8 = vmul.f32 %v9092_v1, %v9088_v53  ;;  %v8775_v53 = vpop.permute.xlu0 %8774  ;;  %v8780_v30 = vpop.permute.xlu1 %8779 }
 0x6cf   :  { %v8777_v50 = vunpack.i.h.bf16 %v8775_v53  ;;  %v8776_v46 = vunpack.i.l.bf16 %v8775_v53  ;;  %v8782_v35 = vunpack.i.h.bf16 %v8780_v30  ;;  %v8781_v13 = vunpack.i.l.bf16 %v8780_v30 }
 0x6d0   :  { %7541 = vmatmul.mubr.msk.f32.vlgmr.msra.gmra.mrb[14].mxu0 %vm704_vm7, %v1366_v8 }
 0x6d1   :  { %8325 = vmatpush3.bf16.msra.mxu1 %v8324_v58  ;;  %8328 = vmatpush3.bf16.msra.mxu0 %v8327_v7  ;;  %v8341_v34 = vpack.c.bf16 %v8777_v50, %v8776_v46  ;;  %v8337_v39 = vpack.c.bf16 %v8782_v35, %v8781_v13 }
 0x6d2   :  { %7551 = vmatprep.subr.mxu1 %v9185_v14  ;;  %8329 = vmatprep.subr.bf16.mxu0 %v9186_v49  ;;  %v1740_v59 = vpop.permute.xlu1 %1739 }
 0x6d3   :  { %7566 = vmatprep.mubr.msk.f32.mxu0 %vm9187_vm4, %v9185_v14 }
 0x6d5   :  { %7552 = vmatpush3.msra.mxu1 %v1564_v4  ;;  %8331 = vmatpush3.bf16.msra.mxu0 %v8330_v23 }
 0x6d6   :  { %7554 = vmatmul.mubr.msk.f32.vlgmr.msra.gmra.mrb[18].mxu1 %vm704_vm7, %v1364_v38  ;;  %7564 = vmatprep.subr.mxu0 %v9185_v14  ;;  %v8785_v38 = vpop.permute.xlu0 %8784  ;;  %v1730_v2 = vpop.permute.xlu1 %1729 }
 0x6d7   :  { %8332 = vmatprep.subr.bf16.mxu1 %v9186_v49  ;;  %7579 = vmatprep.mubr.msk.f32.mxu1 %vm9187_vm4, %v9185_v14  ;;  %v8787_v28 = vunpack.i.h.bf16 %v8785_v38  ;;  %v8786_v3 = vunpack.i.l.bf16 %v8785_v38 }
 0x6d9   :  { %7565 = vmatpush3.msra.mxu0 %v1653_v55  ;;  %v8345_v40 = vpack.c.bf16 %v8787_v28, %v8786_v3 }
 0x6da   :  { %7567 = vmatmul.mubr.msk.f32.vlgmr.msra.gmra.mrb[16].mxu0 %vm704_vm7, %v1366_v8  ;;  %8340 = vmatprep.subr.bf16.mxu0 %v9186_v49  ;;  %v1834_v1 = vpop.permute.xlu0 %1833 }
 0x6db   :  { %7592 = vmatprep.mubr.msk.f32.mxu0 %vm9187_vm4, %v9185_v14 }
 0x6dc   :  { %8335 = vmatpush3.bf16.xpose.msk.msra.mxu1 %vm9531_vm3, %v8333_v57 }
 0x6dd   :  { %8336 = vmatprep.subr.bf16.mxu1 %v9186_v49 }
 0x6de   :  { %v1824_v15 = vpop.permute.xlu0 %1823 }
 0x6e0   :  { %8343 = vmatpush3.bf16.xpose.msk.msra.mxu0 %vm9531_vm3, %v8341_v34 }
 0x6e1   :  { %8344 = vmatprep.subr.bf16.mxu0 %v9186_v49 }
 0x6e4   :  { %8339 = vmatpush3.bf16.xpose.msk.msra.mxu1 %vm9531_vm3, %v8337_v39 }
 0x6e5   :  { %7577 = vmatprep.subr.mxu1 %v9185_v14 }
 0x6e8   :  { %8347 = vmatpush3.bf16.xpose.msk.msra.mxu0 %vm9531_vm3, %v8345_v40 }
 0x6e9   :  { %7590 = vmatprep.subr.mxu0 %v9185_v14 }
 0x6ec   :  { %7578 = vmatpush3.xpose.msk.msra.mxu1 %vm494_vm2, %v1740_v59 }
 0x6ed   :  { %8348 = vmatprep.subr.bf16.mxu1 %v9186_v49 }
 0x6ef   :  { %7580 = vmatmul.mubr.msk.f32.vlgmr.msra.gmra.mrb[20].mxu1 %vm494_vm2, %v1730_v2 }
 0x6f0   :  { %7591 = vmatpush3.xpose.msk.msra.mxu0 %vm494_vm2, %v1834_v1  ;;  %7605 = vmatprep.mubr.msk.f32.mxu1 %vm9187_vm4, %v9185_v14 }
 0x6f1   :  { %8354 = vmatprep.subr.bf16.mxu0 %v9186_v49 }
 0x6f3   :  { %7593 = vmatmul.mubr.msk.f32.vlgmr.msra.gmra.mrb[18].mxu0 %vm494_vm2, %v1824_v15 }
 0x6f4   :  { %7618 = vmatprep.mubr.msk.f32.mxu0 %vm9187_vm4, %v9185_v14 }
 0x79f   :  { %v10173_v4 = vpop.f32.mrb[16].mxu1 }
 0x7a0   :  { %v7529_v8 = vpop.f32.mrb[17].mxu1 }
 0x7a3   :  { %v10175_v58 = vpop.f32.mrb[14].mxu0 }
 0x7a4   :  { %v7542_v7 = vpop.f32.mrb[15].mxu0 }
 0x7a9   :  { %v10177_v23 = vpop.f32.mrb[18].mxu1 }
 0x7aa   :  { %v7555_v55 = vpop.f32.mrb[19].mxu1 }
 0x7ad   :  { %v10179_v24 = vpop.f32.mrb[16].mxu0 }
 0x7ae   :  { %v7568_v25 = vpop.f32.mrb[17].mxu0 }
 0x7c2   :  { %v1819_v56 = vpop.f32.mrb[20].mxu1 }
 0x7c3   :  { %v1917_v53 = vmul.f32 0.35355338, %v1819_v56  ;;  %v7581_v57 = vpop.f32.mrb[21].mxu1 }
 0x7c5   :  { %v1919_v50 = vadd.f32 %v1917_v53, %v9700_v33 }
 0x7c6   :  { %v1913_v46 = vpop.f32.mrb[18].mxu0 }
 0x7c7   :  { %v1918_v30 = vmul.f32 0.35355338, %v1913_v46  ;;  %v7594_v34 = vpop.f32.mrb[19].mxu0  ;;  %v1921_v35 = vsel %vm704_vm7, %v1919_v50, -inf }
 0x7c8   :  { %1922 = vmax.xlane.f32.xlu1 %v1921_v35 }
 0x7c9   :  { %v1920_v13 = vadd.f32 %v1918_v30, %v9703_v37 }
 0x7cb   :  { %v1924_v38 = vsel %vm704_vm7, %v1920_v13, -inf }
 0x7cc   :  { %1925 = vmax.xlane.f32.xlu0 %v1924_v38 }
 0x7d9   :  { %8794 = vrot.lane.b32.xlu1 %v10055_v9, %s11696_s8 }
 0x7dd   :  { %8799 = vrot.lane.b32.xlu1 %v10061_v11, %s11696_s8 }
 0x7e1   :  { %1951 = vrot.lane.b32.xlu1 %v9932_v41, %s11696_s8 }
 0x7e2   :  { %8789 = vrot.lane.b32.xlu0 %v10067_v21, %s11696_s8 }
 0x7e5   :  { %2039 = vrot.lane.b32.xlu1 %v9752_v5, %s11696_s8 }
 0x7e6   :  { %8804 = vrot.lane.b32.xlu0 %v10075_v18, %s11696_s8 }
 0x7e9   :  { %8819 = vrot.lane.b32.xlu1 %v10081_v22, %s11696_s8 }
 0x7ea   :  { %8809 = vrot.lane.b32.xlu0 %v10087_v60, %s11696_s8 }
 0x7ee   :  { %8814 = vrot.lane.b32.xlu0 %v10095_v54, %s11696_s8 }
 0x855   :  { %v1923_v9 = vpop.xlane.xlu1 %1922 }
 0x856   :  { %v1927_v39 = vsub.f32 %v1919_v50, %v1923_v9 }
 0x858   :  { %v1929_v28 = vmul.f32 1.442695, %v1927_v39 }
 0x859   :  { %v8795_v3 = vpop.permute.xlu1 %8794  ;;  %v1926_v21 = vpop.xlane.xlu0 %1925 }
 0x85a   :  { %9093 = vpow2.f32 %v1929_v28  ;;  %v8797_v40 = vunpack.i.h.bf16 %v8795_v3  ;;  %v8796_v59 = vunpack.i.l.bf16 %v8795_v3  ;;  %v1928_v1 = vsub.f32 %v1920_v13, %v1926_v21  ;;  %v9153_v21 = vld [vmem:[%s11728_s26] sm:$0xff] }
 0x85c   :  { %v8355_v2 = vpack.c.bf16 %v8797_v40, %v8796_v59  ;;  %v1931_v15 = vmul.f32 1.442695, %v1928_v1  ;;  %v8828_v40 = vpack.i.bf16 %v9519_v47, %v9153_v21  ;;  %v9154_v59 = vld [vmem:[%s11728_s26 + $0x20] sm:$0xff] }
 0x85d   :  { %v8800_v8 = vpop.permute.xlu1 %8799  ;;  %v8790_v7 = vpop.permute.xlu0 %8789  ;;  %v8833_v1 = vpack.i.bf16 %v9544_v52, %v9154_v59 }
 0x85e   :  { %9095 = vpow2.f32 %v1931_v15  ;;  %v8792_v55 = vunpack.i.h.bf16 %v8790_v7  ;;  %8356 = vmatpush3.bf16.msra.mxu0 %v8355_v2  ;;  %v8802_v25 = vunpack.i.h.bf16 %v8800_v8  ;;  %v8801_v56 = vunpack.i.l.bf16 %v8800_v8 }
 0x85f   :  { %v8791_v53 = vunpack.i.l.bf16 %v8790_v7  ;;  %8357 = vmatprep.subr.bf16.mxu0 %v9186_v49 }
 0x860   :  { %v8352_v34 = vpack.c.bf16 %v8802_v25, %v8801_v56 }
 0x861   :  { %v8349_v57 = vpack.c.bf16 %v8792_v55, %v8791_v53  ;;  %v8805_v50 = vpop.permute.xlu0 %8804  ;;  %v1952_v35 = vpop.permute.xlu1 %1951 }
 0x862   :  { %v8807_v46 = vunpack.i.h.bf16 %v8805_v50  ;;  %v8806_v30 = vunpack.i.l.bf16 %v8805_v50 }
 0x863   :  { %8350 = vmatpush3.bf16.msra.mxu1 %v8349_v57 }
 0x864   :  { %v9094_v13 = vpop.eup %9093  ;;  %v8358_v38 = vpack.c.bf16 %v8807_v46, %v8806_v30  ;;  %8351 = vmatprep.subr.bf16.mxu1 %v9186_v49 }
 0x865   :  { %v1933_v9 = vsel %vm704_vm7, %v9094_v13, 0.0  ;;  %v2040_v28 = vpop.permute.xlu1 %2039  ;;  %v8810_v47 = vpop.permute.xlu0 %8809 }
 0x866   :  { %1934 = vadd.xlane.f32.xlu0 %v1933_v9  ;;  %8359 = vmatpush3.bf16.msra.mxu0 %v8358_v38  ;;  %v8811_v8 = vunpack.i.l.bf16 %v8810_v47 }
 0x867   :  { %8353 = vmatpush3.bf16.msra.mxu1 %v8352_v34  ;;  %7616 = vmatprep.subr.mxu0 %v9185_v14 }
 0x868   :  { %v9096_v39 = vpop.eup %9095  ;;  %7603 = vmatprep.subr.mxu1 %v9185_v14 }
 0x869   :  { %v1936_v3 = vsel %vm704_vm7, %v9096_v39, 0.0  ;;  %v8815_v52 = vpop.permute.xlu0 %8814 }
 0x86a   :  { %1937 = vadd.xlane.f32.xlu1 %v1936_v3  ;;  %7617 = vmatpush3.msra.mxu0 %v2040_v28  ;;  %v8817_v56 = vunpack.i.h.bf16 %v8815_v52  ;;  %v8816_v53 = vunpack.i.l.bf16 %v8815_v52 }
 0x86b   :  { %7604 = vmatpush3.msra.mxu1 %v1952_v35  ;;  %8366 = vmatprep.subr.bf16.mxu0 %v9186_v49 }
 0x86c   :  { %8360 = vmatprep.subr.bf16.mxu1 %v9186_v49  ;;  %v8367_v35 = vpack.c.bf16 %v8817_v56, %v8816_v53 }
 0x87b   :  { %2127 = vrot.lane.b32.xlu1 %v9941_v43, %s11696_s8 }
 0x87c   :  { %8824 = vrot.lane.b32.xlu0 %v10109_v26, %s11696_s8 }
 0x87f   :  { %8829 = vrot.lane.b32.xlu1 %v8828_v40, %s11694_s5 }
 0x880   :  { %2212 = vrot.lane.b32.xlu0 %v9943_v44, %s11696_s8  ;;  %s11702_s8 = smov 24  }
 0x883   :  { %8839 = vrot.lane.b32.xlu1 %v9809_v27, %s11694_s5  ;;  %v8820_v27 = vpop.permute.xlu1 %8819 }
 0x884   :  { %8834 = vrot.lane.b32.xlu0 %v8833_v1, %s11694_s5  ;;  %v8822_v25 = vunpack.i.h.bf16 %v8820_v27 }
 0x887   :  { %2299 = vrot.lane.b32.xlu1 %v9651_v16, %s11694_s5  ;;  %v8812_v16 = vunpack.i.h.bf16 %v8810_v47 }
 0x888   :  { %8844 = vrot.lane.b32.xlu0 %v9838_v48, %s11694_s5 }
 0x889   :  { %v8361_v48 = vpack.c.bf16 %v8812_v16, %v8811_v8 }
 0x88b   :  { %2289 = vrot.lane.b32.xlu1 %v9629_v6, %s11694_s5  ;;  %v8821_v6 = vunpack.i.l.bf16 %v8820_v27 }
 0x88c   :  { %2393 = vrot.lane.b32.xlu0 %v9663_v17, %s11694_s5 }
 0x88d   :  { %v8364_v34 = vpack.c.bf16 %v8822_v25, %v8821_v6 }
 0x890   :  { %2383 = vrot.lane.b32.xlu0 %v9633_v10, %s11694_s5 }
 0x8f3   :  { %v1935_v2 = vpop.xlane.xlu0 %1934 }
 0x8f4   :  { %9097 = vrcp.f32 %v1935_v2 }
 0x8f7   :  { %v1938_v15 = vpop.xlane.xlu1 %1937  ;;  %v8825_v17 = vpop.permute.xlu0 %8824 }
 0x8f8   :  { %9099 = vrcp.f32 %v1938_v15  ;;  %v8827_v57 = vunpack.i.h.bf16 %v8825_v17  ;;  %v8826_v50 = vunpack.i.l.bf16 %v8825_v17 }
 0x8fb   :  { %v2128_v46 = vpop.permute.xlu1 %2127  ;;  %v2213_v38 = vpop.permute.xlu0 %2212 }
 0x8fe   :  { %v9098_v7 = vpop.eup %9097 }
 0x8ff   :  { %v1940_v55 = vmul.f32 %v9098_v7, %v9094_v13  ;;  %v8370_v13 = vpack.c.bf16 %v8827_v57, %v8826_v50  ;;  %v8830_v9 = vpop.permute.xlu1 %8829 }
 0x900   :  { %v8832_v28 = vunpack.i.h.bf16 %v8830_v9  ;;  %v8831_v3 = vunpack.i.l.bf16 %v8830_v9 }
 0x901   :  { %7606 = vmatmul.mubr.msk.f32.vlgmr.msra.gmra.mrb[22].mxu1 %vm704_vm7, %v1940_v55 }
 0x902   :  { %v9100_v10 = vpop.eup %9099  ;;  %8362 = vmatpush3.bf16.msra.mxu1 %v8361_v48  ;;  %7631 = vmatprep.mubr.msk.f32.mxu1 %vm9187_vm4, %v9185_v14  ;;  %v8373_v21 = vpack.c.bf16 %v8832_v28, %v8831_v3 }
 0x903   :  { %8363 = vmatprep.subr.bf16.mxu1 %v9186_v49  ;;  %v1942_v30 = vmul.f32 %v9100_v10, %v9096_v39  ;;  %v8835_v39 = vpop.permute.xlu0 %8834  ;;  %v8840_v1 = vpop.permute.xlu1 %8839 }
 0x904   :  { %v8837_v40 = vunpack.i.h.bf16 %v8835_v39  ;;  %v8836_v59 = vunpack.i.l.bf16 %v8835_v39  ;;  %v8842_v52 = vunpack.i.h.bf16 %v8840_v1  ;;  %v8841_v27 = vunpack.i.l.bf16 %v8840_v1 }
 0x905   :  { %7619 = vmatmul.mubr.msk.f32.vlgmr.msra.gmra.mrb[20].mxu0 %vm704_vm7, %v1942_v30 }
 0x906   :  { %8365 = vmatpush3.bf16.msra.mxu1 %v8364_v34  ;;  %8368 = vmatpush3.bf16.msra.mxu0 %v8367_v35  ;;  %v8381_v47 = vpack.c.bf16 %v8837_v40, %v8836_v59  ;;  %v8377_v15 = vpack.c.bf16 %v8842_v52, %v8841_v27  ;;  %v9155_v59 = vld [vmem:[%s11732_s27 + $0x20] sm:$0xff] }
 0x907   :  { %7629 = vmatprep.subr.mxu1 %v9185_v14  ;;  %8369 = vmatprep.subr.bf16.mxu0 %v9186_v49  ;;  %v8845_v2 = vpop.permute.xlu0 %8844  ;;  %v2300_v48 = vpop.permute.xlu1 %2299  ;;  %v8853_v1 = vpack.i.bf16 %v9687_v19, %v9155_v59 }
 0x908   :  { %7644 = vmatprep.mubr.msk.f32.mxu0 %vm9187_vm4, %v9185_v14  ;;  %v8847_v16 = vunpack.i.h.bf16 %v8845_v2  ;;  %v8846_v8 = vunpack.i.l.bf16 %v8845_v2 }
 0x90a   :  { %7630 = vmatpush3.msra.mxu1 %v2128_v46  ;;  %8371 = vmatpush3.bf16.msra.mxu0 %v8370_v13  ;;  %v8385_v7 = vpack.c.bf16 %v8847_v16, %v8846_v8 }
 0x90b   :  { %7632 = vmatmul.mubr.msk.f32.vlgmr.msra.gmra.mrb[24].mxu1 %vm704_vm7, %v1940_v55  ;;  %7642 = vmatprep.subr.mxu0 %v9185_v14  ;;  %v2394_v55 = vpop.permute.xlu0 %2393  ;;  %v2290_v25 = vpop.permute.xlu1 %2289 }
 0x90c   :  { %8372 = vmatprep.subr.bf16.mxu1 %v9186_v49  ;;  %7657 = vmatprep.mubr.msk.f32.mxu1 %vm9187_vm4, %v9185_v14 }
 0x90e   :  { %7643 = vmatpush3.msra.mxu0 %v2213_v38 }
 0x90f   :  { %7645 = vmatmul.mubr.msk.f32.vlgmr.msra.gmra.mrb[22].mxu0 %vm704_vm7, %v1942_v30  ;;  %8380 = vmatprep.subr.bf16.mxu0 %v9186_v49  ;;  %v2384_v6 = vpop.permute.xlu0 %2383 }
 0x910   :  { %7670 = vmatprep.mubr.msk.f32.mxu0 %vm9187_vm4, %v9185_v14 }
 0x911   :  { %8375 = vmatpush3.bf16.xpose.msk.msra.mxu1 %vm9531_vm3, %v8373_v21 }
 0x912   :  { %8376 = vmatprep.subr.bf16.mxu1 %v9186_v49 }
 0x915   :  { %8383 = vmatpush3.bf16.xpose.msk.msra.mxu0 %vm9531_vm3, %v8381_v47  ;;  %v9156_v47 = vld [vmem:[%s11732_s27] sm:$0xff] }
 0x916   :  { %8384 = vmatprep.subr.bf16.mxu0 %v9186_v49  ;;  %v8848_v52 = vpack.i.bf16 %v9742_v63, %v9156_v47 }
 0x919   :  { %8379 = vmatpush3.bf16.xpose.msk.msra.mxu1 %vm9531_vm3, %v8377_v15 }
 0x91a   :  { %7655 = vmatprep.subr.mxu1 %v9185_v14 }
 0x91d   :  { %8387 = vmatpush3.bf16.xpose.msk.msra.mxu0 %vm9531_vm3, %v8385_v7 }
 0x91e   :  { %7668 = vmatprep.subr.mxu0 %v9185_v14 }
 0x921   :  { %7656 = vmatpush3.xpose.msk.msra.mxu1 %vm494_vm2, %v2300_v48 }
 0x922   :  { %8388 = vmatprep.subr.bf16.mxu1 %v9186_v49 }
 0x924   :  { %7658 = vmatmul.mubr.msk.f32.vlgmr.msra.gmra.mrb[26].mxu1 %vm494_vm2, %v2290_v25 }
 0x925   :  { %7669 = vmatpush3.xpose.msk.msra.mxu0 %vm494_vm2, %v2394_v55  ;;  %7683 = vmatprep.mubr.msk.f32.mxu1 %vm9187_vm4, %v9185_v14 }
 0x926   :  { %8394 = vmatprep.subr.bf16.mxu0 %v9186_v49 }
 0x928   :  { %7671 = vmatmul.mubr.msk.f32.vlgmr.msra.gmra.mrb[24].mxu0 %vm494_vm2, %v2384_v6 }
 0x929   :  { %7696 = vmatprep.mubr.msk.f32.mxu0 %vm9187_vm4, %v9185_v14 }
 0x9d4   :  { %v10279_v56 = vpop.f32.mrb[22].mxu1 }
 0x9d5   :  { %v7607_v53 = vpop.f32.mrb[23].mxu1 }
 0x9d8   :  { %v10281_v17 = vpop.f32.mrb[20].mxu0 }
 0x9d9   :  { %v7620_v10 = vpop.f32.mrb[21].mxu0 }
 0x9de   :  { %v10283_v57 = vpop.f32.mrb[24].mxu1 }
 0x9df   :  { %v7633_v50 = vpop.f32.mrb[25].mxu1 }
 0x9e2   :  { %v10285_v46 = vpop.f32.mrb[22].mxu0 }
 0x9e3   :  { %v7646_v30 = vpop.f32.mrb[23].mxu0 }
 0x9f7   :  { %v2379_v34 = vpop.f32.mrb[26].mxu1 }
 0x9f8   :  { %v2477_v35 = vmul.f32 0.35355338, %v2379_v34  ;;  %v7659_v13 = vpop.f32.mrb[27].mxu1 }
 0x9fa   :  { %v2479_v38 = vadd.f32 %v2477_v35, %v9700_v33 }
 0x9fb   :  { %v2473_v9 = vpop.f32.mrb[24].mxu0 }
 0x9fc   :  { %v2478_v28 = vmul.f32 0.35355338, %v2473_v9  ;;  %v7672_v3 = vpop.f32.mrb[25].mxu0  ;;  %v2481_v39 = vsel %vm704_vm7, %v2479_v38, -inf }
 0x9fd   :  { %2482 = vmax.xlane.f32.xlu1 %v2481_v39 }
 0x9fe   :  { %v2480_v21 = vadd.f32 %v2478_v28, %v9703_v37 }
 0xa00   :  { %v2484_v40 = vsel %vm704_vm7, %v2480_v21, -inf }
 0xa01   :  { %2485 = vmax.xlane.f32.xlu0 %v2484_v40 }
 0xa0e   :  { %8854 = vrot.lane.b32.xlu1 %v8853_v1, %s11694_s5 }
 0xa12   :  { %8859 = vrot.lane.b32.xlu1 %v10061_v11, %s11694_s5 }
 0xa16   :  { %2511 = vrot.lane.b32.xlu1 %v9932_v41, %s11694_s5 }
 0xa17   :  { %8849 = vrot.lane.b32.xlu0 %v8848_v52, %s11694_s5 }
 0xa1a   :  { %2599 = vrot.lane.b32.xlu1 %v9752_v5, %s11694_s5 }
 0xa1b   :  { %8864 = vrot.lane.b32.xlu0 %v10075_v18, %s11694_s5 }
 0xa1e   :  { %8879 = vrot.lane.b32.xlu1 %v10081_v22, %s11694_s5 }
 0xa1f   :  { %8869 = vrot.lane.b32.xlu0 %v10087_v60, %s11694_s5 }
 0xa23   :  { %8874 = vrot.lane.b32.xlu0 %v10095_v54, %s11694_s5 }
 0xa8a   :  { %v2483_v19 = vpop.xlane.xlu1 %2482 }
 0xa8b   :  { %v2487_v63 = vsub.f32 %v2479_v38, %v2483_v19 }
 0xa8d   :  { %v2489_v41 = vmul.f32 1.442695, %v2487_v63 }
 0xa8e   :  { %v8855_v11 = vpop.permute.xlu1 %8854  ;;  %v2486_v27 = vpop.xlane.xlu0 %2485 }
 0xa8f   :  { %9101 = vpow2.f32 %v2489_v41  ;;  %v8857_v2 = vunpack.i.h.bf16 %v8855_v11  ;;  %v8856_v5 = vunpack.i.l.bf16 %v8855_v11  ;;  %v2488_v15 = vsub.f32 %v2480_v21, %v2486_v27  ;;  %v318_v41 = vld [vmem:[%s11654_s11] sm:$0xff]  ;;  %v319_v11 = vld [vmem:[%s11654_s11 + $0x8] sm:$0xff] }
 0xa90   :  { %v8412_v27 = vpack.c.bf16 %v319_v11, %v318_v41  ;;  %v330_v41 = vld [vmem:[%s11656_s13] sm:$0x7f] }
 0xa91   :  { %v8395_v16 = vpack.c.bf16 %v8857_v2, %v8856_v5  ;;  %v2491_v18 = vmul.f32 1.442695, %v2488_v15  ;;  %v320_v2 = vld [vmem:[%s11654_s11 + $0x10] sm:$0xff]  ;;  %v321_v5 = vld [vmem:[%s11654_s11 + $0x18] sm:$0xff] }
 0xa92   :  { %v8860_v8 = vpop.permute.xlu1 %8859  ;;  %v8850_v7 = vpop.permute.xlu0 %8849  ;;  %v8416_v15 = vpack.c.bf16 %v321_v5, %v320_v2  ;;  %v3110_v5 = vsub.s32 3, %v9609_v61 }
 0xa93   :  { %9103 = vpow2.f32 %v2491_v18  ;;  %v8852_v22 = vunpack.i.h.bf16 %v8850_v7  ;;  %8396 = vmatpush3.bf16.msra.mxu0 %v8395_v16  ;;  %v8862_v60 = vunpack.i.h.bf16 %v8860_v8  ;;  %v8861_v48 = vunpack.i.l.bf16 %v8860_v8  ;;  %v322_v16 = vld [vmem:[%s11654_s11 + $0x20] sm:$0xff]  ;;  %v323_v18 = vld [vmem:[%s11654_s11 + $0x28] sm:$0xff] }
 0xa94   :  { %v8851_v55 = vunpack.i.l.bf16 %v8850_v7  ;;  %8397 = vmatprep.subr.bf16.mxu0 %v9186_v49  ;;  %v8420_v8 = vpack.c.bf16 %v323_v18, %v322_v16  ;;  %v324_v7 = vld [vmem:[%s11654_s11 + $0x30] sm:$0xff] }
 0xa95   :  { %v8392_v10 = vpack.c.bf16 %v8862_v60, %v8861_v48  ;;  %v326_v48 = vld [vmem:[%s11654_s11 + $0x40] sm:$0xff] }
 0xa96   :  { %v8389_v54 = vpack.c.bf16 %v8852_v22, %v8851_v55  ;;  %v8865_v25 = vpop.permute.xlu0 %8864  ;;  %v2512_v50 = vpop.permute.xlu1 %2511  ;;  %v325_v22 = vld [vmem:[%s11654_s11 + $0x38] sm:$0xff]  ;;  %v327_v55 = vld [vmem:[%s11654_s11 + $0x48] sm:$0xff] }
 0xa97   :  { %v8867_v6 = vunpack.i.h.bf16 %v8865_v25  ;;  %v8866_v53 = vunpack.i.l.bf16 %v8865_v25  ;;  %v8424_v60 = vpack.c.bf16 %v325_v22, %v324_v7  ;;  %v3156_v7 = vsub.s32 5, %v9609_v61 }
 0xa98   :  { %8390 = vmatpush3.bf16.msra.mxu1 %v8389_v54  ;;  %v8428_v54 = vpack.c.bf16 %v327_v55, %v326_v48  ;;  %v11708_v55 = vsub.s32 6, %v9609_v61 }
 0xa99   :  { %v9102_v30 = vpop.eup %9101  ;;  %v8398_v34 = vpack.c.bf16 %v8867_v6, %v8866_v53  ;;  %8391 = vmatprep.subr.bf16.mxu1 %v9186_v49  ;;  %v328_v53 = vld [vmem:[%s11654_s11 + $0x50] sm:$0xff] }
 0xa9a   :  { %v2493_v35 = vsel %vm704_vm7, %v9102_v30, 0.0  ;;  %v2600_v38 = vpop.permute.xlu1 %2599 }
 0xa9b   :  { %2494 = vadd.xlane.f32.xlu0 %v2493_v35  ;;  %8399 = vmatpush3.bf16.msra.mxu0 %v8398_v34 }
 0xa9c   :  { %8393 = vmatpush3.bf16.msra.mxu1 %v8392_v10  ;;  %7694 = vmatprep.subr.mxu0 %v9185_v14 }
 0xa9d   :  { %v9104_v13 = vpop.eup %9103  ;;  %7681 = vmatprep.subr.mxu1 %v9185_v14 }
 0xa9e   :  { %v2496_v9 = vsel %vm704_vm7, %v9104_v13, 0.0 }
 0xa9f   :  { %2497 = vadd.xlane.f32.xlu1 %v2496_v9  ;;  %7695 = vmatpush3.msra.mxu0 %v2600_v38 }
 0xaa0   :  { %7682 = vmatpush3.msra.mxu1 %v2512_v50  ;;  %8406 = vmatprep.subr.bf16.mxu0 %v9186_v49 }
 0xaa1   :  { %8400 = vmatprep.subr.bf16.mxu1 %v9186_v49 }
 0xab0   :  { %2687 = vrot.lane.b32.xlu1 %v9941_v43, %s11694_s5  ;;  %v8870_v43 = vpop.permute.xlu0 %8869 }
 0xab1   :  { %8884 = vrot.lane.b32.xlu0 %v10109_v26, %s11694_s5 }
 0xab4   :  { %2851 = vrot.lane.b32.xlu1 %v10173_v4, %s11692_s29 }
 0xab5   :  { %2772 = vrot.lane.b32.xlu0 %v9943_v44, %s11694_s5  ;;  %v8875_v44 = vpop.permute.xlu0 %8874  ;;  %s11737_s5 = smov 64  }
 0xab6   :  { %v8877_v3 = vunpack.i.h.bf16 %v8875_v44  ;;  %v8876_v39 = vunpack.i.l.bf16 %v8875_v44 }
 0xab8   :  { %2859 = vrot.lane.b32.xlu1 %v10279_v56, %s11690_s28  ;;  %v8407_v47 = vpack.c.bf16 %v8877_v3, %v8876_v39 }
 0xab9   :  { %2853 = vrot.lane.b32.xlu0 %v10175_v58, %s11692_s29  ;;  %v8872_v58 = vunpack.i.h.bf16 %v8870_v43  ;;  %s11739_s29 = smov 96  }
 0xabc   :  { %2875 = vrot.lane.b32.xlu1 %v10041_v29, %s11736_s6  ;;  %v8880_v29 = vpop.permute.xlu1 %8879 }
 0xabd   :  { %2861 = vrot.lane.b32.xlu0 %v10281_v17, %s11690_s28  ;;  %v8882_v28 = vunpack.i.h.bf16 %v8880_v29 }
 0xac0   :  { %2883 = vrot.lane.b32.xlu1 %v10177_v23, %s11688_s30  ;;  %v8871_v23 = vunpack.i.l.bf16 %v8870_v43 }
 0xac1   :  { %2877 = vrot.lane.b32.xlu0 %v10043_v31, %s11736_s6 }
 0xac2   :  { %v8401_v56 = vpack.c.bf16 %v8872_v58, %v8871_v23 }
 0xac4   :  { %2891 = vrot.lane.b32.xlu1 %v10283_v57, %s11686_s20  ;;  %v8881_v57 = vunpack.i.l.bf16 %v8880_v29 }
 0xac5   :  { %2885 = vrot.lane.b32.xlu0 %v10179_v24, %s11688_s30  ;;  %s11700_s30 = smov 56  }
 0xac6   :  { %v8404_v1 = vpack.c.bf16 %v8882_v28, %v8881_v57 }
 0xac9   :  { %2893 = vrot.lane.b32.xlu0 %v10285_v46, %s11686_s20  ;;  %s9202_s20 = smov [#allocation2]  }
 0xb28   :  { %v2495_v26 = vpop.xlane.xlu0 %2494 }
 0xb29   :  { %9105 = vrcp.f32 %v2495_v26 }
 0xb2c   :  { %v2498_v4 = vpop.xlane.xlu1 %2497  ;;  %v8885_v24 = vpop.permute.xlu0 %8884 }
 0xb2d   :  { %9107 = vrcp.f32 %v2498_v4  ;;  %v8887_v21 = vunpack.i.h.bf16 %v8885_v24  ;;  %v8886_v40 = vunpack.i.l.bf16 %v8885_v24 }
 0xb2f   :  { %v8410_v52 = vpack.c.bf16 %v8887_v21, %v8886_v40 }
 0xb30   :  { %v2688_v19 = vpop.permute.xlu1 %2687  ;;  %v2773_v63 = vpop.permute.xlu0 %2772 }
 0xb33   :  { %v9106_v31 = vpop.eup %9105 }
 0xb34   :  { %v2500_v17 = vmul.f32 %v9106_v31, %v9102_v30  ;;  %v2852_v38 = vpop.permute.xlu1 %2851  ;;  %v2854_v9 = vpop.permute.xlu0 %2853 }
 0xb35   :  { %v2914_v57 = vsel %vm494_vm2, %v10039_v20, %v2854_v9 }
 0xb36   :  { %7684 = vmatmul.mubr.msk.f32.vlgmr.msra.gmra.mrb[28].mxu1 %vm704_vm7, %v2500_v17 }
 0xb37   :  { %v9108_v46 = vpop.eup %9107  ;;  %8402 = vmatpush3.bf16.msra.mxu1 %v8401_v56  ;;  %7709 = vmatprep.mubr.msk.f32.mxu1 %vm9187_vm4, %v9185_v14  ;;  %v2913_v56 = vsel %vm494_vm2, %v10037_v12, %v2852_v38 }
 0xb38   :  { %8403 = vmatprep.subr.bf16.mxu1 %v9186_v49  ;;  %v2502_v59 = vmul.f32 %v9108_v46, %v9104_v13  ;;  %v2860_v43 = vpop.permute.xlu1 %2859  ;;  %v2862_v44 = vpop.permute.xlu0 %2861 }
 0xb39   :  { %v2917_v3 = vsel %vm2915_vm8, %v2914_v57, %v2862_v44  ;;  %v10470_v44 = vrot.slane %v330_v41, %v11708_v55 }
 0xb3a   :  { %7697 = vmatmul.mubr.msk.f32.vlgmr.msra.gmra.mrb[26].mxu0 %vm704_vm7, %v2502_v59 }
 0xb3b   :  { %8405 = vmatpush3.bf16.msra.mxu1 %v8404_v1  ;;  %8408 = vmatpush3.bf16.msra.mxu0 %v8407_v47 }
 0xb3c   :  { %7707 = vmatprep.subr.mxu1 %v9185_v14  ;;  %8409 = vmatprep.subr.bf16.mxu0 %v9186_v49  ;;  %v2876_v29 = vpop.permute.xlu1 %2875  ;;  %v2878_v26 = vpop.permute.xlu0 %2877 }
 0xb3d   :  { %7722 = vmatprep.mubr.msk.f32.mxu0 %vm9187_vm4, %v9185_v14 }
 0xb3f   :  { %7708 = vmatpush3.msra.mxu1 %v2688_v19  ;;  %8411 = vmatpush3.bf16.msra.mxu0 %v8410_v52 }
 0xb40   :  { %7710 = vmatmul.mubr.msk.f32.vlgmr.msra.gmra.mrb[30].mxu1 %vm704_vm7, %v2500_v17  ;;  %7720 = vmatprep.subr.mxu0 %v9185_v14  ;;  %v2884_v4 = vpop.permute.xlu1 %2883 }
 0xb41   :  { %8413 = vmatprep.subr.bf16.mxu1 %v8412_v27 }
 0xb42   :  { %8415 = vmatpush3.bf16.msra.mxu1 %v8412_v27 }
 0xb43   :  { %7721 = vmatpush3.msra.mxu0 %v2773_v63  ;;  %8417 = vmatprep.subr.bf16.mxu1 %v8416_v15  ;;  %v3087_v63 = vsub.s32 2, %v9609_v61 }
 0xb44   :  { %7723 = vmatmul.mubr.msk.f32.vlgmr.msra.gmra.mrb[28].mxu0 %vm704_vm7, %v2502_v59  ;;  %v2892_v58 = vpop.permute.xlu1 %2891 }
 0xb45   :  { %v3088_v48 = vrot.slane %v330_v41, %v3087_v63 }
 0xb46   :  { %8419 = vmatpush3.bf16.msra.mxu1 %v8416_v15  ;;  %v3029_v15 = vld [vmem:[%s11738_s1] sm:$0x7] }
 0xb47   :  { %8421 = vmatprep.subr.bf16.mxu1 %v8420_v8 }
 0xb4a   :  { %8423 = vmatpush3.bf16.msra.mxu1 %v8420_v8  ;;  %v3133_v8 = vsub.s32 4, %v9609_v61 }
 0xb4b   :  { %8425 = vmatprep.subr.bf16.mxu1 %v8424_v60 }
 0xb4e   :  { %8427 = vmatpush3.bf16.msra.mxu1 %v8424_v60  ;;  %v3065_v60 = vrot.slane %v330_v41, %v9622_v0 }
 0xb4f   :  { %8429 = vmatprep.subr.bf16.mxu1 %v8428_v54 }
 0xb52   :  { %8431 = vmatpush3.bf16.msra.mxu1 %v8428_v54 }
 0xb53   :  { %7745 = vmatprep.subr.mxu1 %v328_v53 }
 0xb56   :  { %7746 = vmatpush3.msra.mxu1 %v328_v53  ;;  %v3057_v53 = vrot.slane %v330_v41, %v9616_v62 }
 0xc09   :  { %v2587_v25 = vpop.f32.mrb[28].mxu1 }
 0xc0a   :  { %2867 = vrot.lane.b32.xlu1 %v2587_v25, %s11702_s8  ;;  %v7685_v6 = vpop.f32.mrb[29].mxu1 }
 0xc0d   :  { %v2675_v10 = vpop.f32.mrb[26].mxu0 }
 0xc0e   :  { %2869 = vrot.lane.b32.xlu0 %v2675_v10, %s11702_s8  ;;  %v7698_v50 = vpop.f32.mrb[27].mxu0  ;;  %v10451_v10 = vrot.slane %v330_v41, %v3110_v5  ;;  %s11744_s8 = smov 40  }
 0xc13   :  { %v2760_v30 = vpop.f32.mrb[30].mxu1 }
 0xc14   :  { %2899 = vrot.lane.b32.xlu1 %v2760_v30, %s11700_s30  ;;  %v7711_v34 = vpop.f32.mrb[31].mxu1 }
 0xc15   :  { %v10457_v34 = vrot.slane %v330_v41, %v3133_v8 }
 0xc17   :  { %v2845_v35 = vpop.f32.mrb[28].mxu0 }
 0xc18   :  { %2907 = vrot.lane.b32.xlu1 %v10045_v32, %s11737_s5  ;;  %2901 = vrot.lane.b32.xlu0 %v2845_v35, %s11700_s30  ;;  %v7724_v13 = vpop.f32.mrb[29].mxu0  ;;  %v2886_v32 = vpop.permute.xlu0 %2885  ;;  %v10461_v35 = vrot.slane %v330_v41, %v3156_v7  ;;  %s11756_s30 = sld [smem:[#allocation18_spill]] }
 0xc19   :  { %v3030_v13 = vld [vmem:[%s11738_s1 + $0x4] sm:$0x7] }
 0xc1c   :  { %3021 = vrot.lane.b32.xlu1 %v9502_v42, %s11736_s6  ;;  %2909 = vrot.lane.b32.xlu0 %v10047_v36, %s11737_s5  ;;  %v2894_v23 = vpop.permute.xlu0 %2893  ;;  %v2916_v36 = vsel %vm2915_vm8, %v2913_v56, %v2860_v43 }
 0xc20   :  { %3023 = vrot.lane.b32.xlu0 %v9507_v45, %s11736_s6 }
 0xc7c   :  { %v2868_v31 = vpop.permute.xlu1 %2867 }
 0xc7d   :  { %v2919_v17 = vsel %vm2918_vm5, %v2916_v36, %v2868_v31 }
 0xc7e   :  { %v2921_v39 = vsel %vm356_vm1, %v2919_v17, %v2876_v29 }
 0xc7f   :  { %v2923_v46 = vsel %vm704_vm7, %v2921_v39, %v2884_v4 }
 0xc80   :  { %v2870_v28 = vpop.permute.xlu0 %2869  ;;  %v2926_v40 = vsel %vm2925_vm9, %v2923_v46, %v2892_v58 }
 0xc81   :  { %v2920_v24 = vsel %vm2918_vm5, %v2917_v3, %v2870_v28 }
 0xc82   :  { %v2922_v12 = vsel %vm356_vm1, %v2920_v24, %v2878_v26 }
 0xc83   :  { %v2924_v20 = vsel %vm704_vm7, %v2922_v12, %v2886_v32 }
 0xc84   :  { %v2927_v19 = vsel %vm2925_vm9, %v2924_v20, %v2894_v23 }
 0xc86   :  { %v2900_v21 = vpop.permute.xlu1 %2899 }
 0xc87   :  { %v2929_v59 = vsel %vm11699_vm10, %v2926_v40, %v2900_v21 }
 0xc8a   :  { %v2908_v1 = vpop.permute.xlu1 %2907  ;;  %v2902_v47 = vpop.permute.xlu0 %2901 }
 0xc8b   :  { %v2931_v52 = vsel %vm125_vm0, %v2929_v59, %v2908_v1  ;;  %v2930_v11 = vsel %vm11699_vm10, %v2927_v19, %v2902_v47  ;;  %vm3188_vm10 = vcmask 1041408  }
 0xc8c   :  { %7747 = vmatprep.mubr.msk.f32.mxu1 %vm11698_vm11, %v2931_v52 }
 0xc8e   :  { %v3022_v27 = vpop.permute.xlu1 %3021  ;;  %v2910_v2 = vpop.permute.xlu0 %2909 }
 0xc8f   :  { %v3027_v16 = vsel %vm356_vm1, %v9502_v42, %v3022_v27  ;;  %v2932_v18 = vsel %vm125_vm0, %v2930_v11, %v2910_v2 }
 0xc90   :  { %v3033_v22 = vrot.slane %v3027_v16, 5  ;;  %7748 = vmatmul.mubr.msk.f32.vlgmr.msra.gmra.mrb[32].mxu1 %vm11698_vm11, %v2932_v18  ;;  %vm3143_vm11 = vcmask 1043456  }
 0xc91   :  { %3570 = vmatprep.mubr.f32.mxu1 %v9185_v14 }
 0xc92   :  { %v3038_v54 = vsel %vm3037_vm12, %v3029_v15, %v3033_v22  ;;  %v3043_v25 = vrot.slane %v3033_v22, 5  ;;  %3442 = vst.msk [vmem:[%s11668_s25] sm:$0x7] %vm3441_vm13, %v3033_v22  ;;  %v3024_v6 = vpop.permute.xlu0 %3023 }
 0xc93   :  { %v3042_v50 = vrot.slane %v3038_v54, 5  ;;  %v3028_v30 = vsel %vm356_vm1, %v9507_v45, %v3024_v6 }
 0xc94   :  { %v3034_v38 = vrot.slane %v3028_v30, 5 }
 0xc95   :  { %v3044_v9 = vsel %vm3037_vm12, %v3042_v50, %v3043_v25  ;;  %v3052_v43 = vsel %vm3037_vm12, 0.0, %v3042_v50 }
 0xc96   :  { %v3066_v29 = vmul.f32 %v3065_v60, %v3052_v43  ;;  %v3067_v26 = vmul.f32 %v3065_v60, %v3044_v9  ;;  %v3089_v4 = vmul.f32 %v3088_v48, %v3052_v43  ;;  %v3090_v32 = vmul.f32 %v3088_v48, %v3044_v9  ;;  %3443 = vst.msk [vmem:[%s11668_s25 + $0x4] sm:$0x7] %vm3441_vm13, %v3034_v38 }
 0xc97   :  { %v3039_v58 = vsel %vm3037_vm12, %v3030_v13, %v3034_v38  ;;  %v3046_v23 = vrot.slane %v3034_v38, 5  ;;  %v3058_v31 = vmul.f32 %v3057_v53, %v3052_v43  ;;  %v3112_v56 = vmul.f32 %v10451_v10, %v3052_v43 }
 0xc98   :  { %v3075_v36 = vrot.slane %v3066_v29, 1  ;;  %v3076_v17 = vrot.slane %v3067_v26, 1  ;;  %v3099_v28 = vrot.slane %v3090_v32, 2  ;;  %v3045_v57 = vrot.slane %v3039_v58, 5 }
 0xc99   :  { %v3098_v3 = vrot.slane %v3089_v4, 2  ;;  %v3113_v39 = vmul.f32 %v10451_v10, %v3044_v9  ;;  %v3121_v24 = vrot.slane %v3112_v56, 3  ;;  %v3135_v46 = vmul.f32 %v10457_v34, %v3052_v43 }
 0xc9a   :  { %v3047_v21 = vsel %vm3037_vm12, %v3045_v57, %v3046_v23  ;;  %v3053_v12 = vsel %vm3037_vm12, 0.0, %v3045_v57  ;;  %v3077_v40 = vsel %vm3074_vm14, %v3075_v36, %v3076_v17  ;;  %v3136_v59 = vmul.f32 %v10457_v34, %v3044_v9 }
 0xc9b   :  { %v3068_v1 = vmul.f32 %v3065_v60, %v3053_v12  ;;  %v3069_v20 = vmul.f32 %v3065_v60, %v3047_v21  ;;  %v3091_v47 = vmul.f32 %v3088_v48, %v3053_v12  ;;  %v3092_v52 = vmul.f32 %v3088_v48, %v3047_v21 }
 0xc9c   :  { %v3083_v19 = vadd.f32 %v3077_v40, %v3058_v31  ;;  %v3100_v41 = vsel %vm3097_vm15, %v3098_v3, %v3099_v28  ;;  %v3122_v11 = vrot.slane %v3113_v39, 3  ;;  %v3144_v27 = vrot.slane %v3135_v46, 4 }
 0xc9d   :  { %v3078_v2 = vrot.slane %v3068_v1, 1  ;;  %v3079_v15 = vrot.slane %v3069_v20, 1  ;;  %v3102_v16 = vrot.slane %v3092_v52, 2  ;;  %v3145_v18 = vrot.slane %v3136_v59, 4 }
 0xc9e   :  { %v3106_v22 = vadd.f32 %v3100_v41, %v3083_v19  ;;  %v3123_v54 = vsel %vm3120_vm6, %v3121_v24, %v3122_v11  ;;  %v3158_v25 = vmul.f32 %v10461_v35, %v3052_v43  ;;  %v3159_v6 = vmul.f32 %v10461_v35, %v3044_v9 }
 0xc9f   :  { %v3146_v60 = vsel %vm3143_vm11, %v3144_v27, %v3145_v18  ;;  %v3180_v48 = vmul.f32 %v10470_v44, %v3052_v43  ;;  %v3181_v50 = vmul.f32 %v10470_v44, %v3044_v9  ;;  %v3059_v30 = vmul.f32 %v3057_v53, %v3053_v12 }
 0xca0   :  { %v3129_v13 = vadd.f32 %v3123_v54, %v3106_v22  ;;  %v3166_v38 = vrot.slane %v3158_v25, 5  ;;  %v3167_v29 = vrot.slane %v3159_v6, 5  ;;  %v3080_v26 = vsel %vm3074_vm14, %v3078_v2, %v3079_v15  ;;  %v334_v25 = vld [vmem:[%s11657_s14 + $0x18] sm:$0xff] }
 0xca1   :  { %v3189_v4 = vrot.slane %v3180_v48, 6  ;;  %v3190_v32 = vrot.slane %v3181_v50, 6  ;;  %v3084_v58 = vadd.f32 %v3080_v26, %v3059_v30  ;;  %v3101_v23 = vrot.slane %v3091_v47, 2 }
 0xca2   :  { %v3152_v31 = vadd.f32 %v3146_v60, %v3129_v13  ;;  %v3168_v56 = vsel %vm3037_vm12, %v3166_v38, %v3167_v29  ;;  %v3114_v36 = vmul.f32 %v10451_v10, %v3053_v12  ;;  %v3115_v17 = vmul.f32 %v10451_v10, %v3047_v21  ;;  %v6751_v60 = vld [vmem:[%s11655_s12] ss:$0 sm:$0xff]  ;;  %s11755_s12 = sld [smem:[#allocation17_spill]] }
 0xca3   :  { %v3191_v43 = vsel %vm3188_vm10, %v3189_v4, %v3190_v32  ;;  %v3103_v53 = vsel %vm3097_vm15, %v3101_v23, %v3102_v16  ;;  %v3137_v9 = vmul.f32 %v10457_v34, %v3053_v12  ;;  %v3138_v28 = vmul.f32 %v10457_v34, %v3047_v21 }
 0xca4   :  { %v3174_v57 = vadd.f32 %v3168_v56, %v3152_v31  ;;  %v3107_v3 = vadd.f32 %v3103_v53, %v3084_v58  ;;  %v3124_v39 = vrot.slane %v3114_v36, 3  ;;  %v3125_v24 = vrot.slane %v3115_v17, 3  ;;  %v336_v56 = vld [vmem:[%s11659_s16] sm:$0xff]  ;;  %v338_v36 = vld [vmem:[%s11659_s16 + $0x10] sm:$0xff]  ;;  %v339_v17 = vld [vmem:[%s11659_s16 + $0x18] sm:$0xff] }
 0xca5   :  { %v3147_v46 = vrot.slane %v3137_v9, 4  ;;  %v3148_v40 = vrot.slane %v3138_v28, 4  ;;  %v3160_v59 = vmul.f32 %v10461_v35, %v3053_v12  ;;  %v3161_v1 = vmul.f32 %v10461_v35, %v3047_v21  ;;  %v341_v9 = vld [vmem:[%s11659_s16 + $0x28] sm:$0xff] }
 0xca6   :  { %v3197_v20 = vadd.f32 %v3191_v43, %v3174_v57  ;;  %v3126_v10 = vsel %vm3120_vm6, %v3124_v39, %v3125_v24  ;;  %v3182_v47 = vmul.f32 %v10470_v44, %v3053_v12  ;;  %v3183_v52 = vmul.f32 %v10470_v44, %v3047_v21  ;;  %v331_v44 = vld [vmem:[%s11657_s14] sm:$0xff]  ;;  %v332_v21 = vld [vmem:[%s11657_s14 + $0x8] sm:$0xff]  ;;  %v333_v12 = vld [vmem:[%s11657_s14 + $0x10] sm:$0xff] }
 0xca7   :  { %v3130_v19 = vadd.f32 %v3126_v10, %v3107_v3  ;;  %v3169_v41 = vrot.slane %v3160_v59, 5  ;;  %v3170_v34 = vrot.slane %v3161_v1, 5  ;;  %v3149_v11 = vsel %vm3143_vm11, %v3147_v46, %v3148_v40  ;;  %v340_v43 = vld [vmem:[%s11659_s16 + $0x20] sm:$0xff]  ;;  %v342_v57 = vld [vmem:[%s11659_s16 + $0x30] sm:$0xff]  ;;  %v343_v3 = vld [vmem:[%s11659_s16 + $0x38] sm:$0xff] }
 0xca8   :  { %3201 = vrot.lane.b32.xlu1 %v3197_v20, %s11739_s29  ;;  %v3192_v27 = vrot.slane %v3182_v47, 6  ;;  %v3193_v2 = vrot.slane %v3183_v52, 6  ;;  %v8432_v54 = vpack.c.bf16 %v332_v21, %v331_v44  ;;  %v8436_v6 = vpack.c.bf16 %v334_v25, %v333_v12  ;;  %v6761_v39 = vld [vmem:[%s11726_s0 + $0x48] sm:$0xff]  ;;  %v6763_v24 = vld [vmem:[%s11726_s0 + $0x58] sm:$0xff]  ;;  %v6760_v46 = vld [vmem:[%s11726_s0 + $0x40] sm:$0xff] }
 0xca9   :  { %v3153_v15 = vadd.f32 %v3149_v11, %v3130_v19  ;;  %v3171_v16 = vsel %vm3037_vm12, %v3169_v41, %v3170_v34  ;;  %v8444_v53 = vpack.c.bf16 %v339_v17, %v338_v36  ;;  %v8448_v28 = vpack.c.bf16 %v341_v9, %v340_v43  ;;  %v6762_v59 = vld [vmem:[%s11726_s0 + $0x50] sm:$0xff]  ;;  %v6754_v10 = vld [vmem:[%s11658_s15] ss:$0 sm:$0xff]  ;;  %v10632_v9 = vld [vmem:[%s11728_s26 + $0x68] sm:$0xff] }
 0xcaa   :  { %v3194_v18 = vsel %vm3188_vm10, %v3192_v27, %v3193_v2  ;;  %8433 = vmatprep.subr.bf16.mxu0 %v8432_v54  ;;  %v8456_v40 = vpack.c.bf16 %v6763_v24, %v6761_v39  ;;  %v8452_v1 = vpack.c.bf16 %v343_v3, %v342_v57  ;;  %v10620_v43 = vld [vmem:[%s11728_s26 + $0x60] sm:$0xff]  ;;  %v10642_v57 = vld [vmem:[%s11728_s26 + $0x58] sm:$0xff]  ;;  %6911 = vst.msk [vmem:[%s11664_s21 + $0x60] sm:$0xff] %vm356_vm1, %v10632_v9  ;;  %v10664_v39 = vld [vmem:[%s11728_s26 + $0x70] sm:$0xff] }
 0xcab   :  { %v3175_v35 = vadd.f32 %v3171_v16, %v3153_v15  ;;  %8435 = vmatpush3.bf16.msra.mxu0 %v8432_v54  ;;  %v8473_v3 = vpack.c.bf16 %v10632_v9, %v10620_v43  ;;  %6909 = vst.msk [vmem:[%s11664_s21 + $0x50] sm:$0xff] %vm356_vm1, %v10642_v57  ;;  %v10669_v24 = vld [vmem:[%s11728_s26 + $0x78] sm:$0xff]  ;;  %6912 = vst.msk [vmem:[%s11664_s21 + $0x68] sm:$0xff] %vm356_vm1, %v10664_v39 }
 0xcac   :  { %8437 = vmatprep.subr.bf16.mxu0 %v8436_v6  ;;  %8457 = vmatprep.subr.bf16.mxu1 %v8456_v40  ;;  %6913 = vst.msk [vmem:[%s11664_s21 + $0x70] sm:$0xff] %vm356_vm1, %v10669_v24  ;;  %v8477_v40 = vpack.c.bf16 %v10669_v24, %v10664_v39 }
 0xcad   :  { %v3198_v22 = vadd.f32 %v3194_v18, %v3175_v35 }
 0xcaf   :  { %3203 = vrot.lane.b32.xlu0 %v3198_v22, %s11739_s29  ;;  %8439 = vmatpush3.bf16.msra.mxu0 %v8436_v6 }
 0xd1a   :  { %v3202_v50 = vpop.permute.xlu1 %3201 }
 0xd1b   :  { %v3207_v4 = vadd.f32 %v3202_v50, %v3197_v20  ;;  %v8458_v20 = vpack.c.bf16 %v6762_v59, %v6760_v46  ;;  %v6768_v59 = vld [vmem:[%s11653_s10 + $0x2] sm:$0x3]  ;;  %s11746_s10 = smov 24  }
 0xd1d   :  { %8459 = vmatpush1.bf16.msra.mxu1 %v8458_v20  ;;  %v3497_v20 = vrot.slane %v6768_v59, %v9622_v0 }
 0xd21   :  { %v3204_v38 = vpop.permute.xlu0 %3203 }
 0xd22   :  { %v3208_v58 = vadd.f32 %v3204_v38, %v3198_v22  ;;  %v6764_v38 = vld [vmem:[%s11726_s0 + $0x60] sm:$0xff] }
 0xd63   :  { %v7749_v48 = vpop.f32.mrb[32].mxu1 }
 0xd64   :  { %v3018_v30 = vadd.f32 %v7749_v48, %v6751_v60  ;;  %v3012_v13 = vpop.f32.mrb[33].mxu1 }
 0xd65   :  { %v3013_v29 = vadd.f32 %v6751_v60, %v3012_v13  ;;  %v6767_v13 = vld [vmem:[%s11726_s0 + $0x78] sm:$0xff] }
 0xd66   :  { %v3210_v26 = vadd.f32 %v3018_v30, %v9507_v45  ;;  %v337_v45 = vld [vmem:[%s11659_s16 + $0x8] sm:$0xff] }
 0xd67   :  { %v3209_v32 = vadd.f32 %v3013_v29, %v9502_v42  ;;  %v8440_v42 = vpack.c.bf16 %v337_v45, %v336_v56  ;;  %v6765_v30 = vld [vmem:[%s11726_s0 + $0x68] sm:$0xff] }
 0xd68   :  { %v10528_v31 = vadd.f32 %v3210_v26, %v3208_v58  ;;  %v8460_v29 = vpack.c.bf16 %v6767_v13, %v6765_v30  ;;  %v6766_v26 = vld [vmem:[%s11726_s0 + $0x70] sm:$0xff]  ;;  %v6759_v58 = vld [vmem:[%s11660_s17] ss:$0 sm:$0xff] }
 0xd69   :  { %v10526_v23 = vadd.f32 %v3209_v32, %v3207_v4  ;;  %8441 = vmatprep.subr.bf16.mxu0 %v8440_v42  ;;  %v8462_v4 = vpack.c.bf16 %v6766_v26, %v6764_v38  ;;  %v10779_v38 = vld [vmem:[%s11732_s27 + $0x70] sm:$0xff] }
 0xd6a   :  { %8461 = vmatprep.subr.bf16.mxu1 %v8460_v29  ;;  %v10784_v29 = vld [vmem:[%s11732_s27 + $0x78] sm:$0xff]  ;;  %6928 = vst.msk [vmem:[%s11666_s23 + $0x68] sm:$0xff] %vm356_vm1, %v10779_v38 }
 0xd6b   :  { %7758 = vmatprep.mubr.msk.f32.mxu0 %vm356_vm1, %v10526_v23  ;;  %8463 = vmatpush1.bf16.msra.mxu1 %v8462_v4  ;;  %v8490_v26 = vpack.c.bf16 %v10784_v29, %v10779_v38  ;;  %6929 = vst.msk [vmem:[%s11666_s23 + $0x70] sm:$0xff] %vm356_vm1, %v10784_v29  ;;  %v10802_v4 = vld [vmem:[%s11732_s27 + $0x40] sm:$0xff] }
 0xd6c   :  { %7759 = vmatmul.mubr.msk.f32.vlgmr.msra.gmra.mrb[30].mxu0 %vm356_vm1, %v10528_v31  ;;  %8464 = vmatprep.subr.bf16.mxu1 %v9186_v49 }
 0xd6d   :  { %8443 = vmatpush3.bf16.msra.mxu0 %v8440_v42 }
 0xd6e   :  { %8445 = vmatprep.subr.bf16.mxu0 %v8444_v53 }
 0xd71   :  { %8447 = vmatpush3.bf16.msra.mxu0 %v8444_v53 }
 0xd72   :  { %8449 = vmatprep.subr.bf16.mxu0 %v8448_v28 }
 0xd75   :  { %8451 = vmatpush3.bf16.msra.mxu0 %v8448_v28  ;;  %v10637_v28 = vld [vmem:[%s11728_s26 + $0x50] sm:$0xff] }
 0xd76   :  { %8453 = vmatprep.subr.bf16.mxu0 %v8452_v1  ;;  %6908 = vst.msk [vmem:[%s11664_s21 + $0x48] sm:$0xff] %vm356_vm1, %v10637_v28  ;;  %v8469_v46 = vpack.c.bf16 %v10642_v57, %v10637_v28 }
 0xd79   :  { %8455 = vmatpush3.bf16.msra.mxu0 %v8452_v1  ;;  %v3493_v1 = vrot.slane %v6768_v59, %v9616_v62 }
 0xd7a   :  { %8472 = vmatprep.subr.bf16.mxu0 %v9186_v49 }
 0xe3f   :  { %v7760_v47 = vpop.f32.mrb[30].mxu0 }
 0xe40   :  { %v3297_v52 = vadd.f32 %v7760_v47, %v6754_v10  ;;  %v3291_v19 = vpop.f32.mrb[31].mxu0 }
 0xe41   :  { %v3292_v41 = vadd.f32 %v6754_v10, %v3291_v19 }
 0xe42   :  { %v3301_v34 = vmul.f32 %v3297_v52, %v3297_v52 }
 0xe43   :  { %v3300_v11 = vmul.f32 %v3292_v41, %v3292_v41 }
 0xe44   :  { %v3303_v27 = vmul.f32 %v3301_v34, %v3297_v52 }
 0xe45   :  { %v3302_v2 = vmul.f32 %v3300_v11, %v3292_v41 }
 0xe46   :  { %v3305_v15 = vmul.f32 0.044715, %v3303_v27 }
 0xe47   :  { %v3304_v16 = vmul.f32 0.044715, %v3302_v2 }
 0xe48   :  { %v3307_v35 = vadd.f32 %v3305_v15, %v3297_v52 }
 0xe49   :  { %v3306_v18 = vadd.f32 %v3304_v16, %v3292_v41 }
 0xe4a   :  { %v3309_v22 = vmul.f32 0.7978846, %v3307_v35 }
 0xe4b   :  { %v3308_v44 = vmul.f32 0.7978846, %v3306_v18  ;;  %v10755_v18 = vld [vmem:[%s11732_s27 + $0x60] sm:$0xff] }
 0xe4c   :  { %9109 = vtanh.f32 %v3309_v22  ;;  %v10760_v22 = vld [vmem:[%s11732_s27 + $0x68] sm:$0xff] }
 0xe4d   :  { %9111 = vtanh.f32 %v3308_v44  ;;  %v8487_v44 = vpack.c.bf16 %v10760_v22, %v10755_v18  ;;  %6927 = vst.msk [vmem:[%s11666_s23 + $0x60] sm:$0xff] %vm356_vm1, %v10760_v22 }
 0xe56   :  { %v9110_v21 = vpop.eup %9109 }
 0xe57   :  { %v9112_v12 = vpop.eup %9111  ;;  %v3313_v54 = vadd.f32 1.0, %v9110_v21 }
 0xe58   :  { %v3312_v25 = vadd.f32 1.0, %v9112_v12 }
 0xe59   :  { %v3315_v6 = vmul.f32 0.5, %v3313_v54 }
 0xe5a   :  { %v3314_v60 = vmul.f32 0.5, %v3312_v25 }
 0xe5b   :  { %v3317_v50 = vmul.f32 %v3315_v6, %v3297_v52 }
 0xe5c   :  { %v3316_v48 = vmul.f32 %v3314_v60, %v3292_v41 }
 0xe5e   :  { %7777 = vmatprep.mubr.msk.f32.mxu0 %vm125_vm0, %v3316_v48 }
 0xe5f   :  { %7778 = vmatmul.mubr.msk.f32.vlgmr.msra.gmra.mrb[32].mxu0 %vm125_vm0, %v3317_v50 }
 0xe60   :  { %7803 = vmatprep.mubr.msk.f32.mxu0 %vm9187_vm4, %v9185_v14  ;;  %8475 = vmatpush3.bf16.xpose.msk.msra.mxu0 %vm9531_vm3, %v8473_v3 }
 0xe61   :  { %8476 = vmatprep.subr.bf16.mxu0 %v9186_v49 }
 0xe68   :  { %8479 = vmatpush3.bf16.xpose.msk.msra.mxu0 %vm9531_vm3, %v8477_v40 }
 0xe69   :  { %7801 = vmatprep.subr.mxu0 %v9185_v14 }
 0xf32   :  { %v7779_v32 = vpop.f32.mrb[32].mxu0 }
 0xf33   :  { %v3390_v56 = vpop.f32.mrb[33].mxu0  ;;  %v3400_v42 = vadd.f32 %v7779_v32, %v10528_v31  ;;  %v10615_v31 = vld [vmem:[%s11728_s26 + $0x48] sm:$0xff] }
 0xf34   :  { %v3399_v45 = vadd.f32 %v3390_v56, %v10526_v23  ;;  %v10610_v23 = vld [vmem:[%s11728_s26 + $0x40] sm:$0xff]  ;;  %6907 = vst.msk [vmem:[%s11664_s21 + $0x40] sm:$0xff] %vm356_vm1, %v10615_v31  ;;  %v10807_v32 = vld [vmem:[%s11732_s27 + $0x48] sm:$0xff] }
 0xf35   :  { %v10601_v17 = vadd.f32 %v6759_v58, %v3400_v42  ;;  %v8465_v53 = vpack.c.bf16 %v10615_v31, %v10610_v23  ;;  %6923 = vst.msk [vmem:[%s11666_s23 + $0x40] sm:$0xff] %vm356_vm1, %v10807_v32 }
 0xf36   :  { %v10596_v36 = vadd.f32 %v6759_v58, %v3399_v45  ;;  %v8481_v58 = vpack.c.bf16 %v10807_v32, %v10802_v4 }
 0xf38   :  { %6796 = vmatmul.mubr.msk.f32.vlgmr.msra.gmra.mrb[34].mxu1 %vm356_vm1, %v10596_v36 }
 0xf39   :  { %3576 = vmatprep.mubr.f32.mxu1 %v9185_v14  ;;  %8467 = vmatpush3.bf16.xpose.msk.msra.mxu1 %vm9531_vm3, %v8465_v53 }
 0xf3a   :  { %8468 = vmatprep.subr.bf16.mxu1 %v9186_v49 }
 0xf3c   :  { %6797 = vmatmul.mubr.msk.f32.gmra.mrb[36].mxu1 %vm356_vm1, %v10601_v17 }
 0xf3d   :  { %7790 = vmatprep.mubr.msk.f32.mxu1 %vm9187_vm4, %v9185_v14 }
 0xf41   :  { %8471 = vmatpush3.bf16.xpose.msk.msra.mxu1 %vm9531_vm3, %v8469_v46 }
 0xf42   :  { %7788 = vmatprep.subr.mxu1 %v9185_v14 }
0x100b   :  { %v3572_v10 = vpop.f32.mrb[34].mxu1 }
0x100c   :  { %v10702_v47 = vadd.f32 %v3572_v10, %v3493_v1  ;;  %v3574_v52 = vpop.f32.mrb[35].mxu1 }
0x100d   :  { %v3575_v19 = vadd.f32 %v3574_v52, %v3497_v20  ;;  %v10838_v52 = vpack.i.bf16 %v10615_v31, %v10610_v23  ;;  %v10868_v23 = vpack.i.bf16 %v10642_v57, %v10637_v28  ;;  %v10888_v28 = vpack.i.bf16 %v10669_v24, %v10664_v39  ;;  %v10903_v57 = vld [vmem:[%s11733_s4 + $0x58] sm:$0xff]  ;;  %v10920_v39 = vld [vmem:[%s11733_s4 + $0x68] sm:$0xff]  ;;  %v10932_v24 = vld [vmem:[%s11733_s4 + $0x70] sm:$0xff] }
0x100e   :  { %3596 = vrot.lane.b32.xlu1 %v10702_v47, %s11739_s29  ;;  %6933 = vst.msk [vmem:[%s11667_s24 + $0x50] sm:$0xff] %vm356_vm1, %v10903_v57  ;;  %6935 = vst.msk [vmem:[%s11667_s24 + $0x60] sm:$0xff] %vm356_vm1, %v10920_v39 }
0x100f   :  { %9113 = vtanh.f32 %v3575_v19  ;;  %v3578_v41 = vpop.f32.mrb[36].mxu1  ;;  %v10845_v19 = vld [vmem:[%s11732_s27 + $0x50] sm:$0xff]  ;;  %6936 = vst.msk [vmem:[%s11667_s24 + $0x68] sm:$0xff] %vm356_vm1, %v10932_v24 }
0x1010   :  { %v10706_v34 = vadd.f32 %v3578_v41, %v3493_v1  ;;  %v3580_v11 = vpop.f32.mrb[37].mxu1  ;;  %v10850_v41 = vld [vmem:[%s11732_s27 + $0x58] sm:$0xff]  ;;  %6924 = vst.msk [vmem:[%s11666_s23 + $0x48] sm:$0xff] %vm356_vm1, %v10845_v19 }
0x1011   :  { %v3581_v27 = vadd.f32 %v3580_v11, %v3497_v20  ;;  %v8484_v11 = vpack.c.bf16 %v10850_v41, %v10845_v19  ;;  %6925 = vst.msk [vmem:[%s11666_s23 + $0x50] sm:$0xff] %vm356_vm1, %v10850_v41 }
0x1012   :  { %3598 = vrot.lane.b32.xlu0 %v10706_v34, %s11739_s29 }
0x1013   :  { %9115 = vtanh.f32 %v3581_v27  ;;  %v10874_v27 = vpack.i.bf16 %v10632_v9, %v10620_v43  ;;  %v10898_v43 = vld [vmem:[%s11733_s4 + $0x50] sm:$0xff] }
0x1014   :  { %6932 = vst.msk [vmem:[%s11667_s24 + $0x48] sm:$0xff] %vm356_vm1, %v10898_v43 }
0x1019   :  { %v10710_v2 = vpop.eup %9113 }
0x101a   :  { %6918 = vst.msk [vmem:[%s11665_s22 + $0x58] sm:$0xff] %vm2918_vm5, %v10710_v2 }
0x101d   :  { %v10717_v15 = vpop.eup %9115 }
0x101e   :  { %6922 = vst.msk [vmem:[%s11665_s22 + $0x78] sm:$0xff] %vm2918_vm5, %v10717_v15 }
0x1080   :  { %v10724_v16 = vpop.permute.xlu1 %3596 }
0x1081   :  { %6910 = vst.msk [vmem:[%s11664_s21 + $0x58] sm:$0xff] %vm356_vm1, %v10724_v16  ;;  %7789 = vmatpush3.xpose.msk.msra.mxu1 %vm494_vm2, %v10724_v16 }
0x1082   :  { %8480 = vmatprep.subr.bf16.mxu1 %v9186_v49 }
0x1084   :  { %v10734_v35 = vpop.permute.xlu0 %3598  ;;  %7791 = vmatmul.mubr.msk.f32.vlgmr.msra.gmra.mrb[38].mxu1 %vm494_vm2, %v10702_v47 }
0x1085   :  { %6914 = vst.msk [vmem:[%s11664_s21 + $0x78] sm:$0xff] %vm356_vm1, %v10734_v35  ;;  %7802 = vmatpush3.xpose.msk.msra.mxu0 %vm494_vm2, %v10734_v35  ;;  %7816 = vmatprep.mubr.msk.f32.mxu1 %vm9187_vm4, %v9185_v14 }
0x1086   :  { %8486 = vmatprep.subr.bf16.mxu0 %v9186_v49  ;;  %8482 = vmatpush3.bf16.msra.mxu1 %v8481_v58 }
0x1087   :  { %8483 = vmatprep.subr.bf16.mxu1 %v9186_v49 }
0x1088   :  { %7804 = vmatmul.mubr.msk.f32.vlgmr.msra.gmra.mrb[34].mxu0 %vm494_vm2, %v10706_v34 }
0x1089   :  { %7829 = vmatprep.mubr.msk.f32.mxu0 %vm9187_vm4, %v9185_v14  ;;  %8488 = vmatpush3.bf16.msra.mxu0 %v8487_v44  ;;  %v10882_v44 = vld [vmem:[%s11733_s4 + $0x48] sm:$0xff] }
0x108a   :  { %8489 = vmatprep.subr.bf16.mxu0 %v9186_v49  ;;  %8485 = vmatpush3.bf16.msra.mxu1 %v8484_v11  ;;  %6931 = vst.msk [vmem:[%s11667_s24 + $0x40] sm:$0xff] %vm356_vm1, %v10882_v44  ;;  %v8496_v11 = vpack.c.bf16 %v10903_v57, %v10898_v43 }
0x108b   :  { %7814 = vmatprep.subr.mxu1 %v9185_v14 }
0x108d   :  { %8491 = vmatpush3.bf16.msra.mxu0 %v8490_v26 }
0x108e   :  { %7827 = vmatprep.subr.mxu0 %v9185_v14 }
0x1157   :  { %v3723_v21 = vpop.f32.mrb[38].mxu1 }
0x1158   :  { %v3813_v12 = vmul.f32 0.35355338, %v3723_v21  ;;  %v7792_v54 = vpop.f32.mrb[39].mxu1  ;;  %v10937_v21 = vld [vmem:[%s11733_s4 + $0x78] sm:$0xff] }
0x1159   :  { %6937 = vst.msk [vmem:[%s11667_s24 + $0x70] sm:$0xff] %vm356_vm1, %v10937_v21  ;;  %v6824_v54 = vld [vmem:[%s11734_s2 + $0x50] sm:$0xff] }
0x115a   :  { %v3815_v25 = vadd.f32 %v3813_v12, %v9700_v33  ;;  %v6823_v12 = vld [vmem:[%s11734_s2 + $0x48] sm:$0xff]  ;;  %6916 = vst.msk [vmem:[%s11665_s22 + $0x48] sm:$0xff] %vm2918_vm5, %v6824_v54 }
0x115b   :  { %v3809_v6 = vpop.f32.mrb[34].mxu0  ;;  %6915 = vst.msk [vmem:[%s11665_s22 + $0x40] sm:$0xff] %vm2918_vm5, %v6823_v12 }
0x115c   :  { %v3814_v60 = vmul.f32 0.35355338, %v3809_v6  ;;  %v7805_v48 = vpop.f32.mrb[35].mxu0  ;;  %v3817_v50 = vsel %vm704_vm7, %v3815_v25, -inf }
0x115d   :  { %3818 = vmax.xlane.f32.xlu1 %v3817_v50  ;;  %v6828_v48 = vld [vmem:[%s11734_s2 + $0x70] sm:$0xff]  ;;  %v6829_v50 = vld [vmem:[%s11734_s2 + $0x78] sm:$0xff] }
0x115e   :  { %v3816_v30 = vadd.f32 %v3814_v60, %v9703_v37  ;;  %v6827_v60 = vld [vmem:[%s11734_s2 + $0x68] sm:$0xff]  ;;  %6920 = vst.msk [vmem:[%s11665_s22 + $0x68] sm:$0xff] %vm2918_vm5, %v6828_v48  ;;  %6921 = vst.msk [vmem:[%s11665_s22 + $0x70] sm:$0xff] %vm2918_vm5, %v6829_v50 }
0x115f   :  { %6919 = vst.msk [vmem:[%s11665_s22 + $0x60] sm:$0xff] %vm2918_vm5, %v6827_v60 }
0x1160   :  { %v3820_v13 = vsel %vm704_vm7, %v3816_v30, -inf }
0x1161   :  { %3821 = vmax.xlane.f32.xlu0 %v3820_v13 }
0x116e   :  { %3613 = vrot.lane.b32.xlu1 %v10706_v34, %s11737_s5 }
0x11ea   :  { %v3819_v56 = vpop.xlane.xlu1 %3818 }
0x11eb   :  { %v3823_v45 = vsub.f32 %v3815_v25, %v3819_v56  ;;  %v6825_v25 = vld [vmem:[%s11734_s2 + $0x58] sm:$0xff] }
0x11ec   :  { %v8508_v6 = vpack.c.bf16 %v6825_v25, %v6824_v54  ;;  %6917 = vst.msk [vmem:[%s11665_s22 + $0x50] sm:$0xff] %vm2918_vm5, %v6825_v25  ;;  %v6822_v25 = vld [vmem:[%s11734_s2 + $0x40] sm:$0xff] }
0x11ed   :  { %v3825_v42 = vmul.f32 1.442695, %v3823_v45 }
0x11ee   :  { %v3822_v53 = vpop.xlane.xlu0 %3821  ;;  %v10817_v3 = vpop.permute.xlu1 %3613 }
0x11ef   :  { %9117 = vpow2.f32 %v3825_v42  ;;  %v3824_v46 = vsub.f32 %v3816_v30, %v3822_v53  ;;  %6930 = vst.msk [vmem:[%s11666_s23 + $0x78] sm:$0xff] %vm356_vm1, %v10817_v3  ;;  %7828 = vmatpush3.msra.mxu0 %v10817_v3  ;;  %v8514_v30 = vpack.c.bf16 %v6829_v50, %v6828_v48  ;;  %v11013_v42 = vld [vmem:[%s11733_s4 + $0x40] sm:$0xff]  ;;  %v8502_v48 = vpack.c.bf16 %v10937_v21, %v10932_v24 }
0x11f0   :  { %8498 = vmatprep.subr.bf16.mxu0 %v9186_v49  ;;  %v8505_v50 = vpack.c.bf16 %v6823_v12, %v6822_v25 }
0x11f1   :  { %v3827_v40 = vmul.f32 1.442695, %v3824_v46  ;;  %v8493_v46 = vpack.c.bf16 %v10882_v44, %v11013_v42 }
0x11f3   :  { %9119 = vpow2.f32 %v3827_v40 }
0x11f9   :  { %v10826_v59 = vpop.eup %9117 }
0x11fa   :  { %v3829_v1 = vsel %vm704_vm7, %v10826_v59, 0.0 }
0x11fb   :  { %3830 = vadd.xlane.f32.xlu0 %v3829_v1  ;;  %v11031_v1 = vld [vmem:[%s11733_s4 + $0x60] sm:$0xff] }
0x11fc   :  { %v8499_v54 = vpack.c.bf16 %v10920_v39, %v11031_v1 }
0x11fd   :  { %v10830_v20 = vpop.eup %9119 }
0x11fe   :  { %v3832_v10 = vsel %vm704_vm7, %v10830_v20, 0.0 }
0x11ff   :  { %3833 = vadd.xlane.f32.xlu1 %v3832_v10 }
0x1210   :  { %3626 = vrot.lane.b32.xlu1 %v10702_v47, %s11736_s6 }
0x1211   :  { %3611 = vrot.lane.b32.xlu0 %v10702_v47, %s11737_s5 }
0x1214   :  { %8889 = vrot.lane.b32.xlu1 %v10838_v52, %s11735_s3 }
0x1215   :  { %3628 = vrot.lane.b32.xlu0 %v10706_v34, %s11736_s6 }
0x1218   :  { %8899 = vrot.lane.b32.xlu1 %v10868_v23, %s11735_s3 }
0x1219   :  { %8894 = vrot.lane.b32.xlu0 %v10874_v27, %s11735_s3 }
0x121c   :  { %4275 = vrot.lane.b32.xlu1 %v10724_v16, %s11735_s3 }
0x121d   :  { %8904 = vrot.lane.b32.xlu0 %v10888_v28, %s11735_s3 }
0x1220   :  { %4265 = vrot.lane.b32.xlu1 %v10702_v47, %s11735_s3 }
0x1221   :  { %4369 = vrot.lane.b32.xlu0 %v10734_v35, %s11735_s3 }
0x1225   :  { %4359 = vrot.lane.b32.xlu0 %v10706_v34, %s11735_s3 }
0x1288   :  { %v3831_v13 = vpop.xlane.xlu0 %3830 }
0x1289   :  { %9121 = vrcp.f32 %v3831_v13 }
0x128c   :  { %v10997_v26 = vpop.permute.xlu0 %3611  ;;  %v3834_v58 = vpop.xlane.xlu1 %3833 }
0x128d   :  { %6926 = vst.msk [vmem:[%s11666_s23 + $0x58] sm:$0xff] %vm356_vm1, %v10997_v26  ;;  %9123 = vrcp.f32 %v3834_v58  ;;  %7815 = vmatpush3.msra.mxu1 %v10997_v26  ;;  %s11745_s23 = smov 48  }
0x128e   :  { %8492 = vmatprep.subr.bf16.mxu1 %v9186_v49 }
0x1290   :  { %v11006_v56 = vpop.permute.xlu0 %3628  ;;  %v11008_v45 = vpop.permute.xlu1 %3626 }
0x1291   :  { %6938 = vst.msk [vmem:[%s11667_s24 + $0x78] sm:$0xff] %vm356_vm1, %v11006_v56  ;;  %6934 = vst.msk [vmem:[%s11667_s24 + $0x58] sm:$0xff] %vm356_vm1, %v11008_v45  ;;  %s11747_s24 = smov 56  }
0x1293   :  { %v9122_v53 = vpop.eup %9121 }
0x1294   :  { %v3836_v40 = vmul.f32 %v9122_v53, %v10826_v59  ;;  %v8890_v12 = vpop.permute.xlu1 %8889  ;;  %v8895_v53 = vpop.permute.xlu0 %8894 }
0x1295   :  { %v8891_v58 = vunpack.i.l.bf16 %v8890_v12 }
0x1296   :  { %7817 = vmatmul.mubr.msk.f32.vlgmr.msra.gmra.mrb[40].mxu1 %vm704_vm7, %v3836_v40 }
0x1297   :  { %v9124_v10 = vpop.eup %9123  ;;  %8494 = vmatpush3.bf16.msra.mxu1 %v8493_v46  ;;  %7842 = vmatprep.mubr.msk.f32.mxu1 %vm9187_vm4, %v9185_v14  ;;  %v8896_v46 = vunpack.i.l.bf16 %v8895_v53 }
0x1298   :  { %v3838_v59 = vmul.f32 %v9124_v10, %v10830_v20  ;;  %8495 = vmatprep.subr.bf16.mxu1 %v9186_v49  ;;  %v6826_v20 = vld [vmem:[%s11734_s2 + $0x60] sm:$0xff]  ;;  %s11740_s2 = smov 112  }
0x1299   :  { %v8511_v13 = vpack.c.bf16 %v6827_v60, %v6826_v20  ;;  %v8892_v60 = vunpack.i.h.bf16 %v8890_v12 }
0x129a   :  { %7830 = vmatmul.mubr.msk.f32.vlgmr.msra.gmra.mrb[36].mxu0 %vm704_vm7, %v3838_v59 }
0x129b   :  { %8497 = vmatpush3.bf16.msra.mxu1 %v8496_v11  ;;  %8500 = vmatpush3.bf16.msra.mxu0 %v8499_v54  ;;  %v8517_v10 = vpack.c.bf16 %v8892_v60, %v8891_v58  ;;  %v8905_v54 = vpop.permute.xlu0 %8904 }
0x129c   :  { %7840 = vmatprep.subr.mxu1 %v9185_v14  ;;  %8501 = vmatprep.subr.bf16.mxu0 %v9186_v49  ;;  %v8907_v25 = vunpack.i.h.bf16 %v8905_v54 }
0x129d   :  { %7855 = vmatprep.mubr.msk.f32.mxu0 %vm9187_vm4, %v9185_v14 }
0x129f   :  { %7841 = vmatpush3.msra.mxu1 %v11008_v45  ;;  %8503 = vmatpush3.bf16.msra.mxu0 %v8502_v48  ;;  %v8906_v48 = vunpack.i.l.bf16 %v8905_v54  ;;  %v4370_v20 = vpop.permute.xlu0 %4369 }
0x12a0   :  { %7843 = vmatmul.mubr.msk.f32.vlgmr.msra.gmra.mrb[42].mxu1 %vm704_vm7, %v3836_v40  ;;  %8504 = vmatprep.subr.bf16.mxu1 %v9186_v49 }
0x12a1   :  { %8506 = vmatpush3.bf16.msra.mxu1 %v8505_v50  ;;  %7853 = vmatprep.subr.mxu0 %v9185_v14 }
0x12a2   :  { %8507 = vmatprep.subr.bf16.mxu1 %v9186_v49  ;;  %7868 = vmatprep.mubr.msk.f32.mxu1 %vm9187_vm4, %v9185_v14 }
0x12a3   :  { %7854 = vmatpush3.msra.mxu0 %v11006_v56  ;;  %v4360_v12 = vpop.permute.xlu0 %4359 }
0x12a4   :  { %7856 = vmatmul.mubr.msk.f32.vlgmr.msra.gmra.mrb[38].mxu0 %vm704_vm7, %v3838_v59  ;;  %8510 = vmatprep.subr.bf16.mxu0 %v9186_v49 }
0x12a5   :  { %8509 = vmatpush3.bf16.msra.mxu1 %v8508_v6  ;;  %8512 = vmatpush3.bf16.msra.mxu0 %v8511_v13  ;;  %v8897_v6 = vunpack.i.h.bf16 %v8895_v53 }
0x12a6   :  { %7866 = vmatprep.subr.mxu1 %v9185_v14  ;;  %8513 = vmatprep.subr.bf16.mxu0 %v9186_v49 }
0x12a7   :  { %7881 = vmatprep.mubr.msk.f32.mxu0 %vm9187_vm4, %v9185_v14 }
0x12a9   :  { %7867 = vmatpush3.msra.mxu1 %v10710_v2  ;;  %8515 = vmatpush3.bf16.msra.mxu0 %v8514_v30  ;;  %v8900_v2 = vpop.permute.xlu1 %8899  ;;  %v8525_v30 = vpack.c.bf16 %v8897_v6, %v8896_v46 }
0x12aa   :  { %7869 = vmatmul.mubr.msk.f32.vlgmr.msra.gmra.mrb[44].mxu1 %vm704_vm7, %v3836_v40  ;;  %7879 = vmatprep.subr.mxu0 %v9185_v14  ;;  %v8902_v40 = vunpack.i.h.bf16 %v8900_v2  ;;  %v8901_v11 = vunpack.i.l.bf16 %v8900_v2 }
0x12ab   :  { %8516 = vmatprep.subr.bf16.mxu1 %v9186_v49  ;;  %7894 = vmatprep.mubr.msk.f32.mxu1 %vm9187_vm4, %v9185_v14 }
0x12ad   :  { %7880 = vmatpush3.msra.mxu0 %v10717_v15  ;;  %v8521_v15 = vpack.c.bf16 %v8902_v40, %v8901_v11  ;;  %v4276_v50 = vpop.permute.xlu1 %4275 }
0x12ae   :  { %7882 = vmatmul.mubr.msk.f32.vlgmr.msra.gmra.mrb[40].mxu0 %vm704_vm7, %v3838_v59  ;;  %8524 = vmatprep.subr.bf16.mxu0 %v9186_v49  ;;  %v8529_v59 = vpack.c.bf16 %v8907_v25, %v8906_v48 }
0x12af   :  { %7907 = vmatprep.mubr.msk.f32.mxu0 %vm9187_vm4, %v9185_v14 }
0x12b0   :  { %8519 = vmatpush3.bf16.xpose.msk.msra.mxu1 %vm9531_vm3, %v8517_v10 }
0x12b1   :  { %8520 = vmatprep.subr.bf16.mxu1 %v9186_v49  ;;  %v4266_v13 = vpop.permute.xlu1 %4265 }
0x12b4   :  { %8527 = vmatpush3.bf16.xpose.msk.msra.mxu0 %vm9531_vm3, %v8525_v30 }
0x12b5   :  { %8528 = vmatprep.subr.bf16.mxu0 %v9186_v49 }
0x12b8   :  { %8523 = vmatpush3.bf16.xpose.msk.msra.mxu1 %vm9531_vm3, %v8521_v15 }
0x12b9   :  { %7892 = vmatprep.subr.mxu1 %v9185_v14 }
0x12bc   :  { %8531 = vmatpush3.bf16.xpose.msk.msra.mxu0 %vm9531_vm3, %v8529_v59 }
0x12bd   :  { %7905 = vmatprep.subr.mxu0 %v9185_v14 }
0x12c0   :  { %7893 = vmatpush3.xpose.msk.msra.mxu1 %vm494_vm2, %v4276_v50 }
0x12c1   :  { %8532 = vmatprep.subr.bf16.mxu1 %v9186_v49 }
0x12c3   :  { %7895 = vmatmul.mubr.msk.f32.vlgmr.msra.gmra.mrb[46].mxu1 %vm494_vm2, %v4266_v13 }
0x12c4   :  { %7906 = vmatpush3.xpose.msk.msra.mxu0 %vm494_vm2, %v4370_v20  ;;  %7920 = vmatprep.mubr.msk.f32.mxu1 %vm9187_vm4, %v9185_v14 }
0x12c5   :  { %8538 = vmatprep.subr.bf16.mxu0 %v9186_v49 }
0x12c7   :  { %7908 = vmatmul.mubr.msk.f32.vlgmr.msra.gmra.mrb[42].mxu0 %vm494_vm2, %v4360_v12 }
0x12c8   :  { %7933 = vmatprep.mubr.msk.f32.mxu0 %vm9187_vm4, %v9185_v14 }
0x1369   :  { %v11102_v60 = vpop.f32.mrb[40].mxu1 }
0x136a   :  { %v7818_v58 = vpop.f32.mrb[41].mxu1 }
0x136d   :  { %v11104_v53 = vpop.f32.mrb[36].mxu0 }
0x136e   :  { %v7831_v6 = vpop.f32.mrb[37].mxu0 }
0x1373   :  { %v11106_v46 = vpop.f32.mrb[42].mxu1 }
0x1374   :  { %v7844_v10 = vpop.f32.mrb[43].mxu1 }
0x1377   :  { %v11108_v2 = vpop.f32.mrb[38].mxu0 }
0x1378   :  { %v7857_v30 = vpop.f32.mrb[39].mxu0 }
0x1379   :  { %v11120_v30 = vpack.i.bf16 %v10760_v22, %v10755_v18  ;;  %v11140_v18 = vpack.i.bf16 %v10784_v29, %v10779_v38  ;;  %v11160_v38 = vpack.i.bf16 %v10920_v39, %v11031_v1 }
0x137d   :  { %v11110_v40 = vpop.f32.mrb[44].mxu1 }
0x137e   :  { %v7870_v11 = vpop.f32.mrb[45].mxu1 }
0x137f   :  { %v11126_v11 = vpack.i.bf16 %v10850_v41, %v10845_v19  ;;  %v11146_v19 = vpack.i.bf16 %v10903_v57, %v10898_v43 }
0x1381   :  { %v11112_v54 = vpop.f32.mrb[40].mxu0 }
0x1382   :  { %v7883_v25 = vpop.f32.mrb[41].mxu0 }
0x1383   :  { %v11132_v25 = vpack.i.bf16 %v10807_v32, %v10802_v4  ;;  %v11152_v4 = vpack.i.bf16 %v10882_v44, %v11013_v42 }
0x1396   :  { %v4355_v48 = vpop.f32.mrb[46].mxu1 }
0x1397   :  { %v4453_v15 = vmul.f32 0.35355338, %v4355_v48  ;;  %v7896_v59 = vpop.f32.mrb[47].mxu1 }
0x1399   :  { %v4455_v50 = vadd.f32 %v4453_v15, %v9700_v33 }
0x139a   :  { %v4449_v20 = vpop.f32.mrb[42].mxu0 }
0x139b   :  { %v4454_v13 = vmul.f32 0.35355338, %v4449_v20  ;;  %v7909_v12 = vpop.f32.mrb[43].mxu0  ;;  %v4457_v58 = vsel %vm704_vm7, %v4455_v50, -inf }
0x139c   :  { %4458 = vmax.xlane.f32.xlu1 %v4457_v58 }
0x139d   :  { %v4456_v6 = vadd.f32 %v4454_v13, %v9703_v37 }
0x139f   :  { %v4460_v10 = vsel %vm704_vm7, %v4456_v6, -inf }
0x13a0   :  { %4461 = vmax.xlane.f32.xlu0 %v4460_v10 }
0x13ad   :  { %8914 = vrot.lane.b32.xlu1 %v11120_v30, %s11735_s3 }
0x13b1   :  { %8919 = vrot.lane.b32.xlu1 %v11126_v11, %s11735_s3 }
0x13b5   :  { %4491 = vrot.lane.b32.xlu1 %v10997_v26, %s11735_s3 }
0x13b6   :  { %8909 = vrot.lane.b32.xlu0 %v11132_v25, %s11735_s3 }
0x13b9   :  { %4583 = vrot.lane.b32.xlu1 %v10817_v3, %s11735_s3 }
0x13ba   :  { %8924 = vrot.lane.b32.xlu0 %v11140_v18, %s11735_s3 }
0x13bd   :  { %8939 = vrot.lane.b32.xlu1 %v11146_v19, %s11735_s3 }
0x13be   :  { %8929 = vrot.lane.b32.xlu0 %v11152_v4, %s11735_s3 }
0x13c2   :  { %8934 = vrot.lane.b32.xlu0 %v11160_v38, %s11735_s3 }
0x1429   :  { %v4459_v29 = vpop.xlane.xlu1 %4458 }
0x142a   :  { %v4463_v41 = vsub.f32 %v4455_v50, %v4459_v29 }
0x142c   :  { %v4465_v43 = vmul.f32 1.442695, %v4463_v41 }
0x142d   :  { %v4462_v57 = vpop.xlane.xlu0 %4461  ;;  %v8915_v48 = vpop.permute.xlu1 %8914 }
0x142e   :  { %9125 = vpow2.f32 %v4465_v43  ;;  %v4464_v44 = vsub.f32 %v4456_v6, %v4462_v57  ;;  %v8917_v42 = vunpack.i.h.bf16 %v8915_v48  ;;  %v8916_v15 = vunpack.i.l.bf16 %v8915_v48 }
0x1430   :  { %v4467_v59 = vmul.f32 1.442695, %v4464_v44  ;;  %v8539_v20 = vpack.c.bf16 %v8917_v42, %v8916_v15 }
0x1431   :  { %v8910_v13 = vpop.permute.xlu0 %8909  ;;  %v8920_v12 = vpop.permute.xlu1 %8919 }
0x1432   :  { %9127 = vpow2.f32 %v4467_v59  ;;  %v8912_v58 = vunpack.i.h.bf16 %v8910_v13  ;;  %v8911_v39 = vunpack.i.l.bf16 %v8910_v13  ;;  %v8922_v1 = vunpack.i.h.bf16 %v8920_v12  ;;  %8540 = vmatpush3.bf16.msra.mxu0 %v8539_v20 }
0x1433   :  { %v8921_v10 = vunpack.i.l.bf16 %v8920_v12  ;;  %8541 = vmatprep.subr.bf16.mxu0 %v9186_v49 }
0x1434   :  { %v8533_v50 = vpack.c.bf16 %v8912_v58, %v8911_v39 }
0x1435   :  { %v8925_v29 = vpop.permute.xlu0 %8924  ;;  %v8536_v41 = vpack.c.bf16 %v8922_v1, %v8921_v10  ;;  %v4492_v48 = vpop.permute.xlu1 %4491 }
0x1436   :  { %v8927_v55 = vunpack.i.h.bf16 %v8925_v29  ;;  %v8926_v43 = vunpack.i.l.bf16 %v8925_v29  ;;  %8534 = vmatpush3.bf16.msra.mxu1 %v8533_v50 }
0x1437   :  { %8535 = vmatprep.subr.bf16.mxu1 %v9186_v49 }
0x1438   :  { %v9126_v6 = vpop.eup %9125  ;;  %v8542_v57 = vpack.c.bf16 %v8927_v55, %v8926_v43  ;;  %v11174_v55 = vpack.i.bf16 %v10937_v21, %v10932_v24 }
0x1439   :  { %v4469_v44 = vsel %vm704_vm7, %v9126_v6, 0.0  ;;  %v4584_v59 = vpop.permute.xlu1 %4583 }
0x143a   :  { %4470 = vadd.xlane.f32.xlu0 %v4469_v44  ;;  %8537 = vmatpush3.bf16.msra.mxu1 %v8536_v41 }
0x143b   :  { %8543 = vmatpush3.bf16.msra.mxu0 %v8542_v57  ;;  %7918 = vmatprep.subr.mxu1 %v9185_v14 }
0x143c   :  { %v9128_v42 = vpop.eup %9127  ;;  %7931 = vmatprep.subr.mxu0 %v9185_v14 }
0x143d   :  { %v4472_v15 = vsel %vm704_vm7, %v9128_v42, 0.0  ;;  %v8940_v21 = vpop.permute.xlu1 %8939 }
0x143e   :  { %4473 = vadd.xlane.f32.xlu1 %v4472_v15  ;;  %7919 = vmatpush3.msra.mxu1 %v4492_v48  ;;  %v8942_v10 = vunpack.i.h.bf16 %v8940_v21  ;;  %v8941_v50 = vunpack.i.l.bf16 %v8940_v21 }
0x143f   :  { %7932 = vmatpush3.msra.mxu0 %v4584_v59  ;;  %8544 = vmatprep.subr.bf16.mxu1 %v9186_v49 }
0x1440   :  { %8550 = vmatprep.subr.bf16.mxu0 %v9186_v49 }
0x144f   :  { %4675 = vrot.lane.b32.xlu1 %v11008_v45, %s11735_s3 }
0x1450   :  { %8944 = vrot.lane.b32.xlu0 %v11174_v55, %s11735_s3 }
0x1453   :  { %8949 = vrot.lane.b32.xlu1 %v10838_v52, %s11740_s2  ;;  %v8930_v52 = vpop.permute.xlu0 %8929 }
0x1454   :  { %4764 = vrot.lane.b32.xlu0 %v11006_v56, %s11735_s3  ;;  %v8932_v13 = vunpack.i.h.bf16 %v8930_v52  ;;  %v8931_v12 = vunpack.i.l.bf16 %v8930_v52  ;;  %v8548_v52 = vpack.c.bf16 %v8942_v10, %v8941_v50 }
0x1456   :  { %v8545_v39 = vpack.c.bf16 %v8932_v13, %v8931_v12 }
0x1457   :  { %8959 = vrot.lane.b32.xlu1 %v10868_v23, %s11740_s2  ;;  %v8935_v24 = vpop.permute.xlu0 %8934 }
0x1458   :  { %8954 = vrot.lane.b32.xlu0 %v10874_v27, %s11740_s2  ;;  %v8937_v29 = vunpack.i.h.bf16 %v8935_v24  ;;  %v8936_v41 = vunpack.i.l.bf16 %v8935_v24 }
0x145b   :  { %4851 = vrot.lane.b32.xlu1 %v10724_v16, %s11740_s2 }
0x145c   :  { %8964 = vrot.lane.b32.xlu0 %v10888_v28, %s11740_s2 }
0x145f   :  { %4841 = vrot.lane.b32.xlu1 %v10702_v47, %s11740_s2 }
0x1460   :  { %4945 = vrot.lane.b32.xlu0 %v10734_v35, %s11740_s2 }
0x1464   :  { %4935 = vrot.lane.b32.xlu0 %v10706_v34, %s11740_s2 }
0x14c7   :  { %v4471_v20 = vpop.xlane.xlu0 %4470 }
0x14c8   :  { %9129 = vrcp.f32 %v4471_v20 }
0x14cb   :  { %v4474_v27 = vpop.xlane.xlu1 %4473  ;;  %v8945_v43 = vpop.permute.xlu0 %8944 }
0x14cc   :  { %9131 = vrcp.f32 %v4474_v27  ;;  %v8947_v48 = vunpack.i.h.bf16 %v8945_v43  ;;  %v8946_v44 = vunpack.i.l.bf16 %v8945_v43 }
0x14ce   :  { %v8554_v21 = vpack.c.bf16 %v8947_v48, %v8946_v44 }
0x14cf   :  { %v4676_v15 = vpop.permute.xlu1 %4675  ;;  %v4765_v24 = vpop.permute.xlu0 %4764 }
0x14d2   :  { %v9130_v58 = vpop.eup %9129 }
0x14d3   :  { %v4476_v1 = vmul.f32 %v9130_v58, %v9126_v6  ;;  %v8551_v6 = vpack.c.bf16 %v8937_v29, %v8936_v41  ;;  %v8950_v20 = vpop.permute.xlu1 %8949  ;;  %v8955_v13 = vpop.permute.xlu0 %8954 }
0x14d4   :  { %v8952_v27 = vunpack.i.h.bf16 %v8950_v20  ;;  %v8957_v12 = vunpack.i.h.bf16 %v8955_v13  ;;  %v8956_v58 = vunpack.i.l.bf16 %v8955_v13 }
0x14d5   :  { %7921 = vmatmul.mubr.msk.f32.vlgmr.msra.gmra.mrb[48].mxu1 %vm704_vm7, %v4476_v1 }
0x14d6   :  { %v9132_v57 = vpop.eup %9131  ;;  %8546 = vmatpush3.bf16.msra.mxu1 %v8545_v39  ;;  %7946 = vmatprep.mubr.msk.f32.mxu1 %vm9187_vm4, %v9185_v14 }
0x14d7   :  { %v4478_v59 = vmul.f32 %v9132_v57, %v9128_v42  ;;  %8547 = vmatprep.subr.bf16.mxu1 %v9186_v49  ;;  %v8951_v42 = vunpack.i.l.bf16 %v8950_v20  ;;  %v8960_v10 = vpop.permute.xlu1 %8959  ;;  %v8965_v41 = vpop.permute.xlu0 %8964 }
0x14d8   :  { %v8962_v50 = vunpack.i.h.bf16 %v8960_v10  ;;  %v8961_v29 = vunpack.i.l.bf16 %v8960_v10  ;;  %v8967_v43 = vunpack.i.h.bf16 %v8965_v41  ;;  %v8966_v57 = vunpack.i.l.bf16 %v8965_v41 }
0x14d9   :  { %7934 = vmatmul.mubr.msk.f32.vlgmr.msra.gmra.mrb[44].mxu0 %vm704_vm7, %v4478_v59  ;;  %v8557_v39 = vpack.c.bf16 %v8952_v27, %v8951_v42 }
0x14da   :  { %8549 = vmatpush3.bf16.msra.mxu1 %v8548_v52  ;;  %8552 = vmatpush3.bf16.msra.mxu0 %v8551_v6  ;;  %v8561_v48 = vpack.c.bf16 %v8962_v50, %v8961_v29  ;;  %v8569_v44 = vpack.c.bf16 %v8967_v43, %v8966_v57 }
0x14db   :  { %7944 = vmatprep.subr.mxu1 %v9185_v14  ;;  %8553 = vmatprep.subr.bf16.mxu0 %v9186_v49 }
0x14dc   :  { %7959 = vmatprep.mubr.msk.f32.mxu0 %vm9187_vm4, %v9185_v14 }
0x14de   :  { %7945 = vmatpush3.msra.mxu1 %v4676_v15  ;;  %8555 = vmatpush3.bf16.msra.mxu0 %v8554_v21  ;;  %v4852_v15 = vpop.permute.xlu1 %4851 }
0x14df   :  { %7947 = vmatmul.mubr.msk.f32.vlgmr.msra.gmra.mrb[50].mxu1 %vm704_vm7, %v4476_v1  ;;  %7957 = vmatprep.subr.mxu0 %v9185_v14  ;;  %v8565_v1 = vpack.c.bf16 %v8957_v12, %v8956_v58 }
0x14e0   :  { %8556 = vmatprep.subr.bf16.mxu1 %v9186_v49  ;;  %7972 = vmatprep.mubr.msk.f32.mxu1 %vm9187_vm4, %v9185_v14 }
0x14e2   :  { %7958 = vmatpush3.msra.mxu0 %v4765_v24  ;;  %v4842_v52 = vpop.permute.xlu1 %4841 }
0x14e3   :  { %7960 = vmatmul.mubr.msk.f32.vlgmr.msra.gmra.mrb[46].mxu0 %vm704_vm7, %v4478_v59  ;;  %8564 = vmatprep.subr.bf16.mxu0 %v9186_v49  ;;  %v4946_v59 = vpop.permute.xlu0 %4945 }
0x14e4   :  { %7985 = vmatprep.mubr.msk.f32.mxu0 %vm9187_vm4, %v9185_v14 }
0x14e5   :  { %8559 = vmatpush3.bf16.xpose.msk.msra.mxu1 %vm9531_vm3, %v8557_v39 }
0x14e6   :  { %8560 = vmatprep.subr.bf16.mxu1 %v9186_v49 }
0x14e7   :  { %v4936_v6 = vpop.permute.xlu0 %4935 }
0x14e9   :  { %8567 = vmatpush3.bf16.xpose.msk.msra.mxu0 %vm9531_vm3, %v8565_v1 }
0x14ea   :  { %8568 = vmatprep.subr.bf16.mxu0 %v9186_v49 }
0x14ed   :  { %8563 = vmatpush3.bf16.xpose.msk.msra.mxu1 %vm9531_vm3, %v8561_v48 }
0x14ee   :  { %7970 = vmatprep.subr.mxu1 %v9185_v14 }
0x14f1   :  { %8571 = vmatpush3.bf16.xpose.msk.msra.mxu0 %vm9531_vm3, %v8569_v44 }
0x14f2   :  { %7983 = vmatprep.subr.mxu0 %v9185_v14 }
0x14f5   :  { %7971 = vmatpush3.xpose.msk.msra.mxu1 %vm494_vm2, %v4852_v15 }
0x14f6   :  { %8572 = vmatprep.subr.bf16.mxu1 %v9186_v49 }
0x14f8   :  { %7973 = vmatmul.mubr.msk.f32.vlgmr.msra.gmra.mrb[52].mxu1 %vm494_vm2, %v4842_v52 }
0x14f9   :  { %7984 = vmatpush3.xpose.msk.msra.mxu0 %vm494_vm2, %v4946_v59  ;;  %7998 = vmatprep.mubr.msk.f32.mxu1 %vm9187_vm4, %v9185_v14 }
0x14fa   :  { %8578 = vmatprep.subr.bf16.mxu0 %v9186_v49 }
0x14fc   :  { %7986 = vmatmul.mubr.msk.f32.vlgmr.msra.gmra.mrb[48].mxu0 %vm494_vm2, %v4936_v6 }
0x14fd   :  { %8011 = vmatprep.mubr.msk.f32.mxu0 %vm9187_vm4, %v9185_v14 }
0x15a8   :  { %v11238_v21 = vpop.f32.mrb[48].mxu1 }
0x15a9   :  { %v7922_v24 = vpop.f32.mrb[49].mxu1 }
0x15ac   :  { %v11240_v20 = vpop.f32.mrb[44].mxu0 }
0x15ad   :  { %v7935_v27 = vpop.f32.mrb[45].mxu0 }
0x15b2   :  { %v11242_v42 = vpop.f32.mrb[50].mxu1 }
0x15b3   :  { %v7948_v13 = vpop.f32.mrb[51].mxu1 }
0x15b6   :  { %v11244_v12 = vpop.f32.mrb[46].mxu0 }
0x15b7   :  { %v7961_v58 = vpop.f32.mrb[47].mxu0 }
0x15cb   :  { %v4931_v39 = vpop.f32.mrb[52].mxu1 }
0x15cc   :  { %v5029_v10 = vmul.f32 0.35355338, %v4931_v39  ;;  %v7974_v1 = vpop.f32.mrb[53].mxu1 }
0x15ce   :  { %v5031_v50 = vadd.f32 %v5029_v10, %v9700_v33 }
0x15cf   :  { %v5025_v29 = vpop.f32.mrb[48].mxu0 }
0x15d0   :  { %v5030_v41 = vmul.f32 0.35355338, %v5025_v29  ;;  %v7987_v43 = vpop.f32.mrb[49].mxu0  ;;  %v5033_v57 = vsel %vm704_vm7, %v5031_v50, -inf }
0x15d1   :  { %5034 = vmax.xlane.f32.xlu1 %v5033_v57 }
0x15d2   :  { %v5032_v48 = vadd.f32 %v5030_v41, %v9703_v37 }
0x15d4   :  { %v5036_v44 = vsel %vm704_vm7, %v5032_v48, -inf }
0x15d5   :  { %5037 = vmax.xlane.f32.xlu0 %v5036_v44 }
0x15e2   :  { %8974 = vrot.lane.b32.xlu1 %v11120_v30, %s11740_s2 }
0x15e6   :  { %8979 = vrot.lane.b32.xlu1 %v11126_v11, %s11740_s2 }
0x15ea   :  { %5063 = vrot.lane.b32.xlu1 %v10997_v26, %s11740_s2 }
0x15eb   :  { %8969 = vrot.lane.b32.xlu0 %v11132_v25, %s11740_s2 }
0x15ee   :  { %5151 = vrot.lane.b32.xlu1 %v10817_v3, %s11740_s2 }
0x15ef   :  { %8984 = vrot.lane.b32.xlu0 %v11140_v18, %s11740_s2 }
0x15f2   :  { %8999 = vrot.lane.b32.xlu1 %v11146_v19, %s11740_s2 }
0x15f3   :  { %8989 = vrot.lane.b32.xlu0 %v11152_v4, %s11740_s2 }
0x15f7   :  { %8994 = vrot.lane.b32.xlu0 %v11160_v38, %s11740_s2 }
0x165e   :  { %v5035_v30 = vpop.xlane.xlu1 %5034 }
0x165f   :  { %v5039_v15 = vsub.f32 %v5031_v50, %v5035_v30 }
0x1661   :  { %v5041_v59 = vmul.f32 1.442695, %v5039_v15 }
0x1662   :  { %v5038_v52 = vpop.xlane.xlu0 %5037  ;;  %v8975_v25 = vpop.permute.xlu1 %8974 }
0x1663   :  { %9133 = vpow2.f32 %v5041_v59  ;;  %v5040_v6 = vsub.f32 %v5032_v48, %v5038_v52  ;;  %v8977_v24 = vunpack.i.h.bf16 %v8975_v25  ;;  %v8976_v27 = vunpack.i.l.bf16 %v8975_v25 }
0x1665   :  { %v5043_v13 = vmul.f32 1.442695, %v5040_v6  ;;  %v8579_v58 = vpack.c.bf16 %v8977_v24, %v8976_v27 }
0x1666   :  { %v8970_v39 = vpop.permute.xlu0 %8969  ;;  %v8980_v10 = vpop.permute.xlu1 %8979 }
0x1667   :  { %9135 = vpow2.f32 %v5043_v13  ;;  %v8972_v1 = vunpack.i.h.bf16 %v8970_v39  ;;  %v8971_v29 = vunpack.i.l.bf16 %v8970_v39  ;;  %v8982_v41 = vunpack.i.h.bf16 %v8980_v10  ;;  %8580 = vmatpush3.bf16.msra.mxu0 %v8579_v58  ;;  %v9157_v13 = vld [vmem:[%s11728_s26 + $0x40] sm:$0xff] }
0x1668   :  { %v8981_v43 = vunpack.i.l.bf16 %v8980_v10  ;;  %8581 = vmatprep.subr.bf16.mxu0 %v9186_v49  ;;  %v9008_v58 = vpack.i.bf16 %v10615_v31, %v9157_v13  ;;  %v9158_v39 = vld [vmem:[%s11728_s26 + $0x60] sm:$0xff] }
0x1669   :  { %v8573_v50 = vpack.c.bf16 %v8972_v1, %v8971_v29  ;;  %v9013_v10 = vpack.i.bf16 %v10632_v9, %v9158_v39 }
0x166a   :  { %v8985_v57 = vpop.permute.xlu0 %8984  ;;  %v8576_v44 = vpack.c.bf16 %v8982_v41, %v8981_v43  ;;  %v5064_v52 = vpop.permute.xlu1 %5063 }
0x166b   :  { %v8987_v30 = vunpack.i.h.bf16 %v8985_v57  ;;  %v8986_v15 = vunpack.i.l.bf16 %v8985_v57  ;;  %8574 = vmatpush3.bf16.msra.mxu1 %v8573_v50 }
0x166c   :  { %8575 = vmatprep.subr.bf16.mxu1 %v9186_v49 }
0x166d   :  { %v9134_v48 = vpop.eup %9133  ;;  %v8582_v59 = vpack.c.bf16 %v8987_v30, %v8986_v15 }
0x166e   :  { %v5045_v25 = vsel %vm704_vm7, %v9134_v48, 0.0  ;;  %v5152_v27 = vpop.permute.xlu1 %5151  ;;  %v8990_v31 = vpop.permute.xlu0 %8989 }
0x166f   :  { %5046 = vadd.xlane.f32.xlu0 %v5045_v25  ;;  %8577 = vmatpush3.bf16.msra.mxu1 %v8576_v44  ;;  %v8991_v41 = vunpack.i.l.bf16 %v8990_v31 }
0x1670   :  { %8583 = vmatpush3.bf16.msra.mxu0 %v8582_v59  ;;  %7996 = vmatprep.subr.mxu1 %v9185_v14 }
0x1671   :  { %v9136_v6 = vpop.eup %9135  ;;  %8009 = vmatprep.subr.mxu0 %v9185_v14 }
0x1672   :  { %v5048_v24 = vsel %vm704_vm7, %v9136_v6, 0.0  ;;  %v8995_v9 = vpop.permute.xlu0 %8994 }
0x1673   :  { %5049 = vadd.xlane.f32.xlu1 %v5048_v24  ;;  %7997 = vmatpush3.msra.mxu1 %v5064_v52  ;;  %v8997_v44 = vunpack.i.h.bf16 %v8995_v9  ;;  %v8996_v30 = vunpack.i.l.bf16 %v8995_v9 }
0x1674   :  { %8010 = vmatpush3.msra.mxu0 %v5152_v27  ;;  %8584 = vmatprep.subr.bf16.mxu1 %v9186_v49 }
0x1675   :  { %8590 = vmatprep.subr.bf16.mxu0 %v9186_v49 }
0x1684   :  { %5239 = vrot.lane.b32.xlu1 %v11008_v45, %s11740_s2 }
0x1685   :  { %9004 = vrot.lane.b32.xlu0 %v11174_v55, %s11740_s2 }
0x1688   :  { %9009 = vrot.lane.b32.xlu1 %v9008_v58, %s11741_s7 }
0x1689   :  { %5324 = vrot.lane.b32.xlu0 %v11006_v56, %s11740_s2 }
0x168c   :  { %9019 = vrot.lane.b32.xlu1 %v10868_v23, %s11741_s7  ;;  %v9000_v23 = vpop.permute.xlu1 %8999 }
0x168d   :  { %9014 = vrot.lane.b32.xlu0 %v9013_v10, %s11741_s7  ;;  %v9002_v57 = vunpack.i.h.bf16 %v9000_v23 }
0x1690   :  { %5411 = vrot.lane.b32.xlu1 %v10724_v16, %s11741_s7  ;;  %v8992_v16 = vunpack.i.h.bf16 %v8990_v31 }
0x1691   :  { %9024 = vrot.lane.b32.xlu0 %v10888_v28, %s11741_s7 }
0x1692   :  { %v8585_v28 = vpack.c.bf16 %v8992_v16, %v8991_v41 }
0x1694   :  { %5401 = vrot.lane.b32.xlu1 %v10702_v47, %s11741_s7  ;;  %v9001_v47 = vunpack.i.l.bf16 %v9000_v23 }
0x1695   :  { %5505 = vrot.lane.b32.xlu0 %v10734_v35, %s11741_s7 }
0x1696   :  { %v8588_v24 = vpack.c.bf16 %v9002_v57, %v9001_v47 }
0x1699   :  { %5495 = vrot.lane.b32.xlu0 %v10706_v34, %s11741_s7 }
0x16fc   :  { %v5047_v1 = vpop.xlane.xlu0 %5046 }
0x16fd   :  { %9137 = vrcp.f32 %v5047_v1 }
0x1700   :  { %v5050_v29 = vpop.xlane.xlu1 %5049  ;;  %v9005_v35 = vpop.permute.xlu0 %9004 }
0x1701   :  { %9139 = vrcp.f32 %v5050_v29  ;;  %v9007_v15 = vunpack.i.h.bf16 %v9005_v35  ;;  %v9006_v59 = vunpack.i.l.bf16 %v9005_v35 }
0x1703   :  { %v8594_v27 = vpack.c.bf16 %v9007_v15, %v9006_v59 }
0x1704   :  { %v5240_v52 = vpop.permute.xlu1 %5239  ;;  %v5325_v13 = vpop.permute.xlu0 %5324 }
0x1707   :  { %v9138_v43 = vpop.eup %9137 }
0x1708   :  { %v5052_v50 = vmul.f32 %v9138_v43, %v9134_v48  ;;  %v8591_v48 = vpack.c.bf16 %v8997_v44, %v8996_v30  ;;  %v9010_v58 = vpop.permute.xlu1 %9009  ;;  %v9015_v10 = vpop.permute.xlu0 %9014 }
0x1709   :  { %v9012_v39 = vunpack.i.h.bf16 %v9010_v58  ;;  %v9017_v31 = vunpack.i.h.bf16 %v9015_v10  ;;  %v9016_v9 = vunpack.i.l.bf16 %v9015_v10 }
0x170a   :  { %7999 = vmatmul.mubr.msk.f32.vlgmr.msra.gmra.mrb[54].mxu1 %vm704_vm7, %v5052_v50 }
0x170b   :  { %v9140_v34 = vpop.eup %9139  ;;  %8586 = vmatpush3.bf16.msra.mxu1 %v8585_v28  ;;  %8024 = vmatprep.mubr.msk.f32.mxu1 %vm9187_vm4, %v9185_v14  ;;  %v8605_v29 = vpack.c.bf16 %v9017_v31, %v9016_v9 }
0x170c   :  { %v5054_v25 = vmul.f32 %v9140_v34, %v9136_v6  ;;  %8587 = vmatprep.subr.bf16.mxu1 %v9186_v49  ;;  %v9011_v6 = vunpack.i.l.bf16 %v9010_v58  ;;  %v9020_v1 = vpop.permute.xlu1 %9019  ;;  %v9025_v43 = vpop.permute.xlu0 %9024 }
0x170d   :  { %v9022_v16 = vunpack.i.h.bf16 %v9020_v1  ;;  %v9021_v41 = vunpack.i.l.bf16 %v9020_v1  ;;  %v9027_v28 = vunpack.i.h.bf16 %v9025_v43 }
0x170e   :  { %8012 = vmatmul.mubr.msk.f32.vlgmr.msra.gmra.mrb[50].mxu0 %vm704_vm7, %v5054_v25  ;;  %v8597_v23 = vpack.c.bf16 %v9012_v39, %v9011_v6 }
0x170f   :  { %8589 = vmatpush3.bf16.msra.mxu1 %v8588_v24  ;;  %8592 = vmatpush3.bf16.msra.mxu0 %v8591_v48  ;;  %v8601_v57 = vpack.c.bf16 %v9022_v16, %v9021_v41  ;;  %v9159_v16 = vld [vmem:[%s11732_s27 + $0x60] sm:$0xff] }
0x1710   :  { %8022 = vmatprep.subr.mxu1 %v9185_v14  ;;  %8593 = vmatprep.subr.bf16.mxu0 %v9186_v49  ;;  %v5412_v44 = vpop.permute.xlu1 %5411  ;;  %v5506_v30 = vpop.permute.xlu0 %5505  ;;  %v9033_v41 = vpack.i.bf16 %v10760_v22, %v9159_v16 }
0x1711   :  { %8037 = vmatprep.mubr.msk.f32.mxu0 %vm9187_vm4, %v9185_v14 }
0x1713   :  { %8023 = vmatpush3.msra.mxu1 %v5240_v52  ;;  %8595 = vmatpush3.bf16.msra.mxu0 %v8594_v27 }
0x1714   :  { %8025 = vmatmul.mubr.msk.f32.vlgmr.msra.gmra.mrb[56].mxu1 %vm704_vm7, %v5052_v50  ;;  %8035 = vmatprep.subr.mxu0 %v9185_v14  ;;  %v9026_v50 = vunpack.i.l.bf16 %v9025_v43  ;;  %v5402_v35 = vpop.permute.xlu1 %5401  ;;  %v5496_v34 = vpop.permute.xlu0 %5495 }
0x1715   :  { %8596 = vmatprep.subr.bf16.mxu1 %v9186_v49  ;;  %8050 = vmatprep.mubr.msk.f32.mxu1 %vm9187_vm4, %v9185_v14 }
0x1716   :  { %v8609_v47 = vpack.c.bf16 %v9027_v28, %v9026_v50 }
0x1717   :  { %8036 = vmatpush3.msra.mxu0 %v5325_v13 }
0x1718   :  { %8038 = vmatmul.mubr.msk.f32.vlgmr.msra.gmra.mrb[52].mxu0 %vm704_vm7, %v5054_v25  ;;  %8604 = vmatprep.subr.bf16.mxu0 %v9186_v49 }
0x1719   :  { %8063 = vmatprep.mubr.msk.f32.mxu0 %vm9187_vm4, %v9185_v14 }
0x171a   :  { %8599 = vmatpush3.bf16.xpose.msk.msra.mxu1 %vm9531_vm3, %v8597_v23 }
0x171b   :  { %8600 = vmatprep.subr.bf16.mxu1 %v9186_v49 }
0x171e   :  { %8607 = vmatpush3.bf16.xpose.msk.msra.mxu0 %vm9531_vm3, %v8605_v29 }
0x171f   :  { %8608 = vmatprep.subr.bf16.mxu0 %v9186_v49 }
0x1722   :  { %8603 = vmatpush3.bf16.xpose.msk.msra.mxu1 %vm9531_vm3, %v8601_v57 }
0x1723   :  { %8048 = vmatprep.subr.mxu1 %v9185_v14 }
0x1726   :  { %8611 = vmatpush3.bf16.xpose.msk.msra.mxu0 %vm9531_vm3, %v8609_v47  ;;  %vm11748_vm3 = vcmask 457728  }
0x1727   :  { %8061 = vmatprep.subr.mxu0 %v9185_v14 }
0x172a   :  { %8049 = vmatpush3.xpose.msk.msra.mxu1 %vm494_vm2, %v5412_v44 }
0x172b   :  { %8612 = vmatprep.subr.bf16.mxu1 %v9186_v49 }
0x172d   :  { %8051 = vmatmul.mubr.msk.f32.vlgmr.msra.gmra.mrb[58].mxu1 %vm494_vm2, %v5402_v35 }
0x172e   :  { %8062 = vmatpush3.xpose.msk.msra.mxu0 %vm494_vm2, %v5506_v30  ;;  %8076 = vmatprep.mubr.msk.f32.mxu1 %vm9187_vm4, %v9185_v14 }
0x172f   :  { %8618 = vmatprep.subr.bf16.mxu0 %v9186_v49 }
0x1731   :  { %8064 = vmatmul.mubr.msk.f32.vlgmr.msra.gmra.mrb[54].mxu0 %vm494_vm2, %v5496_v34 }
0x1732   :  { %8089 = vmatprep.mubr.msk.f32.mxu0 %vm9187_vm4, %v9185_v14 }
0x17dd   :  { %v11344_v51 = vpop.f32.mrb[54].mxu1 }
0x17de   :  { %v8000_v15 = vpop.f32.mrb[55].mxu1 }
0x17e1   :  { %v11346_v59 = vpop.f32.mrb[50].mxu0 }
0x17e2   :  { %v8013_v52 = vpop.f32.mrb[51].mxu0 }
0x17e7   :  { %v11348_v25 = vpop.f32.mrb[56].mxu1 }
0x17e8   :  { %v8026_v24 = vpop.f32.mrb[57].mxu1 }
0x17eb   :  { %v11350_v48 = vpop.f32.mrb[52].mxu0 }
0x17ec   :  { %v8039_v27 = vpop.f32.mrb[53].mxu0 }
0x1800   :  { %v5491_v13 = vpop.f32.mrb[58].mxu1 }
0x1801   :  { %v5589_v58 = vmul.f32 0.35355338, %v5491_v13  ;;  %v8052_v39 = vpop.f32.mrb[59].mxu1 }
0x1803   :  { %v5591_v6 = vadd.f32 %v5589_v58, %v9700_v33  ;;  %v9160_v33 = vld [vmem:[%s11732_s27 + $0x40] sm:$0xff]  ;;  %s11742_s27 = smov 8  }
0x1804   :  { %v5585_v10 = vpop.f32.mrb[54].mxu0 }
0x1805   :  { %v5590_v31 = vmul.f32 0.35355338, %v5585_v10  ;;  %v8065_v9 = vpop.f32.mrb[55].mxu0  ;;  %v5593_v23 = vsel %vm704_vm7, %v5591_v6, -inf }
0x1806   :  { %5594 = vmax.xlane.f32.xlu1 %v5593_v23 }
0x1807   :  { %v5592_v1 = vadd.f32 %v5590_v31, %v9703_v37  ;;  %v9028_v37 = vpack.i.bf16 %v10807_v32, %v9160_v33 }
0x1809   :  { %v5596_v29 = vsel %vm704_vm7, %v5592_v1, -inf }
0x180a   :  { %5597 = vmax.xlane.f32.xlu0 %v5596_v29 }
0x1817   :  { %9034 = vrot.lane.b32.xlu1 %v9033_v41, %s11741_s7 }
0x181b   :  { %9039 = vrot.lane.b32.xlu1 %v11126_v11, %s11741_s7 }
0x181f   :  { %5623 = vrot.lane.b32.xlu1 %v10997_v26, %s11741_s7 }
0x1820   :  { %9029 = vrot.lane.b32.xlu0 %v9028_v37, %s11741_s7 }
0x1823   :  { %5711 = vrot.lane.b32.xlu1 %v10817_v3, %s11741_s7 }
0x1824   :  { %9044 = vrot.lane.b32.xlu0 %v11140_v18, %s11741_s7 }
0x1827   :  { %9059 = vrot.lane.b32.xlu1 %v11146_v19, %s11741_s7 }
0x1828   :  { %9049 = vrot.lane.b32.xlu0 %v11152_v4, %s11741_s7 }
0x182c   :  { %9054 = vrot.lane.b32.xlu0 %v11160_v38, %s11741_s7 }
0x1893   :  { %v5595_v22 = vpop.xlane.xlu1 %5594 }
0x1894   :  { %v5599_v32 = vsub.f32 %v5591_v6, %v5595_v22 }
0x1896   :  { %v5601_v26 = vmul.f32 1.442695, %v5599_v32 }
0x1897   :  { %v5598_v11 = vpop.xlane.xlu0 %5597  ;;  %v9035_v43 = vpop.permute.xlu1 %9034 }
0x1898   :  { %9141 = vpow2.f32 %v5601_v26  ;;  %v5600_v28 = vsub.f32 %v5592_v1, %v5598_v11  ;;  %v9037_v3 = vunpack.i.h.bf16 %v9035_v43  ;;  %v9036_v50 = vunpack.i.l.bf16 %v9035_v43  ;;  %v6769_v11 = vld [vmem:[%s11654_s11 + $0x58] sm:$0xff] }
0x189a   :  { %v5603_v57 = vmul.f32 1.442695, %v5600_v28  ;;  %v8619_v18 = vpack.c.bf16 %v9037_v3, %v9036_v50  ;;  %v6771_v28 = vld [vmem:[%s11654_s11 + $0x68] sm:$0xff]  ;;  %v6773_v50 = vld [vmem:[%s11654_s11 + $0x78] sm:$0xff] }
0x189b   :  { %v9030_v47 = vpop.permute.xlu0 %9029  ;;  %v9040_v44 = vpop.permute.xlu1 %9039 }
0x189c   :  { %9143 = vpow2.f32 %v5603_v57  ;;  %v9032_v19 = vunpack.i.h.bf16 %v9030_v47  ;;  %v9031_v30 = vunpack.i.l.bf16 %v9030_v47  ;;  %v9042_v4 = vunpack.i.h.bf16 %v9040_v44  ;;  %8620 = vmatpush3.bf16.msra.mxu0 %v8619_v18  ;;  %v6774_v57 = vld [vmem:[%s11654_s11 + $0x80] sm:$0xff]  ;;  %v6775_v18 = vld [vmem:[%s11654_s11 + $0x88] sm:$0xff] }
0x189d   :  { %v9041_v35 = vunpack.i.l.bf16 %v9040_v44  ;;  %8621 = vmatprep.subr.bf16.mxu0 %v9186_v49  ;;  %v8644_v47 = vpack.c.bf16 %v6774_v57, %v6773_v50  ;;  %v6776_v44 = vld [vmem:[%s11654_s11 + $0x90] sm:$0xff] }
0x189e   :  { %v8613_v38 = vpack.c.bf16 %v9032_v19, %v9031_v30  ;;  %v8648_v19 = vpack.c.bf16 %v6776_v44, %v6775_v18  ;;  %v6777_v30 = vld [vmem:[%s11654_s11 + $0x98] sm:$0xff] }
0x189f   :  { %v9045_v34 = vpop.permute.xlu0 %9044  ;;  %v8616_v15 = vpack.c.bf16 %v9042_v4, %v9041_v35  ;;  %v5624_v58 = vpop.permute.xlu1 %5623  ;;  %v6778_v4 = vld [vmem:[%s11654_s11 + $0xa0] sm:$0xff] }
0x18a0   :  { %v9047_v52 = vunpack.i.h.bf16 %v9045_v34  ;;  %v9046_v24 = vunpack.i.l.bf16 %v9045_v34  ;;  %8614 = vmatpush3.bf16.msra.mxu1 %v8613_v38  ;;  %v8652_v35 = vpack.c.bf16 %v6778_v4, %v6777_v30 }
0x18a1   :  { %8615 = vmatprep.subr.bf16.mxu1 %v9186_v49 }
0x18a2   :  { %v9142_v27 = vpop.eup %9141  ;;  %v8622_v13 = vpack.c.bf16 %v9047_v52, %v9046_v24 }
0x18a3   :  { %v5605_v39 = vsel %vm704_vm7, %v9142_v27, 0.0  ;;  %v5712_v31 = vpop.permute.xlu1 %5711 }
0x18a4   :  { %5606 = vadd.xlane.f32.xlu0 %v5605_v39  ;;  %8617 = vmatpush3.bf16.msra.mxu1 %v8616_v15  ;;  %v6779_v15 = vld [vmem:[%s11654_s11 + $0xa8] sm:$0xff] }
0x18a5   :  { %8623 = vmatpush3.bf16.msra.mxu0 %v8622_v13  ;;  %8074 = vmatprep.subr.mxu1 %v9185_v14 }
0x18a6   :  { %v9144_v6 = vpop.eup %9143  ;;  %8087 = vmatprep.subr.mxu0 %v9185_v14 }
0x18a7   :  { %v5608_v10 = vsel %vm704_vm7, %v9144_v6, 0.0 }
0x18a8   :  { %5609 = vadd.xlane.f32.xlu1 %v5608_v10  ;;  %8075 = vmatpush3.msra.mxu1 %v5624_v58 }
0x18a9   :  { %8088 = vmatpush3.msra.mxu0 %v5712_v31  ;;  %8624 = vmatprep.subr.bf16.mxu1 %v9186_v49 }
0x18aa   :  { %8630 = vmatprep.subr.bf16.mxu0 %v9186_v49 }
0x18b9   :  { %5799 = vrot.lane.b32.xlu1 %v11008_v45, %s11741_s7 }
0x18ba   :  { %9064 = vrot.lane.b32.xlu0 %v11174_v55, %s11741_s7 }
0x18bd   :  { %5963 = vrot.lane.b32.xlu1 %v11238_v21, %s11742_s27 }
0x18be   :  { %5884 = vrot.lane.b32.xlu0 %v11006_v56, %s11741_s7  ;;  %v9050_v56 = vpop.permute.xlu0 %9049  ;;  %s11753_s7 = sld [smem:[#allocation16_spill]] }
0x18c1   :  { %5971 = vrot.lane.b32.xlu1 %v11344_v51, %s11743_s19 }
0x18c2   :  { %5965 = vrot.lane.b32.xlu0 %v11240_v20, %s11742_s27  ;;  %v9055_v45 = vpop.permute.xlu0 %9054  ;;  %v9052_v20 = vunpack.i.h.bf16 %v9050_v56 }
0x18c3   :  { %v9057_v23 = vunpack.i.h.bf16 %v9055_v45  ;;  %v9056_v1 = vunpack.i.l.bf16 %v9055_v45 }
0x18c5   :  { %5987 = vrot.lane.b32.xlu1 %v11106_v46, %s11736_s6  ;;  %v9060_v46 = vpop.permute.xlu1 %9059  ;;  %v8631_v37 = vpack.c.bf16 %v9057_v23, %v9056_v1 }
0x18c6   :  { %5973 = vrot.lane.b32.xlu0 %v11346_v59, %s11743_s19  ;;  %v9062_v9 = vunpack.i.h.bf16 %v9060_v46 }
0x18c9   :  { %5995 = vrot.lane.b32.xlu1 %v11242_v42, %s11744_s8  ;;  %v9051_v42 = vunpack.i.l.bf16 %v9050_v56 }
0x18ca   :  { %5989 = vrot.lane.b32.xlu0 %v11108_v2, %s11736_s6 }
0x18cb   :  { %v8625_v2 = vpack.c.bf16 %v9052_v20, %v9051_v42 }
0x18cd   :  { %6003 = vrot.lane.b32.xlu1 %v11348_v25, %s11745_s23  ;;  %v9061_v25 = vunpack.i.l.bf16 %v9060_v46 }
0x18ce   :  { %5997 = vrot.lane.b32.xlu0 %v11244_v12, %s11744_s8  ;;  %s11754_s8 = sld [smem:[#allocation15_spill]] }
0x18cf   :  { %v8628_v33 = vpack.c.bf16 %v9062_v9, %v9061_v25 }
0x18d2   :  { %6005 = vrot.lane.b32.xlu0 %v11350_v48, %s11745_s23 }
0x1931   :  { %v5607_v55 = vpop.xlane.xlu0 %5606 }
0x1932   :  { %9145 = vrcp.f32 %v5607_v55 }
0x1935   :  { %v5610_v21 = vpop.xlane.xlu1 %5609  ;;  %v9065_v12 = vpop.permute.xlu0 %9064 }
0x1936   :  { %9147 = vrcp.f32 %v5610_v21  ;;  %v9067_v29 = vunpack.i.h.bf16 %v9065_v12  ;;  %v9066_v16 = vunpack.i.l.bf16 %v9065_v12 }
0x1938   :  { %v8634_v22 = vpack.c.bf16 %v9067_v29, %v9066_v16 }
0x1939   :  { %v5800_v32 = vpop.permute.xlu1 %5799  ;;  %v5885_v26 = vpop.permute.xlu0 %5884 }
0x193c   :  { %v9146_v51 = vpop.eup %9145 }
0x193d   :  { %v5612_v59 = vmul.f32 %v9146_v51, %v9142_v27  ;;  %v5966_v10 = vpop.permute.xlu0 %5965 }
0x193e   :  { %v6026_v9 = vsel %vm494_vm2, %v11104_v53, %v5966_v10 }
0x193f   :  { %8077 = vmatmul.mubr.msk.f32.vlgmr.msra.gmra.mrb[60].mxu1 %vm704_vm7, %v5612_v59 }
0x1940   :  { %v9148_v48 = vpop.eup %9147  ;;  %8626 = vmatpush3.bf16.msra.mxu1 %v8625_v2  ;;  %8102 = vmatprep.mubr.msk.f32.mxu1 %vm9187_vm4, %v9185_v14 }
0x1941   :  { %v5614_v41 = vmul.f32 %v9148_v48, %v9144_v6  ;;  %8627 = vmatprep.subr.bf16.mxu1 %v9186_v49  ;;  %v5964_v6 = vpop.permute.xlu1 %5963  ;;  %v5974_v56 = vpop.permute.xlu0 %5973 }
0x1942   :  { %v6028_v25 = vsel %vm2915_vm8, %v6026_v9, %v5974_v56 }
0x1943   :  { %8090 = vmatmul.mubr.msk.f32.vlgmr.msra.gmra.mrb[56].mxu0 %vm704_vm7, %v5614_v41 }
0x1944   :  { %8629 = vmatpush3.bf16.msra.mxu1 %v8628_v33  ;;  %8632 = vmatpush3.bf16.msra.mxu0 %v8631_v37 }
0x1945   :  { %8100 = vmatprep.subr.mxu1 %v9185_v14  ;;  %8633 = vmatprep.subr.bf16.mxu0 %v9186_v49  ;;  %v6770_v49 = vld [vmem:[%s11654_s11 + $0x60] sm:$0xff]  ;;  %v5972_v31 = vpop.permute.xlu1 %5971  ;;  %v5990_v46 = vpop.permute.xlu0 %5989 }
0x1946   :  { %8115 = vmatprep.mubr.msk.f32.mxu0 %vm9187_vm4, %v9185_v14  ;;  %v8636_v43 = vpack.c.bf16 %v6770_v49, %v6769_v11  ;;  %vm11750_vm4 = vmmov %vm11748_vm3  ;;  %v6781_v49 = vld [vmem:[%s11656_s13 + $0x8] sm:$0x7f] }
0x1947   :  { %v6172_v50 = vrot.slane %v6781_v49, %v9622_v0  ;;  %v6194_v57 = vrot.slane %v6781_v49, %v3087_v63  ;;  %v6164_v4 = vrot.slane %v6781_v49, %v9616_v62  ;;  %v6216_v0 = vrot.slane %v6781_v49, %v3110_v5  ;;  %v6900_v63 = vld [vmem:[%s11738_s1 + $0xc] sm:$0x7] }
0x1948   :  { %8101 = vmatpush3.msra.mxu1 %v5800_v32  ;;  %8635 = vmatpush3.bf16.msra.mxu0 %v8634_v22  ;;  %v11752_v62 = vsub.s32 6, %v9609_v61 }
0x1949   :  { %8103 = vmatmul.mubr.msk.f32.vlgmr.msra.gmra.mrb[62].mxu1 %vm704_vm7, %v5612_v59  ;;  %8113 = vmatprep.subr.mxu0 %v9185_v14  ;;  %v6772_v14 = vld [vmem:[%s11654_s11 + $0x70] sm:$0xff]  ;;  %v5988_v45 = vpop.permute.xlu1 %5987  ;;  %v5998_v21 = vpop.permute.xlu0 %5997 }
0x194a   :  { %8637 = vmatprep.subr.bf16.mxu1 %v8636_v43  ;;  %v8640_v3 = vpack.c.bf16 %v6772_v14, %v6771_v28  ;;  %v6899_v28 = vld [vmem:[%s11738_s1 + $0x8] sm:$0x7] }
0x194b   :  { %8639 = vmatpush3.bf16.msra.mxu1 %v8636_v43 }
0x194c   :  { %8114 = vmatpush3.msra.mxu0 %v5885_v26  ;;  %8641 = vmatprep.subr.bf16.mxu1 %v8640_v3 }
0x194d   :  { %8116 = vmatmul.mubr.msk.f32.vlgmr.msra.gmra.mrb[58].mxu0 %vm704_vm7, %v5614_v41  ;;  %v5996_v55 = vpop.permute.xlu1 %5995  ;;  %v6006_v42 = vpop.permute.xlu0 %6005 }
0x194f   :  { %8643 = vmatpush3.bf16.msra.mxu1 %v8640_v3 }
0x1950   :  { %8645 = vmatprep.subr.bf16.mxu1 %v8644_v47 }
0x1951   :  { %v6004_v20 = vpop.permute.xlu1 %6003 }
0x1953   :  { %8647 = vmatpush3.bf16.msra.mxu1 %v8644_v47 }
0x1954   :  { %8649 = vmatprep.subr.bf16.mxu1 %v8648_v19 }
0x1957   :  { %8651 = vmatpush3.bf16.msra.mxu1 %v8648_v19 }
0x1958   :  { %8653 = vmatprep.subr.bf16.mxu1 %v8652_v35 }
0x195b   :  { %8655 = vmatpush3.bf16.msra.mxu1 %v8652_v35 }
0x195c   :  { %8138 = vmatprep.subr.mxu1 %v6779_v15 }
0x195f   :  { %8139 = vmatpush3.msra.mxu1 %v6779_v15 }
0x1a12   :  { %v5699_v38 = vpop.f32.mrb[60].mxu1 }
0x1a13   :  { %5979 = vrot.lane.b32.xlu1 %v5699_v38, %s11746_s10  ;;  %v8078_v34 = vpop.f32.mrb[61].mxu1  ;;  %v6238_v38 = vrot.slane %v6781_v49, %v3133_v8 }
0x1a16   :  { %v5787_v52 = vpop.f32.mrb[56].mxu0 }
0x1a17   :  { %5981 = vrot.lane.b32.xlu0 %v5787_v52, %s11746_s10  ;;  %v8091_v24 = vpop.f32.mrb[57].mxu0  ;;  %v11521_v52 = vrot.slane %v6781_v49, %v3156_v7 }
0x1a18   :  { %v11525_v24 = vrot.slane %v6781_v49, %v11752_v62 }
0x1a1c   :  { %v5872_v27 = vpop.f32.mrb[62].mxu1 }
0x1a1d   :  { %6011 = vrot.lane.b32.xlu1 %v5872_v27, %s11747_s24  ;;  %v8104_v13 = vpop.f32.mrb[63].mxu1 }
0x1a20   :  { %v5957_v58 = vpop.f32.mrb[58].mxu0 }
0x1a21   :  { %6013 = vrot.lane.b32.xlu0 %v5957_v58, %s11747_s24  ;;  %v8117_v39 = vpop.f32.mrb[59].mxu0  ;;  %6019 = vrot.lane.b32.xlu1 %v11110_v40, %s11737_s5  ;;  %s6649_s24 = sshll.u32 %s9202_s20, 4  ;;  %s6650_s24 = int_to_ptr.vmem [resolvable:$true] %s6649_s24 }
0x1a22   :  { %p9166_p1 = scmp.lt.s32.totalorder %s6650_s24, %s6650_s24 }
0x1a25   :  { %6021 = vrot.lane.b32.xlu0 %v11112_v54, %s11737_s5  ;;  %6128 = vrot.lane.b32.xlu1 %v10596_v36, %s11736_s6  ;;  %v6025_v54 = vsel %vm494_vm2, %v11102_v60, %v5964_v6  ;;  %vm11749_vm2 = vcmask 719872  }
0x1a26   :  { %v6027_v51 = vsel %vm2915_vm8, %v6025_v54, %v5972_v31 }
0x1a29   :  { %6130 = vrot.lane.b32.xlu0 %v10601_v17, %s11736_s6 }
0x1a85   :  { %v5980_v40 = vpop.permute.xlu1 %5979 }
0x1a86   :  { %v6029_v2 = vsel %vm2918_vm5, %v6027_v51, %v5980_v40 }
0x1a87   :  { %v6031_v23 = vsel %vm356_vm1, %v6029_v2, %v5988_v45 }
0x1a88   :  { %v6033_v12 = vsel %vm704_vm7, %v6031_v23, %v5996_v55 }
0x1a89   :  { %v5982_v59 = vpop.permute.xlu0 %5981  ;;  %v6035_v60 = vsel %vm2925_vm9, %v6033_v12, %v6004_v20 }
0x1a8a   :  { %v6030_v1 = vsel %vm2918_vm5, %v6028_v25, %v5982_v59  ;;  %vm11751_vm5 = vmmov %vm11749_vm2 }
0x1a8b   :  { %v6032_v29 = vsel %vm356_vm1, %v6030_v1, %v5990_v46 }
0x1a8c   :  { %v6034_v41 = vsel %vm704_vm7, %v6032_v29, %v5998_v21 }
0x1a8d   :  { %v6036_v22 = vsel %vm2925_vm9, %v6034_v41, %v6006_v42 }
0x1a8f   :  { %v6012_v48 = vpop.permute.xlu1 %6011 }
0x1a90   :  { %v6037_v16 = vsel %vm11748_vm3, %v6035_v60, %v6012_v48 }
0x1a93   :  { %v6014_v33 = vpop.permute.xlu0 %6013  ;;  %v6020_v37 = vpop.permute.xlu1 %6019 }
0x1a94   :  { %v6039_v53 = vsel %vm125_vm0, %v6037_v16, %v6020_v37  ;;  %v6038_v32 = vsel %vm11750_vm4, %v6036_v22, %v6014_v33 }
0x1a95   :  { %8140 = vmatprep.mubr.msk.f32.mxu1 %vm11749_vm2, %v6039_v53 }
0x1a97   :  { %v6022_v26 = vpop.permute.xlu0 %6021  ;;  %v6129_v11 = vpop.permute.xlu1 %6128 }
0x1a98   :  { %v6040_v43 = vsel %vm125_vm0, %v6038_v32, %v6022_v26  ;;  %v6134_v14 = vsel %vm356_vm1, %v10596_v36, %v6129_v11 }
0x1a99   :  { %v6141_v3 = vrot.slane %v6134_v14, 5  ;;  %8141 = vmatmul.mubr.msk.f32.vlgmr.msra.gmra.mrb[64].mxu1 %vm11751_vm5, %v6040_v43 }
0x1a9b   :  { %v6145_v18 = vsel %vm3037_vm12, %v6899_v28, %v6141_v3  ;;  %v6150_v47 = vrot.slane %v6141_v3, 5  ;;  %6939 = vst.msk [vmem:[%s11668_s25 + $0x8] sm:$0x7] %vm3441_vm13, %v6141_v3  ;;  %v6131_v44 = vpop.permute.xlu0 %6130 }
0x1a9c   :  { %v6149_v19 = vrot.slane %v6145_v18, 5  ;;  %v6135_v30 = vsel %vm356_vm1, %v10601_v17, %v6131_v44 }
0x1a9d   :  { %v6142_v35 = vrot.slane %v6135_v30, 5 }
0x1a9e   :  { %v6151_v34 = vsel %vm3037_vm12, %v6149_v19, %v6150_v47  ;;  %v6159_v15 = vsel %vm3037_vm12, 0.0, %v6149_v19 }
0x1a9f   :  { %v6173_v5 = vmul.f32 %v6172_v50, %v6159_v15  ;;  %v6174_v27 = vmul.f32 %v6172_v50, %v6151_v34  ;;  %v6195_v13 = vmul.f32 %v6194_v57, %v6159_v15  ;;  %v6196_v58 = vmul.f32 %v6194_v57, %v6151_v34  ;;  %6940 = vst.msk [vmem:[%s11668_s25 + $0xc] sm:$0x7] %vm3441_vm13, %v6142_v35 }
0x1aa0   :  { %v6146_v8 = vsel %vm3037_vm12, %v6900_v63, %v6142_v35  ;;  %v6153_v39 = vrot.slane %v6142_v35, 5  ;;  %v6165_v6 = vmul.f32 %v6164_v4, %v6159_v15  ;;  %v6217_v10 = vmul.f32 %v6216_v0, %v6159_v15 }
0x1aa1   :  { %v6181_v7 = vrot.slane %v6173_v5, 1  ;;  %v6182_v31 = vrot.slane %v6174_v27, 1  ;;  %v6204_v56 = vrot.slane %v6196_v58, 2  ;;  %v6152_v61 = vrot.slane %v6146_v8, 5 }
0x1aa2   :  { %v6203_v45 = vrot.slane %v6195_v13, 2  ;;  %v6218_v46 = vmul.f32 %v6216_v0, %v6151_v34  ;;  %v6225_v55 = vrot.slane %v6217_v10, 3  ;;  %v6239_v21 = vmul.f32 %v6238_v38, %v6159_v15 }
0x1aa3   :  { %v6154_v20 = vsel %vm3037_vm12, %v6152_v61, %v6153_v39  ;;  %v6160_v42 = vsel %vm3037_vm12, 0.0, %v6152_v61  ;;  %v6183_v40 = vsel %vm3074_vm14, %v6181_v7, %v6182_v31  ;;  %v6240_v54 = vmul.f32 %v6238_v38, %v6151_v34 }
0x1aa4   :  { %v6175_v51 = vmul.f32 %v6172_v50, %v6160_v42  ;;  %v6176_v2 = vmul.f32 %v6172_v50, %v6154_v20  ;;  %v6197_v59 = vmul.f32 %v6194_v57, %v6160_v42  ;;  %v6198_v9 = vmul.f32 %v6194_v57, %v6154_v20 }
0x1aa5   :  { %v6189_v25 = vadd.f32 %v6183_v40, %v6165_v6  ;;  %v6205_v23 = vsel %vm3097_vm15, %v6203_v45, %v6204_v56  ;;  %v6226_v1 = vrot.slane %v6218_v46, 3  ;;  %v6247_v12 = vrot.slane %v6239_v21, 4 }
0x1aa6   :  { %v6184_v48 = vrot.slane %v6175_v51, 1  ;;  %v6185_v29 = vrot.slane %v6176_v2, 1  ;;  %v6207_v60 = vrot.slane %v6198_v9, 2  ;;  %v6248_v16 = vrot.slane %v6240_v54, 4  ;;  %v6785_v2 = vld [vmem:[%s11753_s7 + $0x38] sm:$0xff] }
0x1aa7   :  { %v6211_v41 = vadd.f32 %v6205_v23, %v6189_v25  ;;  %v6227_v33 = vsel %vm3120_vm6, %v6225_v55, %v6226_v1  ;;  %v6261_v37 = vmul.f32 %v11521_v52, %v6159_v15  ;;  %v6262_v53 = vmul.f32 %v11521_v52, %v6151_v34  ;;  %v6896_v9 = vld [vmem:[%s11754_s8 + $0x1] ss:$0 sm:$0xff] }
0x1aa8   :  { %v6249_v22 = vsel %vm3143_vm11, %v6247_v12, %v6248_v16  ;;  %v6283_v32 = vmul.f32 %v11525_v24, %v6159_v15  ;;  %v6284_v26 = vmul.f32 %v11525_v24, %v6151_v34  ;;  %v6166_v11 = vmul.f32 %v6164_v4, %v6160_v42 }
0x1aa9   :  { %v6233_v49 = vadd.f32 %v6227_v33, %v6211_v41  ;;  %v6269_v43 = vrot.slane %v6261_v37, 5  ;;  %v6270_v28 = vrot.slane %v6262_v53, 5  ;;  %v6186_v14 = vsel %vm3074_vm14, %v6184_v48, %v6185_v29 }
0x1aaa   :  { %v6291_v3 = vrot.slane %v6283_v32, 6  ;;  %v6292_v50 = vrot.slane %v6284_v26, 6  ;;  %v6190_v57 = vadd.f32 %v6186_v14, %v6166_v11  ;;  %v6206_v18 = vrot.slane %v6197_v59, 2  ;;  %v6790_v26 = vld [vmem:[%s11659_s16 + $0x58] sm:$0xff]  ;;  %v6791_v11 = vld [vmem:[%s11659_s16 + $0x60] sm:$0xff]  ;;  %v6793_v14 = vld [vmem:[%s11659_s16 + $0x70] sm:$0xff] }
0x1aab   :  { %v6255_v47 = vadd.f32 %v6249_v22, %v6233_v49  ;;  %v6271_v44 = vsel %vm3037_vm12, %v6269_v43, %v6270_v28  ;;  %v6219_v19 = vmul.f32 %v6216_v0, %v6160_v42  ;;  %v6220_v30 = vmul.f32 %v6216_v0, %v6154_v20  ;;  %v6787_v22 = vld [vmem:[%s11659_s16 + $0x40] sm:$0xff]  ;;  %v6792_v43 = vld [vmem:[%s11659_s16 + $0x68] sm:$0xff] }
0x1aac   :  { %v6293_v63 = vsel %vm3188_vm10, %v6291_v3, %v6292_v50  ;;  %v6208_v35 = vsel %vm3097_vm15, %v6206_v18, %v6207_v60  ;;  %v6241_v34 = vmul.f32 %v6238_v38, %v6160_v42  ;;  %v6242_v4 = vmul.f32 %v6238_v38, %v6154_v20  ;;  %v6794_v3 = vld [vmem:[%s11659_s16 + $0x78] sm:$0xff]  ;;  %v6550_v50 = vld [vmem:[%s11755_s12] sm:$0xff] }
0x1aad   :  { %v6277_v15 = vadd.f32 %v6271_v44, %v6255_v47  ;;  %v6212_v62 = vadd.f32 %v6208_v35, %v6190_v57  ;;  %v6228_v5 = vrot.slane %v6219_v19, 3  ;;  %v6229_v27 = vrot.slane %v6220_v30, 3  ;;  %v6551_v57 = vld [vmem:[%s11755_s12 + $0x8] sm:$0xff]  ;;  %v6901_v44 = vld [vmem:[%s11658_s15 + $0x1] ss:$0 sm:$0xff] }
0x1aae   :  { %v6250_v13 = vrot.slane %v6241_v34, 4  ;;  %v6251_v58 = vrot.slane %v6242_v4, 4  ;;  %v6263_v8 = vmul.f32 %v11521_v52, %v6160_v42  ;;  %v6264_v39 = vmul.f32 %v11521_v52, %v6154_v20 }
0x1aaf   :  { %v6299_v6 = vadd.f32 %v6293_v63, %v6277_v15  ;;  %v6230_v10 = vsel %vm3120_vm6, %v6228_v5, %v6229_v27  ;;  %v6285_v0 = vmul.f32 %v11525_v24, %v6160_v42  ;;  %v6286_v7 = vmul.f32 %v11525_v24, %v6154_v20  ;;  %v6782_v24 = vld [vmem:[%s11753_s7 + $0x20] sm:$0xff]  ;;  %v6783_v20 = vld [vmem:[%s11753_s7 + $0x28] sm:$0xff]  ;;  %v6784_v42 = vld [vmem:[%s11753_s7 + $0x30] sm:$0xff] }
0x1ab0   :  { %v6234_v31 = vadd.f32 %v6230_v10, %v6212_v62  ;;  %v6272_v56 = vrot.slane %v6263_v8, 5  ;;  %v6273_v38 = vrot.slane %v6264_v39, 5  ;;  %v6252_v61 = vsel %vm3143_vm11, %v6250_v13, %v6251_v58 }
0x1ab1   :  { %6303 = vrot.lane.b32.xlu1 %v6299_v6, %s11739_s29  ;;  %v6294_v45 = vrot.slane %v6285_v0, 6  ;;  %v6295_v46 = vrot.slane %v6286_v7, 6  ;;  %v8656_v51 = vpack.c.bf16 %v6783_v20, %v6782_v24  ;;  %v8660_v59 = vpack.c.bf16 %v6785_v2, %v6784_v42 }
0x1ab2   :  { %v6256_v55 = vadd.f32 %v6252_v61, %v6234_v31  ;;  %v6274_v21 = vsel %vm3037_vm12, %v6272_v56, %v6273_v38  ;;  %v8672_v28 = vpack.c.bf16 %v6792_v43, %v6791_v11  ;;  %v8680_v18 = vpack.c.bf16 %v6551_v57, %v6550_v50 }
0x1ab3   :  { %v6296_v40 = vsel %vm3188_vm10, %v6294_v45, %v6295_v46  ;;  %8657 = vmatprep.subr.bf16.mxu0 %v8656_v51  ;;  %v8676_v47 = vpack.c.bf16 %v6794_v3, %v6793_v14  ;;  %v6552_v45 = vld [vmem:[%s11755_s12 + $0x10] sm:$0xff]  ;;  %v6553_v46 = vld [vmem:[%s11755_s12 + $0x18] sm:$0xff] }
0x1ab4   :  { %v6278_v52 = vadd.f32 %v6274_v21, %v6256_v55  ;;  %8659 = vmatpush3.bf16.msra.mxu0 %v8656_v51  ;;  %8681 = vmatprep.subr.bf16.mxu1 %v8680_v18  ;;  %v8684_v55 = vpack.c.bf16 %v6553_v46, %v6552_v45  ;;  %v6941_v51 = vld [vmem:[%s11756_s30] ss:$0 sm:$0xff] }
0x1ab5   :  { %8661 = vmatprep.subr.bf16.mxu0 %v8660_v59  ;;  %8683 = vmatpush3.bf16.msra.mxu1 %v8680_v18 }
0x1ab6   :  { %v6300_v54 = vadd.f32 %v6296_v40, %v6278_v52  ;;  %8685 = vmatprep.subr.bf16.mxu1 %v8684_v55  ;;  %v6906_v52 = vld [vmem:[%s11660_s17 + $0x1] ss:$0 sm:$0xff]  ;;  %s9161_s17 = scalar_lea.vmem %s6650_s24, 256 }
0x1ab7   :  { %p9162_p0 = scmp.ne.s32.totalorder %s6650_s24, %s9161_s17  ;;  %p9167_p2 = scmp.lt.s32.totalorder %s9161_s17, %s9161_s17 }
0x1ab8   :  { %6305 = vrot.lane.b32.xlu0 %v6300_v54, %s11739_s29  ;;  %8663 = vmatpush3.bf16.msra.mxu0 %v8660_v59 }
0x1ab9   :  { %8687 = vmatpush3.bf16.msra.mxu1 %v8684_v55  ;;  %p9168_p3 = por %p9167_p2, %p9166_p1 }
0x1abb   :  { %p9169_p4 = pnand %p9168_p3, %p9162_p0 }
0x1b23   :  { %v6304_v23 = vpop.permute.xlu1 %6303 }
0x1b24   :  { %v6309_v16 = vadd.f32 %v6304_v23, %v6299_v6 }
0x1b2a   :  { %v6306_v48 = vpop.permute.xlu0 %6305 }
0x1b2b   :  { %v6310_v33 = vadd.f32 %v6306_v48, %v6300_v54 }
0x1b6c   :  { %v8142_v25 = vpop.f32.mrb[64].mxu1 }
0x1b6d   :  { %v6125_v1 = vadd.f32 %v8142_v25, %v6896_v9  ;;  %v6119_v12 = vpop.f32.mrb[65].mxu1 }
0x1b6e   :  { %v6120_v29 = vadd.f32 %v6896_v9, %v6119_v12 }
0x1b6f   :  { %v6312_v60 = vadd.f32 %v6125_v1, %v10601_v17  ;;  %v6788_v17 = vld [vmem:[%s11659_s16 + $0x48] sm:$0xff] }
0x1b70   :  { %v6311_v41 = vadd.f32 %v6120_v29, %v10596_v36  ;;  %v8664_v32 = vpack.c.bf16 %v6788_v17, %v6787_v22  ;;  %v6789_v36 = vld [vmem:[%s11659_s16 + $0x50] sm:$0xff] }
0x1b71   :  { %v6314_v53 = vadd.f32 %v6312_v60, %v6310_v33  ;;  %v8668_v49 = vpack.c.bf16 %v6790_v26, %v6789_v36 }
0x1b72   :  { %v11573_v37 = vadd.f32 %v6311_v41, %v6309_v16  ;;  %8665 = vmatprep.subr.bf16.mxu0 %v8664_v32 }
0x1b74   :  { %8151 = vmatprep.mubr.msk.f32.mxu0 %vm356_vm1, %v11573_v37 }
0x1b75   :  { %8152 = vmatmul.mubr.msk.f32.vlgmr.msra.gmra.mrb[60].mxu0 %vm356_vm1, %v6314_v53 }
0x1b76   :  { %8667 = vmatpush3.bf16.msra.mxu0 %v8664_v32 }
0x1b77   :  { %8669 = vmatprep.subr.bf16.mxu0 %v8668_v49 }
0x1b7a   :  { %8671 = vmatpush3.bf16.msra.mxu0 %v8668_v49 }
0x1b7b   :  { %8673 = vmatprep.subr.bf16.mxu0 %v8672_v28 }
0x1b7e   :  { %8675 = vmatpush3.bf16.msra.mxu0 %v8672_v28 }
0x1b7f   :  { %8677 = vmatprep.subr.bf16.mxu0 %v8676_v47 }
0x1b82   :  { %8679 = vmatpush3.bf16.msra.mxu0 %v8676_v47 }
0x1c48   :  { %v8153_v19 = vpop.f32.mrb[60].mxu0 }
0x1c49   :  { %v6399_v30 = vadd.f32 %v8153_v19, %v6901_v44  ;;  %v6393_v63 = vpop.f32.mrb[61].mxu0 }
0x1c4a   :  { %v6394_v35 = vadd.f32 %v6901_v44, %v6393_v63 }
0x1c4b   :  { %v6403_v34 = vmul.f32 %v6399_v30, %v6399_v30 }
0x1c4c   :  { %v6402_v4 = vmul.f32 %v6394_v35, %v6394_v35 }
0x1c4d   :  { %v6405_v15 = vmul.f32 %v6403_v34, %v6399_v30 }
0x1c4e   :  { %v6404_v62 = vmul.f32 %v6402_v4, %v6394_v35 }
0x1c4f   :  { %v6407_v5 = vmul.f32 0.044715, %v6405_v15 }
0x1c50   :  { %v6406_v27 = vmul.f32 0.044715, %v6404_v62 }
0x1c51   :  { %v6409_v13 = vadd.f32 %v6407_v5, %v6399_v30 }
0x1c52   :  { %v6408_v58 = vadd.f32 %v6406_v27, %v6394_v35 }
0x1c53   :  { %v6411_v8 = vmul.f32 0.7978846, %v6409_v13 }
0x1c54   :  { %v6410_v39 = vmul.f32 0.7978846, %v6408_v58 }
0x1c55   :  { %9149 = vtanh.f32 %v6411_v8 }
0x1c56   :  { %9151 = vtanh.f32 %v6410_v39 }
0x1c5f   :  { %v9150_v6 = vpop.eup %9149 }
0x1c60   :  { %v9152_v10 = vpop.eup %9151  ;;  %v6415_v0 = vadd.f32 1.0, %v9150_v6 }
0x1c61   :  { %v6414_v7 = vadd.f32 1.0, %v9152_v10 }
0x1c62   :  { %v6417_v31 = vmul.f32 0.5, %v6415_v0 }
0x1c63   :  { %v6416_v56 = vmul.f32 0.5, %v6414_v7 }
0x1c64   :  { %v6419_v61 = vmul.f32 %v6417_v31, %v6399_v30 }
0x1c65   :  { %v6418_v38 = vmul.f32 %v6416_v56, %v6394_v35 }
0x1c67   :  { %8170 = vmatprep.mubr.msk.f32.mxu0 %vm125_vm0, %v6418_v38 }
0x1c68   :  { %8171 = vmatmul.mubr.msk.f32.vlgmr.msra.gmra.mrb[62].mxu0 %vm125_vm0, %v6419_v61 }
0x1d3b   :  { %v8172_v21 = vpop.f32.mrb[62].mxu0 }
0x1d3c   :  { %v6502_v40 = vadd.f32 %v8172_v21, %v6314_v53  ;;  %v6492_v54 = vpop.f32.mrb[63].mxu0 }
0x1d3d   :  { %v6501_v24 = vadd.f32 %v6492_v54, %v11573_v37 }
0x1d3e   :  { %v6510_v42 = vadd.f32 %v6906_v52, %v6502_v40 }
0x1d3f   :  { %v6509_v20 = vadd.f32 %v6906_v52, %v6501_v24 }
0x1d41   :  { %8181 = vmatprep.mubr.msk.f32.mxu1 %vm356_vm1, %v6509_v20 }
0x1d42   :  { %8182 = vmatmul.mubr.msk.f32.vlgmr.msra.gmra.mrb[66].mxu1 %vm356_vm1, %v6510_v42 }
0x1e15   :  { %v8183_v2 = vpop.f32.mrb[66].mxu1 }
0x1e16   :  { %v6639_v59 = vadd.f32 %v8183_v2, %v6941_v51  ;;  %v6633_v9 = vpop.f32.mrb[67].mxu1 }
0x1e17   :  { %v6634_v25 = vadd.f32 %v6941_v51, %v6633_v9 }
0x1e18   :  { %6643 = vst.msk [vmem:[#allocation2 + $0x8] sm:$0xff] %vm125_vm0, %v6639_v59 }
0x1e19   :  { %6642 = vst.msk [vmem:[#allocation2] sm:$0xff] %vm125_vm0, %v6634_v25 }
0x1e1a   :  { %9172 = shalt.err (!%p9169_p4)
}
0x1e1b   :  { %s11757_s5 = sld [smem:[#allocation19_spill]] }
0x1e21   :  { %s9173_s4 = scalar_lea.hbm %s11757_s5, 256 }
0x1e22   :  { %p9174_p5 = scmp.ne.s32.totalorder %s11757_s5, %s9173_s4  ;;  %p9177_p6 = scmp.lt.u32.totalorder %s9173_s4, %s11757_s5 }
0x1e24   :  { %p9179_p7 = pnand %p9177_p6, %p9174_p5 }
0x1e26   :  { %9182 = shalt.err (!%p9179_p7)
}
0x1e27   :  { %s9203_s1 = smov 128  }
0x1e28   :  { %6655 = dma.vmem_to_hbm [thread:$0]  %s6650_s24, 256, %s11757_s5, [#allocation3], %s9203_s1, %s9203_s1, %s11742_s27  }
0x1e29   :  { %9183 = dma.done.wait [#allocation3], 256  }
0x1e2a   :  { %9184 = vsyncadd [#allocation3], 4294967040 }
0x1e2b   :  { %6679 = vsyncpa [#allocation3], 1 }

</bundles_post_ra>
